<compile_context>
chip_gen: v5e
topology: v5e:2x2
jax: 0.10.0
libtpu: 0.0.40
codegen_flags: <defaults>
</compile_context>

<pallas_src>
import functools

import jax
import jax.numpy as jnp
from jax.experimental import pallas as pl
from jax.experimental.pallas import tpu as pltpu

EPS = 1e-5
EXPANSION = 2
LANE = 128                      # channel dims padded to multiples of 128 (lane-dense)
TILE_P = 1024                   # max pixel rows per grid step (multiple of 8)
MXU_DTYPE = jnp.bfloat16        # native MXU operand dtype on v5e/v6e/v7x
STORE_DTYPE = jnp.bfloat16      # HBM dtype for conv intermediates


def _rup(x, m):
    return (x + m - 1) // m * m


def _vmem_limit_bytes():
    cap = 128 << 20
    try:
        cap = int(getattr(pltpu.get_tpu_info(), "vmem_capacity_bytes", cap))
    except Exception:
        pass
    # ~3/4 of physical VMEM: ~96 MiB on v5e/v6e (128 MiB), ~48 MiB on v7x (64 MiB).
    return max(32 << 20, min(cap * 3 // 4, 100 << 20))


_VMEM_LIMIT = _vmem_limit_bytes()


def _cparams():
    return pltpu.CompilerParams(
        dimension_semantics=("parallel",),
        vmem_limit_bytes=_VMEM_LIMIT)


def _pick_tile(p, row_bytes, budget=4 << 20):
    """Largest multiple-of-8 pixel tile <= TILE_P whose working set fits `budget`."""
    tp = min(TILE_P, _rup(p, 8))
    while tp > 8 and tp * row_bytes > budget:
        tp = max(8, _rup(tp // 2, 8))
    return tp


def _pick_rows(ho, row_bytes, budget=4 << 20):
    """Largest divisor of `ho` whose (rows + halo) working set fits `budget`."""
    for d in range(ho, 0, -1):
        if ho % d == 0 and (d + 2) * row_bytes <= budget:
            return d
    return 1


def _bn_scale_bias(stats, count, gamma_p, beta_p):
    """Combine per-tile partial sums -> folded BN scale/bias (biased variance)."""
    total = jnp.sum(stats[:, 0, :], axis=0)
    total_sq = jnp.sum(stats[:, 1, :], axis=0)
    mean = total / count
    var = jnp.maximum(total_sq / count - mean * mean, 0.0)
    scale = gamma_p * jax.lax.rsqrt(var + EPS)
    bias = beta_p - mean * scale
    return scale.reshape(1, -1), bias.reshape(1, -1)


# ---------------------------------------------------------------------------
# Kernel 1: 1x1 conv (bf16 matmul) emitting bf16 output + f32 BN partial stats
# ---------------------------------------------------------------------------
def _matmul_stats_kernel(x_ref, w_ref, y_ref, st_ref):
    y = jnp.dot(x_ref[...], w_ref[...], preferred_element_type=jnp.float32)
    y_ref[...] = y.astype(y_ref.dtype)
    # rows 0/1 of the 8-row stats block; rows 2-7 are never read downstream
    st_ref[0, 0:1, :] = jnp.sum(y, axis=0, keepdims=True)
    st_ref[0, 1:2, :] = jnp.sum(y * y, axis=0, keepdims=True)


def matmul_stats(x, w, *, tp):
    P, Cin = x.shape
    Cout = w.shape[1]
    nt = P // tp
    return pl.pallas_call(
        _matmul_stats_kernel,
        grid=(nt,),
        in_specs=[pl.BlockSpec((tp, Cin), lambda i: (i, 0)),
                  pl.BlockSpec((Cin, Cout), lambda i: (0, 0))],
        out_specs=[pl.BlockSpec((tp, Cout), lambda i: (i, 0)),
                   pl.BlockSpec((1, 8, Cout), lambda i: (i, 0, 0))],
        out_shape=(jax.ShapeDtypeStruct((P, Cout), STORE_DTYPE),
                   jax.ShapeDtypeStruct((nt, 8, Cout), jnp.float32)),
        compiler_params=_cparams(),
    )(x, w)


# ---------------------------------------------------------------------------
# Kernel 2: 3x3 grouped/strided conv, tiled over (image, output-row-block).
# Input is a stride-parity packed, BN1+ReLU'd, bf16 block (with a 1-2 row halo);
# the 9 taps are static contiguous slices; weights are 9 block-diagonal
# (GWp, GWp) bf16 matrices; accumulation is a VMEM f32 scratch.
# Emits bf16 y2 rows + f32 per-block BN partial stats.
# ---------------------------------------------------------------------------
def _gconv_stats_kernel(p_ref, w_ref, y_ref, st_ref, acc_ref, *, stride, tr, wo):
    gwp = acc_ref.shape[-1]
    acc_ref[...] = jnp.zeros_like(acc_ref)
    for kh in range(3):
        for kw in range(3):
            par = (kh % stride) * stride + (kw % stride)
            tap = p_ref[0, par,
                        pl.ds(kh // stride, tr),
                        pl.ds(kw // stride, wo), :]
            # TODO(synk): the (tr, wo, GWp) -> (tr*wo, GWp) collapse is a VMEM
            # relayout copy; a halo'd full-width-row formulation would remove it.
            tap = tap.reshape(tr * wo, gwp)
            acc_ref[...] += jnp.dot(tap, w_ref[kh * 3 + kw],
                                    preferred_element_type=jnp.float32)
    acc = acc_ref[...]
    y_ref[0] = acc.astype(y_ref.dtype)
    st_ref[0, 0:1, :] = jnp.sum(acc, axis=0, keepdims=True)
    st_ref[0, 1:2, :] = jnp.sum(acc * acc, axis=0, keepdims=True)


def gconv_stats(pblocks, w2bd, *, stride, tr, wo):
    NB, ss, trin, wq, gwp = pblocks.shape
    return pl.pallas_call(
        functools.partial(_gconv_stats_kernel, stride=stride, tr=tr, wo=wo),
        grid=(NB,),
        in_specs=[pl.BlockSpec((1, ss, trin, wq, gwp), lambda i: (i, 0, 0, 0, 0)),
                  pl.BlockSpec((9, gwp, gwp), lambda i: (0, 0, 0))],
        out_specs=[pl.BlockSpec((1, tr * wo, gwp), lambda i: (i, 0, 0)),
                   pl.BlockSpec((1, 8, gwp), lambda i: (i, 0, 0))],
        out_shape=(jax.ShapeDtypeStruct((NB, tr * wo, gwp), STORE_DTYPE),
                   jax.ShapeDtypeStruct((NB, 8, gwp), jnp.float32)),
        scratch_shapes=[pltpu.VMEM((tr * wo, gwp), jnp.float32)],
        compiler_params=_cparams(),
    )(pblocks, w2bd)


# ---------------------------------------------------------------------------
# Kernel 3a: fused (BN2+ReLU of y2) -> conv3 matmul, plus shortcut 1x1 conv
# (only built when the block has a conv shortcut), each with BN partial stats.
# ---------------------------------------------------------------------------
def _conv3_sc_kernel(y2_ref, xs_ref, s2_ref, b2_ref, w3_ref, ws_ref,
                     y3_ref, sc_ref, st3_ref, sts_ref, *, tp, p_true):
    y2n = jnp.maximum(y2_ref[...].astype(jnp.float32) * s2_ref[...] + b2_ref[...], 0.0)
    y3 = jnp.dot(y2n.astype(MXU_DTYPE), w3_ref[...], preferred_element_type=jnp.float32)
    sc = jnp.dot(xs_ref[...], ws_ref[...], preferred_element_type=jnp.float32)
    y3_ref[...] = y3.astype(y3_ref.dtype)
    sc_ref[...] = sc.astype(sc_ref.dtype)
    # exclude zero-padded pixel rows from the batch statistics
    rows = jax.lax.broadcasted_iota(jnp.int32, (tp, 1), 0) + pl.program_id(0) * tp
    m = (rows < p_true).astype(jnp.float32)
    y3m = y3 * m
    scm = sc * m
    st3_ref[0, 0:1, :] = jnp.sum(y3m, axis=0, keepdims=True)
    st3_ref[0, 1:2, :] = jnp.sum(y3 * y3m, axis=0, keepdims=True)
    sts_ref[0, 0:1, :] = jnp.sum(scm, axis=0, keepdims=True)
    sts_ref[0, 1:2, :] = jnp.sum(sc * scm, axis=0, keepdims=True)


def conv3_shortcut(y2flat, xs, scale2, bias2, w3, ws, *, tp, p_true):
    P, GWp = y2flat.shape
    Cs = xs.shape[1]
    C2p = w3.shape[1]
    nt = P // tp
    return pl.pallas_call(
        functools.partial(_conv3_sc_kernel, tp=tp, p_true=p_true),
        grid=(nt,),
        in_specs=[pl.BlockSpec((tp, GWp), lambda i: (i, 0)),
                  pl.BlockSpec((tp, Cs), lambda i: (i, 0)),
                  pl.BlockSpec((1, GWp), lambda i: (0, 0)),
                  pl.BlockSpec((1, GWp), lambda i: (0, 0)),
                  pl.BlockSpec((GWp, C2p), lambda i: (0, 0)),
                  pl.BlockSpec((Cs, C2p), lambda i: (0, 0))],
        out_specs=[pl.BlockSpec((tp, C2p), lambda i: (i, 0)),
                   pl.BlockSpec((tp, C2p), lambda i: (i, 0)),
                   pl.BlockSpec((1, 8, C2p), lambda i: (i, 0, 0)),
                   pl.BlockSpec((1, 8, C2p), lambda i: (i, 0, 0))],
        out_shape=(jax.ShapeDtypeStruct((P, C2p), STORE_DTYPE),
                   jax.ShapeDtypeStruct((P, C2p), STORE_DTYPE),
                   jax.ShapeDtypeStruct((nt, 8, C2p), jnp.float32),
                   jax.ShapeDtypeStruct((nt, 8, C2p), jnp.float32)),
        compiler_params=_cparams(),
    )(y2flat, xs, scale2, bias2, w3, ws)


# ---------------------------------------------------------------------------
# Kernel 3b: identity-shortcut variant (no shortcut conv / stats / pass-through)
# ---------------------------------------------------------------------------
def _conv3_id_kernel(y2_ref, s2_ref, b2_ref, w3_ref, y3_ref, st3_ref, *, tp, p_true):
    y2n = jnp.maximum(y2_ref[...].astype(jnp.float32) * s2_ref[...] + b2_ref[...], 0.0)
    y3 = jnp.dot(y2n.astype(MXU_DTYPE), w3_ref[...], preferred_element_type=jnp.float32)
    y3_ref[...] = y3.astype(y3_ref.dtype)
    rows = jax.lax.broadcasted_iota(jnp.int32, (tp, 1), 0) + pl.program_id(0) * tp
    m = (rows < p_true).astype(jnp.float32)
    y3m = y3 * m
    st3_ref[0, 0:1, :] = jnp.sum(y3m, axis=0, keepdims=True)
    st3_ref[0, 1:2, :] = jnp.sum(y3 * y3m, axis=0, keepdims=True)


def conv3_identity(y2flat, scale2, bias2, w3, *, tp, p_true):
    P, GWp = y2flat.shape
    C2p = w3.shape[1]
    nt = P // tp
    return pl.pallas_call(
        functools.partial(_conv3_id_kernel, tp=tp, p_true=p_true),
        grid=(nt,),
        in_specs=[pl.BlockSpec((tp, GWp), lambda i: (i, 0)),
                  pl.BlockSpec((1, GWp), lambda i: (0, 0)),
                  pl.BlockSpec((1, GWp), lambda i: (0, 0)),
                  pl.BlockSpec((GWp, C2p), lambda i: (0, 0))],
        out_specs=[pl.BlockSpec((tp, C2p), lambda i: (i, 0)),
                   pl.BlockSpec((1, 8, C2p), lambda i: (i, 0, 0))],
        out_shape=(jax.ShapeDtypeStruct((P, C2p), STORE_DTYPE),
                   jax.ShapeDtypeStruct((nt, 8, C2p), jnp.float32)),
        compiler_params=_cparams(),
    )(y2flat, scale2, bias2, w3)


# ---------------------------------------------------------------------------
# Kernel 4: fused epilogue  relu(BN3(y3) + BN_s(shortcut))   (identity shortcut
# uses scale=1 / bias=0 and the raw x as the shortcut input)
# ---------------------------------------------------------------------------
def _bn_add_relu_kernel(y3_ref, sc_ref, s3_ref, b3_ref, ss_ref, bs_ref, o_ref):
    main = y3_ref[...].astype(jnp.float32) * s3_ref[...] + b3_ref[...]
    short = sc_ref[...].astype(jnp.float32) * ss_ref[...] + bs_ref[...]
    o_ref[...] = jnp.maximum(main + short, 0.0)


def bn_add_relu(y3, sc, scale3, bias3, scale_s, bias_s, *, tp):
    P, C = y3.shape
    nt = P // tp
    tile = pl.BlockSpec((tp, C), lambda i: (i, 0))
    vec = pl.BlockSpec((1, C), lambda i: (0, 0))
    return pl.pallas_call(
        _bn_add_relu_kernel,
        grid=(nt,),
        in_specs=[tile, tile, vec, vec, vec, vec],
        out_specs=tile,
        out_shape=jax.ShapeDtypeStruct((P, C), jnp.float32),
        compiler_params=_cparams(),
    )(y3, sc, scale3, bias3, scale_s, bias_s)


# ---------------------------------------------------------------------------
# Parameter init (deterministic, PyTorch weight layouts)
# ---------------------------------------------------------------------------
def init_params(key, in_chn, cardinality, bottleneck_width):
    GW = cardinality * bottleneck_width
    bw = bottleneck_width
    keys = jax.random.split(key, 12)

    def rnd(k, shape, scale=0.1):
        return jax.random.normal(k, shape, jnp.float32) * scale

    return {
        "w1_t": rnd(keys[0], (GW, in_chn, 1, 1)),                  # conv1 (OIHW)
        "w2_t": rnd(keys[1], (GW, bw, 3, 3)),                      # conv2 grouped (OIHW)
        "w3_t": rnd(keys[2], (EXPANSION * GW, GW, 1, 1)),          # conv3
        "ws_t": rnd(keys[3], (EXPANSION * GW, in_chn, 1, 1)),      # shortcut conv
        "g1": 1.0 + rnd(keys[4], (GW,)),  "b1": rnd(keys[5], (GW,)),
        "g2": 1.0 + rnd(keys[6], (GW,)),  "b2": rnd(keys[7], (GW,)),
        "g3": 1.0 + rnd(keys[8], (EXPANSION * GW,)),
        "b3": rnd(keys[9], (EXPANSION * GW,)),
        "gs": 1.0 + rnd(keys[10], (EXPANSION * GW,)),
        "bs": rnd(keys[11], (EXPANSION * GW,)),
    }


def _pad2d(a, rows, cols):
    return jnp.pad(a, ((0, rows - a.shape[0]), (0, cols - a.shape[1])))


def _pad_vec(v, n):
    return jnp.pad(v, (0, n - v.shape[0]))


# ---------------------------------------------------------------------------
# Pallas-backed forward (NCHW in / NCHW out, like the PyTorch module)
# ---------------------------------------------------------------------------
def resblk_forward(x_nchw, params, cardinality, bottleneck_width, stride):
    GW = cardinality * bottleneck_width
    bw = bottleneck_width
    C2 = EXPANSION * GW
    N, Cin, H, W = x_nchw.shape
    Ho = (H - 1) // stride + 1
    Wo = (W - 1) // stride + 1

    Cinp = _rup(Cin, LANE)
    GWp = _rup(GW, LANE)
    C2p = _rup(C2, LANE)

    x = jnp.transpose(x_nchw, (0, 2, 3, 1))                        # NHWC (f32)

    # ---- weights into padded, lane-dense, bf16 matmul layouts ----
    w1 = _pad2d(params["w1_t"][:, :, 0, 0].T, Cinp, GWp).astype(MXU_DTYPE)
    w3 = _pad2d(params["w3_t"][:, :, 0, 0].T, GWp, C2p).astype(MXU_DTYPE)

    # grouped 3x3 conv -> 9 block-diagonal (GWp, GWp) matrices (one per tap)
    w2_kio = jnp.transpose(params["w2_t"], (2, 3, 1, 0)).reshape(9, bw, GW)
    w2_full = w2_kio[:, jnp.arange(GW) % bw, :]                    # (9, GW, GW)
    same_group = (jnp.arange(GW)[:, None] // bw) == (jnp.arange(GW)[None, :] // bw)
    w2bd = jnp.where(same_group[None, :, :], w2_full, 0.0)
    w2bd = jnp.pad(w2bd, ((0, 0), (0, GWp - GW), (0, GWp - GW))).astype(MXU_DTYPE)

    g1 = _pad_vec(params["g1"], GWp); b1 = _pad_vec(params["b1"], GWp)
    g2 = _pad_vec(params["g2"], GWp); b2 = _pad_vec(params["b2"], GWp)
    g3 = _pad_vec(params["g3"], C2p); b3 = _pad_vec(params["b3"], C2p)

    # ================= conv1 (1x1) + BN1 partial stats =================
    P1 = N * H * W
    tp1 = _pick_tile(P1, 2 * (Cinp + GWp) + 4 * GWp)
    P1p = _rup(P1, tp1)
    x2d = jnp.pad(x.reshape(P1, Cin), ((0, P1p - P1), (0, Cinp - Cin)))
    y1raw, st1 = matmul_stats(x2d.astype(MXU_DTYPE), w1, tp=tp1)
    scale1, bias1 = _bn_scale_bias(st1, float(P1), g1, b1)

    # BN1 + ReLU + spatial pad + stride-parity pack + row-block halo duplication:
    # one fused XLA glue pass over y1 (bf16 in / bf16 out).
    # TODO(synk): fold this glue into the grouped-conv kernel with a halo DMA so
    # y1 only makes a single HBM round trip.
    y1n = jnp.maximum(y1raw[:P1].astype(jnp.float32) * scale1 + bias1, 0.0)
    y1n = y1n.reshape(N, H, W, GWp)
    eh = (-(H + 2)) % stride
    ew = (-(W + 2)) % stride
    y1pad = jnp.pad(y1n, ((0, 0), (1, 1 + eh), (1, 1 + ew), (0, 0)))
    Hq = (H + 2 + eh) // stride
    Wq = (W + 2 + ew) // stride
    ss = stride * stride
    packed = y1pad.reshape(N, Hq, stride, Wq, stride, GWp)
    packed = jnp.transpose(packed, (0, 2, 4, 1, 3, 5))
    packed = packed.reshape(N, ss, Hq, Wq, GWp).astype(STORE_DTYPE)

    halo = 2 if stride == 1 else 1
    TR = _pick_rows(Ho, 2 * ss * Wq * GWp * 2 + 2 * Wo * GWp * 2 + Wo * GWp * 4)
    RB = Ho // TR
    trin = TR + halo
    pblocks = jnp.stack(
        [packed[:, :, rb * TR: rb * TR + trin] for rb in range(RB)], axis=1)
    pblocks = pblocks.reshape(N * RB, ss, trin, Wq, GWp)

    # ===== conv2 (3x3, grouped, strided), row-block tiled + BN2 partial stats =====
    y2raw, st2 = gconv_stats(pblocks, w2bd, stride=stride, tr=TR, wo=Wo)
    P2 = N * Ho * Wo
    scale2, bias2 = _bn_scale_bias(st2, float(P2), g2, b2)

    # ====== conv3 (1x1) fused with BN2+ReLU (+ shortcut 1x1 conv if present) ======
    has_sc_conv = (stride != 1) or (Cin != C2)
    if has_sc_conv:
        row_bytes = 2 * (GWp + Cinp) + 12 * C2p
    else:
        row_bytes = 2 * GWp + 6 * C2p
    tp2 = _pick_tile(P2, row_bytes)
    P2p = _rup(P2, tp2)
    y2flat = jnp.pad(y2raw.reshape(P2, GWp), ((0, P2p - P2), (0, 0)))

    if has_sc_conv:
        # TODO(synk): fold the stride-2 shortcut subsample into the conv3 kernel's
        # index_map / DMA instead of this XLA gather pass.
        xs = x[:, ::stride, ::stride, :].reshape(P2, Cin)
        xs = jnp.pad(xs, ((0, P2p - P2), (0, Cinp - Cin))).astype(MXU_DTYPE)
        ws = _pad2d(params["ws_t"][:, :, 0, 0].T, Cinp, C2p).astype(MXU_DTYPE)
        gs = _pad_vec(params["gs"], C2p); bs = _pad_vec(params["bs"], C2p)
        y3raw, scraw, st3, sts = conv3_shortcut(
            y2flat, xs, scale2, bias2, w3, ws, tp=tp2, p_true=P2)
        scale3, bias3 = _bn_scale_bias(st3, float(P2), g3, b3)
        scale_s, bias_s = _bn_scale_bias(sts, float(P2), gs, bs)
        sc_in = scraw
    else:
        # identity shortcut: x feeds the epilogue directly (no pass-through copy,
        # no shortcut stats, no zero-weight DMA)
        y3raw, st3 = conv3_identity(y2flat, scale2, bias2, w3, tp=tp2, p_true=P2)
        scale3, bias3 = _bn_scale_bias(st3, float(P2), g3, b3)
        scale_s = jnp.ones((1, C2p), jnp.float32)
        bias_s = jnp.zeros((1, C2p), jnp.float32)
        sc_in = jnp.pad(x.reshape(P2, Cin), ((0, P2p - P2), (0, C2p - Cin)))

    # ============ fused epilogue: BN3 (+ BN_s) + residual add + ReLU ============
    out2d = bn_add_relu(y3raw, sc_in, scale3, bias3, scale_s, bias_s, tp=tp2)
    out = out2d[:P2, :C2].reshape(N, Ho, Wo, C2)
    return jnp.transpose(out, (0, 3, 1, 2))                        # back to NCHW


# ---------------------------------------------------------------------------
# Pure-JAX reference (f32, lax convolutions) for verification
# ---------------------------------------------------------------------------
def ref_forward(x_nchw, p, cardinality, bottleneck_width, stride, in_chn):
    GW = cardinality * bottleneck_width
    x = jnp.transpose(x_nchw, (0, 2, 3, 1))
    dn = ("NHWC", "HWIO", "NHWC")
    prec = jax.lax.Precision.HIGHEST

    def conv(x, wt, s, padding, groups=1):
        w = jnp.transpose(wt, (2, 3, 1, 0))
        return jax.lax.conv_general_dilated(
            x, w, (s, s), padding, dimension_numbers=dn,
            feature_group_count=groups, precision=prec)

    def bn(y, gamma, beta):
        m = jnp.mean(y, axis=(0, 1, 2), keepdims=True)
        v = jnp.mean((y - m) ** 2, axis=(0, 1, 2), keepdims=True)
        return (y - m) * jax.lax.rsqrt(v + EPS) * gamma + beta

    y = jax.nn.relu(bn(conv(x, p["w1_t"], 1, "VALID"), p["g1"], p["b1"]))
    y = jax.nn.relu(bn(conv(y, p["w2_t"], stride, ((1, 1), (1, 1)),
                            groups=cardinality), p["g2"], p["b2"]))
    y = bn(conv(y, p["w3_t"], 1, "VALID"), p["g3"], p["b3"])
    if stride != 1 or in_chn != EXPANSION * GW:
        sc = bn(conv(x, p["ws_t"], stride, "VALID"), p["gs"], p["bs"])
    else:
        sc = x
    out = jax.nn.relu(y + sc)
    return jnp.transpose(out, (0, 3, 1, 2))


if __name__ == "__main__":
    configs = [
        # (in_chn, cardinality, bottleneck_width, stride)  -- conv shortcut path
        (4, 2, 4, 2),
        # identity shortcut path (stride=1, in_chn == expansion*group_width)
        (16, 2, 4, 1),
    ]
    N, H, W = 2, 16, 16
    key = jax.random.PRNGKey(0)
    fwd = jax.jit(resblk_forward, static_argnums=(2, 3, 4))

    for (in_chn, card, bwid, stride) in configs:
        key, kx, kp = jax.random.split(key, 3)
        x = jax.random.normal(kx, (N, in_chn, H, W), jnp.float32)   # NCHW, like PyTorch
        params = init_params(kp, in_chn, card, bwid)

        out = jax.block_until_ready(fwd(x, params, card, bwid, stride))
        ref = jax.block_until_ready(ref_forward(x, params, card, bwid, stride, in_chn))

        assert out.shape == ref.shape, (out.shape, ref.shape)
        # bf16 MXU operands + bf16 HBM intermediates across 3 conv+BN stages =>
        # tolerance loosened vs. the f32 2e-3 baseline (typical max |err| ~1e-2).
        if not jnp.allclose(out, ref, rtol=5e-2, atol=5e-2):
            raise AssertionError(
                f"mismatch (cfg={in_chn, card, bwid, stride}): "
                f"max abs err = {float(jnp.max(jnp.abs(out - ref)))}")
    print("KERNEL_OK")
</pallas_src>

<mosaic_0001>
module attributes {stable_mosaic.version = 11 : i64} {
  func.func @_matmul_stats_kernel(%arg0: i32, %arg1: memref<512x128xbf16, #tpu.memory_space<vmem>>, %arg2: memref<128x128xbf16, #tpu.memory_space<vmem>>, %arg3: memref<512x128xbf16, #tpu.memory_space<vmem>>, %arg4: memref<1x8x128xf32, #tpu.memory_space<vmem>>) attributes {dimension_semantics = [#tpu.dimension_semantics<parallel>], iteration_bounds = array<i64: 1>, scalar_prefetch = 0 : i64, scratch_operands = 0 : i64, tpu.core_type = #tpu.core_type<tc>, window_params = [{transform_indices = @transform_0, window_bounds = array<i64: 512, 128>}, {pipeline_mode = #tpu.pipeline_mode<synchronous>, transform_indices = @transform_1, window_bounds = array<i64: 128, 128>}, {transform_indices = @transform_2, window_bounds = array<i64: 512, 128>}, {transform_indices = @transform_3, window_bounds = array<i64: 1, 8, 128>}]} {
    %c0 = arith.constant 0 : index
    %c0_0 = arith.constant 0 : index
    %0 = vector.load %arg1[%c0, %c0_0] : memref<512x128xbf16, #tpu.memory_space<vmem>>, vector<512x128xbf16>
    %c0_1 = arith.constant 0 : index
    %c0_2 = arith.constant 0 : index
    %1 = vector.load %arg2[%c0_1, %c0_2] : memref<128x128xbf16, #tpu.memory_space<vmem>>, vector<128x128xbf16>
    %cst = arith.constant dense<0.000000e+00> : vector<512x128xf32>
    %2 = tpu.matmul %0, %1, %cst {dimension_numbers = #tpu.dot_dimension_numbers<[1], [0], [0], [1], [0, 0, 1, 1], [], []>} : vector<512x128xbf16>, vector<128x128xbf16>, vector<512x128xf32> -> vector<512x128xf32>
    %3 = arith.truncf %2 : vector<512x128xf32> to vector<512x128xbf16>
    %c0_3 = arith.constant 0 : index
    %c0_4 = arith.constant 0 : index
    %4 = vector.load %arg3[%c0_3, %c0_4] : memref<512x128xbf16, #tpu.memory_space<vmem>>, vector<512x128xbf16>
    tpu.vector_store %arg3[%c0_3, %c0_4], %3 {strides = array<i32>} : memref<512x128xbf16, #tpu.memory_space<vmem>>, vector<512x128xbf16>,
    %cst_5 = arith.constant dense<0.000000e+00> : vector<128xf32>
    %5 = vector.multi_reduction <add>, %2, %cst_5 [0] : vector<512x128xf32> to vector<128xf32>
    %6 = vector.shape_cast %5 : vector<128xf32> to vector<1x128xf32>
    %c0_6 = arith.constant 0 : index
    %c0_7 = arith.constant 0 : index
    %c0_8 = arith.constant 0 : index
    %7 = vector.load %arg4[%c0_6, %c0_7, %c0_8] : memref<1x8x128xf32, #tpu.memory_space<vmem>>, vector<1x1x128xf32>
    %8 = vector.shape_cast %7 : vector<1x1x128xf32> to vector<1x128xf32>
    %9 = vector.shape_cast %6 : vector<1x128xf32> to vector<1x1x128xf32>
    tpu.vector_store %arg4[%c0_6, %c0_7, %c0_8], %9 {strides = array<i32>} : memref<1x8x128xf32, #tpu.memory_space<vmem>>, vector<1x1x128xf32>,
    %10 = arith.mulf %2, %2 : vector<512x128xf32>
    %cst_9 = arith.constant dense<0.000000e+00> : vector<128xf32>
    %11 = vector.multi_reduction <add>, %10, %cst_9 [0] : vector<512x128xf32> to vector<128xf32>
    %12 = vector.shape_cast %11 : vector<128xf32> to vector<1x128xf32>
    %c0_10 = arith.constant 0 : index
    %c1 = arith.constant 1 : index
    %c0_11 = arith.constant 0 : index
    %13 = vector.load %arg4[%c0_10, %c1, %c0_11] : memref<1x8x128xf32, #tpu.memory_space<vmem>>, vector<1x1x128xf32>
    %14 = vector.shape_cast %13 : vector<1x1x128xf32> to vector<1x128xf32>
    %15 = vector.shape_cast %12 : vector<1x128xf32> to vector<1x1x128xf32>
    tpu.vector_store %arg4[%c0_10, %c1, %c0_11], %15 {strides = array<i32>} : memref<1x8x128xf32, #tpu.memory_space<vmem>>, vector<1x1x128xf32>,
    return
  }
  func.func @transform_0(%arg0: i32) -> (i32, i32) {
    %c0_i32 = arith.constant 0 : i32
    %c0_i32_0 = arith.constant 0 : i32
    return %arg0, %c0_i32 : i32, i32
  }
  func.func @transform_1(%arg0: i32) -> (i32, i32) {
    %c0_i32 = arith.constant 0 : i32
    %c0_i32_0 = arith.constant 0 : i32
    %c0_i32_1 = arith.constant 0 : i32
    return %c0_i32, %c0_i32_0 : i32, i32
  }
  func.func @transform_2(%arg0: i32) -> (i32, i32) {
    %c0_i32 = arith.constant 0 : i32
    %c0_i32_0 = arith.constant 0 : i32
    return %arg0, %c0_i32 : i32, i32
  }
  func.func @transform_3(%arg0: i32) -> (i32, i32, i32) {
    %c0_i32 = arith.constant 0 : i32
    %c0_i32_0 = arith.constant 0 : i32
    %c0_i32_1 = arith.constant 0 : i32
    return %arg0, %c0_i32, %c0_i32_0 : i32, i32, i32
  }
}

module attributes {stable_mosaic.version = 11 : i64} {
  func.func @_bn_add_relu_kernel(%arg0: i32, %arg1: memref<128x128xbf16, #tpu.memory_space<vmem>>, %arg2: memref<128x128xbf16, #tpu.memory_space<vmem>>, %arg3: memref<1x128xf32, #tpu.memory_space<vmem>>, %arg4: memref<1x128xf32, #tpu.memory_space<vmem>>, %arg5: memref<1x128xf32, #tpu.memory_space<vmem>>, %arg6: memref<1x128xf32, #tpu.memory_space<vmem>>, %arg7: memref<128x128xf32, #tpu.memory_space<vmem>>) attributes {dimension_semantics = [#tpu.dimension_semantics<parallel>], iteration_bounds = array<i64: 1>, scalar_prefetch = 0 : i64, scratch_operands = 0 : i64, tpu.core_type = #tpu.core_type<tc>, window_params = [{transform_indices = @transform_0, window_bounds = array<i64: 128, 128>}, {transform_indices = @transform_1, window_bounds = array<i64: 128, 128>}, {pipeline_mode = #tpu.pipeline_mode<synchronous>, transform_indices = @transform_2, window_bounds = array<i64: 1, 128>}, {pipeline_mode = #tpu.pipeline_mode<synchronous>, transform_indices = @transform_3, window_bounds = array<i64: 1, 128>}, {pipeline_mode = #tpu.pipeline_mode<synchronous>, transform_indices = @transform_4, window_bounds = array<i64: 1, 128>}, {pipeline_mode = #tpu.pipeline_mode<synchronous>, transform_indices = @transform_5, window_bounds = array<i64: 1, 128>}, {transform_indices = @transform_6, window_bounds = array<i64: 128, 128>}]} {
    %c0 = arith.constant 0 : index
    %c0_0 = arith.constant 0 : index
    %0 = vector.load %arg1[%c0, %c0_0] : memref<128x128xbf16, #tpu.memory_space<vmem>>, vector<128x128xbf16>
    %1 = arith.extf %0 : vector<128x128xbf16> to vector<128x128xf32>
    %c0_1 = arith.constant 0 : index
    %c0_2 = arith.constant 0 : index
    %2 = vector.load %arg3[%c0_1, %c0_2] : memref<1x128xf32, #tpu.memory_space<vmem>>, vector<1x128xf32>
    %3 = vector.broadcast %2 : vector<1x128xf32> to vector<128x128xf32>
    %4 = arith.mulf %1, %3 : vector<128x128xf32>
    %c0_3 = arith.constant 0 : index
    %c0_4 = arith.constant 0 : index
    %5 = vector.load %arg4[%c0_3, %c0_4] : memref<1x128xf32, #tpu.memory_space<vmem>>, vector<1x128xf32>
    %6 = vector.broadcast %5 : vector<1x128xf32> to vector<128x128xf32>
    %7 = arith.addf %4, %6 : vector<128x128xf32>
    %c0_5 = arith.constant 0 : index
    %c0_6 = arith.constant 0 : index
    %8 = vector.load %arg2[%c0_5, %c0_6] : memref<128x128xbf16, #tpu.memory_space<vmem>>, vector<128x128xbf16>
    %9 = arith.extf %8 : vector<128x128xbf16> to vector<128x128xf32>
    %c0_7 = arith.constant 0 : index
    %c0_8 = arith.constant 0 : index
    %10 = vector.load %arg5[%c0_7, %c0_8] : memref<1x128xf32, #tpu.memory_space<vmem>>, vector<1x128xf32>
    %11 = vector.broadcast %10 : vector<1x128xf32> to vector<128x128xf32>
    %12 = arith.mulf %9, %11 : vector<128x128xf32>
    %c0_9 = arith.constant 0 : index
    %c0_10 = arith.constant 0 : index
    %13 = vector.load %arg6[%c0_9, %c0_10] : memref<1x128xf32, #tpu.memory_space<vmem>>, vector<1x128xf32>
    %14 = vector.broadcast %13 : vector<1x128xf32> to vector<128x128xf32>
    %15 = arith.addf %12, %14 : vector<128x128xf32>
    %16 = arith.addf %7, %15 : vector<128x128xf32>
    %cst = arith.constant 0.000000e+00 : f32
    %17 = vector.broadcast %cst : f32 to vector<128x128xf32>
    %18 = arith.maximumf %16, %17 : vector<128x128xf32>
    %c0_11 = arith.constant 0 : index
    %c0_12 = arith.constant 0 : index
    %19 = vector.load %arg7[%c0_11, %c0_12] : memref<128x128xf32, #tpu.memory_space<vmem>>, vector<128x128xf32>
    tpu.vector_store %arg7[%c0_11, %c0_12], %18 {strides = array<i32>} : memref<128x128xf32, #tpu.memory_space<vmem>>, vector<128x128xf32>,
    return
  }
  func.func @transform_0(%arg0: i32) -> (i32, i32) {
    %c0_i32 = arith.constant 0 : i32
    %c0_i32_0 = arith.constant 0 : i32
    return %arg0, %c0_i32 : i32, i32
  }
  func.func @transform_1(%arg0: i32) -> (i32, i32) {
    %c0_i32 = arith.constant 0 : i32
    %c0_i32_0 = arith.constant 0 : i32
    return %arg0, %c0_i32 : i32, i32
  }
  func.func @transform_2(%arg0: i32) -> (i32, i32) {
    %c0_i32 = arith.constant 0 : i32
    %c0_i32_0 = arith.constant 0 : i32
    %c0_i32_1 = arith.constant 0 : i32
    return %c0_i32, %c0_i32_0 : i32, i32
  }
  func.func @transform_3(%arg0: i32) -> (i32, i32) {
    %c0_i32 = arith.constant 0 : i32
    %c0_i32_0 = arith.constant 0 : i32
    %c0_i32_1 = arith.constant 0 : i32
    return %c0_i32, %c0_i32_0 : i32, i32
  }
  func.func @transform_4(%arg0: i32) -> (i32, i32) {
    %c0_i32 = arith.constant 0 : i32
    %c0_i32_0 = arith.constant 0 : i32
    %c0_i32_1 = arith.constant 0 : i32
    return %c0_i32, %c0_i32_0 : i32, i32
  }
  func.func @transform_5(%arg0: i32) -> (i32, i32) {
    %c0_i32 = arith.constant 0 : i32
    %c0_i32_0 = arith.constant 0 : i32
    %c0_i32_1 = arith.constant 0 : i32
    return %c0_i32, %c0_i32_0 : i32, i32
  }
  func.func @transform_6(%arg0: i32) -> (i32, i32) {
    %c0_i32 = arith.constant 0 : i32
    %c0_i32_0 = arith.constant 0 : i32
    return %arg0, %c0_i32 : i32, i32
  }
}

module attributes {stable_mosaic.version = 11 : i64} {
  func.func @_conv3_sc_kernel(%arg0: i32, %arg1: memref<128x128xbf16, #tpu.memory_space<vmem>>, %arg2: memref<128x128xbf16, #tpu.memory_space<vmem>>, %arg3: memref<1x128xf32, #tpu.memory_space<vmem>>, %arg4: memref<1x128xf32, #tpu.memory_space<vmem>>, %arg5: memref<128x128xbf16, #tpu.memory_space<vmem>>, %arg6: memref<128x128xbf16, #tpu.memory_space<vmem>>, %arg7: memref<128x128xbf16, #tpu.memory_space<vmem>>, %arg8: memref<128x128xbf16, #tpu.memory_space<vmem>>, %arg9: memref<1x8x128xf32, #tpu.memory_space<vmem>>, %arg10: memref<1x8x128xf32, #tpu.memory_space<vmem>>) attributes {dimension_semantics = [#tpu.dimension_semantics<parallel>], iteration_bounds = array<i64: 1>, scalar_prefetch = 0 : i64, scratch_operands = 0 : i64, tpu.core_type = #tpu.core_type<tc>, window_params = [{transform_indices = @transform_0, window_bounds = array<i64: 128, 128>}, {transform_indices = @transform_1, window_bounds = array<i64: 128, 128>}, {pipeline_mode = #tpu.pipeline_mode<synchronous>, transform_indices = @transform_2, window_bounds = array<i64: 1, 128>}, {pipeline_mode = #tpu.pipeline_mode<synchronous>, transform_indices = @transform_3, window_bounds = array<i64: 1, 128>}, {pipeline_mode = #tpu.pipeline_mode<synchronous>, transform_indices = @transform_4, window_bounds = array<i64: 128, 128>}, {pipeline_mode = #tpu.pipeline_mode<synchronous>, transform_indices = @transform_5, window_bounds = array<i64: 128, 128>}, {transform_indices = @transform_6, window_bounds = array<i64: 128, 128>}, {transform_indices = @transform_7, window_bounds = array<i64: 128, 128>}, {transform_indices = @transform_8, window_bounds = array<i64: 1, 8, 128>}, {transform_indices = @transform_9, window_bounds = array<i64: 1, 8, 128>}]} {
    %c0 = arith.constant 0 : index
    %c0_0 = arith.constant 0 : index
    %0 = vector.load %arg1[%c0, %c0_0] : memref<128x128xbf16, #tpu.memory_space<vmem>>, vector<128x128xbf16>
    %1 = arith.extf %0 : vector<128x128xbf16> to vector<128x128xf32>
    %c0_1 = arith.constant 0 : index
    %c0_2 = arith.constant 0 : index
    %2 = vector.load %arg3[%c0_1, %c0_2] : memref<1x128xf32, #tpu.memory_space<vmem>>, vector<1x128xf32>
    %3 = vector.broadcast %2 : vector<1x128xf32> to vector<128x128xf32>
    %4 = arith.mulf %1, %3 : vector<128x128xf32>
    %c0_3 = arith.constant 0 : index
    %c0_4 = arith.constant 0 : index
    %5 = vector.load %arg4[%c0_3, %c0_4] : memref<1x128xf32, #tpu.memory_space<vmem>>, vector<1x128xf32>
    %6 = vector.broadcast %5 : vector<1x128xf32> to vector<128x128xf32>
    %7 = arith.addf %4, %6 : vector<128x128xf32>
    %cst = arith.constant 0.000000e+00 : f32
    %8 = vector.broadcast %cst : f32 to vector<128x128xf32>
    %9 = arith.maximumf %7, %8 : vector<128x128xf32>
    %10 = arith.truncf %9 : vector<128x128xf32> to vector<128x128xbf16>
    %c0_5 = arith.constant 0 : index
    %c0_6 = arith.constant 0 : index
    %11 = vector.load %arg5[%c0_5, %c0_6] : memref<128x128xbf16, #tpu.memory_space<vmem>>, vector<128x128xbf16>
    %cst_7 = arith.constant dense<0.000000e+00> : vector<128x128xf32>
    %12 = tpu.matmul %10, %11, %cst_7 {dimension_numbers = #tpu.dot_dimension_numbers<[1], [0], [0], [1], [0, 0, 1, 1], [], []>} : vector<128x128xbf16>, vector<128x128xbf16>, vector<128x128xf32> -> vector<128x128xf32>
    %c0_8 = arith.constant 0 : index
    %c0_9 = arith.constant 0 : index
    %13 = vector.load %arg2[%c0_8, %c0_9] : memref<128x128xbf16, #tpu.memory_space<vmem>>, vector<128x128xbf16>
    %c0_10 = arith.constant 0 : index
    %c0_11 = arith.constant 0 : index
    %14 = vector.load %arg6[%c0_10, %c0_11] : memref<128x128xbf16, #tpu.memory_space<vmem>>, vector<128x128xbf16>
    %cst_12 = arith.constant dense<0.000000e+00> : vector<128x128xf32>
    %15 = tpu.matmul %13, %14, %cst_12 {dimension_numbers = #tpu.dot_dimension_numbers<[1], [0], [0], [1], [0, 0, 1, 1], [], []>} : vector<128x128xbf16>, vector<128x128xbf16>, vector<128x128xf32> -> vector<128x128xf32>
    %16 = arith.truncf %12 : vector<128x128xf32> to vector<128x128xbf16>
    %c0_13 = arith.constant 0 : index
    %c0_14 = arith.constant 0 : index
    %17 = vector.load %arg7[%c0_13, %c0_14] : memref<128x128xbf16, #tpu.memory_space<vmem>>, vector<128x128xbf16>
    tpu.vector_store %arg7[%c0_13, %c0_14], %16 {strides = array<i32>} : memref<128x128xbf16, #tpu.memory_space<vmem>>, vector<128x128xbf16>,
    %18 = arith.truncf %15 : vector<128x128xf32> to vector<128x128xbf16>
    %c0_15 = arith.constant 0 : index
    %c0_16 = arith.constant 0 : index
    %19 = vector.load %arg8[%c0_15, %c0_16] : memref<128x128xbf16, #tpu.memory_space<vmem>>, vector<128x128xbf16>
    tpu.vector_store %arg8[%c0_15, %c0_16], %18 {strides = array<i32>} : memref<128x128xbf16, #tpu.memory_space<vmem>>, vector<128x128xbf16>,
    %20 = tpu.iota {dimensions = array<i32: 0>} : vector<128x1xi32>
    %c128_i32 = arith.constant 128 : i32
    %21 = arith.muli %arg0, %c128_i32 : i32
    %22 = vector.broadcast %21 : i32 to vector<128x1xi32>
    %23 = arith.addi %20, %22 : vector<128x1xi32>
    %c128_i32_17 = arith.constant 128 : i32
    %24 = vector.broadcast %c128_i32_17 : i32 to vector<128x1xi32>
    %25 = arith.cmpi slt, %23, %24 : vector<128x1xi32>
    %26 = arith.extui %25 : vector<128x1xi1> to vector<128x1xi32>
    %27 = arith.sitofp %26 : vector<128x1xi32> to vector<128x1xf32>
    %28 = vector.broadcast %27 : vector<128x1xf32> to vector<128x128xf32>
    %29 = arith.mulf %12, %28 : vector<128x128xf32>
    %30 = vector.broadcast %27 : vector<128x1xf32> to vector<128x128xf32>
    %31 = arith.mulf %15, %30 : vector<128x128xf32>
    %cst_18 = arith.constant dense<0.000000e+00> : vector<128xf32>
    %32 = vector.multi_reduction <add>, %29, %cst_18 [0] : vector<128x128xf32> to vector<128xf32>
    %33 = vector.shape_cast %32 : vector<128xf32> to vector<1x128xf32>
    %c0_19 = arith.constant 0 : index
    %c0_20 = arith.constant 0 : index
    %c0_21 = arith.constant 0 : index
    %34 = vector.load %arg9[%c0_19, %c0_20, %c0_21] : memref<1x8x128xf32, #tpu.memory_space<vmem>>, vector<1x1x128xf32>
    %35 = vector.shape_cast %34 : vector<1x1x128xf32> to vector<1x128xf32>
    %36 = vector.shape_cast %33 : vector<1x128xf32> to vector<1x1x128xf32>
    tpu.vector_store %arg9[%c0_19, %c0_20, %c0_21], %36 {strides = array<i32>} : memref<1x8x128xf32, #tpu.memory_space<vmem>>, vector<1x1x128xf32>,
    %37 = arith.mulf %12, %29 : vector<128x128xf32>
    %cst_22 = arith.constant dense<0.000000e+00> : vector<128xf32>
    %38 = vector.multi_reduction <add>, %37, %cst_22 [0] : vector<128x128xf32> to vector<128xf32>
    %39 = vector.shape_cast %38 : vector<128xf32> to vector<1x128xf32>
    %c0_23 = arith.constant 0 : index
    %c1 = arith.constant 1 : index
    %c0_24 = arith.constant 0 : index
    %40 = vector.load %arg9[%c0_23, %c1, %c0_24] : memref<1x8x128xf32, #tpu.memory_space<vmem>>, vector<1x1x128xf32>
    %41 = vector.shape_cast %40 : vector<1x1x128xf32> to vector<1x128xf32>
    %42 = vector.shape_cast %39 : vector<1x128xf32> to vector<1x1x128xf32>
    tpu.vector_store %arg9[%c0_23, %c1, %c0_24], %42 {strides = array<i32>} : memref<1x8x128xf32, #tpu.memory_space<vmem>>, vector<1x1x128xf32>,
    %cst_25 = arith.constant dense<0.000000e+00> : vector<128xf32>
    %43 = vector.multi_reduction <add>, %31, %cst_25 [0] : vector<128x128xf32> to vector<128xf32>
    %44 = vector.shape_cast %43 : vector<128xf32> to vector<1x128xf32>
    %c0_26 = arith.constant 0 : index
    %c0_27 = arith.constant 0 : index
    %c0_28 = arith.constant 0 : index
    %45 = vector.load %arg10[%c0_26, %c0_27, %c0_28] : memref<1x8x128xf32, #tpu.memory_space<vmem>>, vector<1x1x128xf32>
    %46 = vector.shape_cast %45 : vector<1x1x128xf32> to vector<1x128xf32>
    %47 = vector.shape_cast %44 : vector<1x128xf32> to vector<1x1x128xf32>
    tpu.vector_store %arg10[%c0_26, %c0_27, %c0_28], %47 {strides = array<i32>} : memref<1x8x128xf32, #tpu.memory_space<vmem>>, vector<1x1x128xf32>,
    %48 = arith.mulf %15, %31 : vector<128x128xf32>
    %cst_29 = arith.constant dense<0.000000e+00> : vector<128xf32>
    %49 = vector.multi_reduction <add>, %48, %cst_29 [0] : vector<128x128xf32> to vector<128xf32>
    %50 = vector.shape_cast %49 : vector<128xf32> to vector<1x128xf32>
    %c0_30 = arith.constant 0 : index
    %c1_31 = arith.constant 1 : index
    %c0_32 = arith.constant 0 : index
    %51 = vector.load %arg10[%c0_30, %c1_31, %c0_32] : memref<1x8x128xf32, #tpu.memory_space<vmem>>, vector<1x1x128xf32>
    %52 = vector.shape_cast %51 : vector<1x1x128xf32> to vector<1x128xf32>
    %53 = vector.shape_cast %50 : vector<1x128xf32> to vector<1x1x128xf32>
    tpu.vector_store %arg10[%c0_30, %c1_31, %c0_32], %53 {strides = array<i32>} : memref<1x8x128xf32, #tpu.memory_space<vmem>>, vector<1x1x128xf32>,
    return
  }
  func.func @transform_0(%arg0: i32) -> (i32, i32) {
    %c0_i32 = arith.constant 0 : i32
    %c0_i32_0 = arith.constant 0 : i32
    return %arg0, %c0_i32 : i32, i32
  }
  func.func @transform_1(%arg0: i32) -> (i32, i32) {
    %c0_i32 = arith.constant 0 : i32
    %c0_i32_0 = arith.constant 0 : i32
    return %arg0, %c0_i32 : i32, i32
  }
  func.func @transform_2(%arg0: i32) -> (i32, i32) {
    %c0_i32 = arith.constant 0 : i32
    %c0_i32_0 = arith.constant 0 : i32
    %c0_i32_1 = arith.constant 0 : i32
    return %c0_i32, %c0_i32_0 : i32, i32
  }
  func.func @transform_3(%arg0: i32) -> (i32, i32) {
    %c0_i32 = arith.constant 0 : i32
    %c0_i32_0 = arith.constant 0 : i32
    %c0_i32_1 = arith.constant 0 : i32
    return %c0_i32, %c0_i32_0 : i32, i32
  }
  func.func @transform_4(%arg0: i32) -> (i32, i32) {
    %c0_i32 = arith.constant 0 : i32
    %c0_i32_0 = arith.constant 0 : i32
    %c0_i32_1 = arith.constant 0 : i32
    return %c0_i32, %c0_i32_0 : i32, i32
  }
  func.func @transform_5(%arg0: i32) -> (i32, i32) {
    %c0_i32 = arith.constant 0 : i32
    %c0_i32_0 = arith.constant 0 : i32
    %c0_i32_1 = arith.constant 0 : i32
    return %c0_i32, %c0_i32_0 : i32, i32
  }
  func.func @transform_6(%arg0: i32) -> (i32, i32) {
    %c0_i32 = arith.constant 0 : i32
    %c0_i32_0 = arith.constant 0 : i32
    return %arg0, %c0_i32 : i32, i32
  }
  func.func @transform_7(%arg0: i32) -> (i32, i32) {
    %c0_i32 = arith.constant 0 : i32
    %c0_i32_0 = arith.constant 0 : i32
    return %arg0, %c0_i32 : i32, i32
  }
  func.func @transform_8(%arg0: i32) -> (i32, i32, i32) {
    %c0_i32 = arith.constant 0 : i32
    %c0_i32_0 = arith.constant 0 : i32
    %c0_i32_1 = arith.constant 0 : i32
    return %arg0, %c0_i32, %c0_i32_0 : i32, i32, i32
  }
  func.func @transform_9(%arg0: i32) -> (i32, i32, i32) {
    %c0_i32 = arith.constant 0 : i32
    %c0_i32_0 = arith.constant 0 : i32
    %c0_i32_1 = arith.constant 0 : i32
    return %arg0, %c0_i32, %c0_i32_0 : i32, i32, i32
  }
}

module attributes {stable_mosaic.version = 11 : i64} {
  func.func @_gconv_stats_kernel(%arg0: i32, %arg1: memref<1x4x9x9x128xbf16, #tpu.memory_space<vmem>>, %arg2: memref<9x128x128xbf16, #tpu.memory_space<vmem>>, %arg3: memref<1x64x128xbf16, #tpu.memory_space<vmem>>, %arg4: memref<1x8x128xf32, #tpu.memory_space<vmem>>, %arg5: memref<64x128xf32, #tpu.memory_space<vmem>>) attributes {dimension_semantics = [#tpu.dimension_semantics<parallel>], iteration_bounds = array<i64: 2>, scalar_prefetch = 0 : i64, scratch_operands = 1 : i64, tpu.core_type = #tpu.core_type<tc>, window_params = [{transform_indices = @transform_0, window_bounds = array<i64: 1, 4, 9, 9, 128>}, {pipeline_mode = #tpu.pipeline_mode<synchronous>, transform_indices = @transform_1, window_bounds = array<i64: 9, 128, 128>}, {transform_indices = @transform_2, window_bounds = array<i64: 1, 64, 128>}, {transform_indices = @transform_3, window_bounds = array<i64: 1, 8, 128>}]} {
    %cst = arith.constant 0.000000e+00 : f32
    %0 = vector.broadcast %cst : f32 to vector<64x128xf32>
    %c0 = arith.constant 0 : index
    %c0_0 = arith.constant 0 : index
    %1 = vector.load %arg5[%c0, %c0_0] : memref<64x128xf32, #tpu.memory_space<vmem>>, vector<64x128xf32>
    tpu.vector_store %arg5[%c0, %c0_0], %0 {strides = array<i32>} : memref<64x128xf32, #tpu.memory_space<vmem>>, vector<64x128xf32>,
    %c0_1 = arith.constant 0 : index
    %c0_2 = arith.constant 0 : index
    %c0_3 = arith.constant 0 : index
    %c0_4 = arith.constant 0 : index
    %c0_5 = arith.constant 0 : index
    %2 = vector.load %arg1[%c0_1, %c0_2, %c0_3, %c0_4, %c0_5] : memref<1x4x9x9x128xbf16, #tpu.memory_space<vmem>>, vector<1x1x8x8x128xbf16>
    %3 = vector.shape_cast %2 : vector<1x1x8x8x128xbf16> to vector<8x8x128xbf16>
    %4 = vector.shape_cast %3 : vector<8x8x128xbf16> to vector<64x128xbf16>
    %c0_6 = arith.constant 0 : index
    %c0_7 = arith.constant 0 : index
    %5 = vector.load %arg5[%c0_6, %c0_7] : memref<64x128xf32, #tpu.memory_space<vmem>>, vector<64x128xf32>
    %c0_8 = arith.constant 0 : index
    %c0_9 = arith.constant 0 : index
    %c0_10 = arith.constant 0 : index
    %6 = vector.load %arg2[%c0_8, %c0_9, %c0_10] : memref<9x128x128xbf16, #tpu.memory_space<vmem>>, vector<1x128x128xbf16>
    %7 = vector.shape_cast %6 : vector<1x128x128xbf16> to vector<128x128xbf16>
    %cst_11 = arith.constant dense<0.000000e+00> : vector<64x128xf32>
    %8 = tpu.matmul %4, %7, %cst_11 {dimension_numbers = #tpu.dot_dimension_numbers<[1], [0], [0], [1], [0, 0, 1, 1], [], []>} : vector<64x128xbf16>, vector<128x128xbf16>, vector<64x128xf32> -> vector<64x128xf32>
    %9 = arith.addf %5, %8 : vector<64x128xf32>
    %c0_12 = arith.constant 0 : index
    %c0_13 = arith.constant 0 : index
    %10 = vector.load %arg5[%c0_12, %c0_13] : memref<64x128xf32, #tpu.memory_space<vmem>>, vector<64x128xf32>
    tpu.vector_store %arg5[%c0_12, %c0_13], %9 {strides = array<i32>} : memref<64x128xf32, #tpu.memory_space<vmem>>, vector<64x128xf32>,
    %c0_14 = arith.constant 0 : index
    %c1 = arith.constant 1 : index
    %c0_15 = arith.constant 0 : index
    %c0_16 = arith.constant 0 : index
    %c0_17 = arith.constant 0 : index
    %11 = vector.load %arg1[%c0_14, %c1, %c0_15, %c0_16, %c0_17] : memref<1x4x9x9x128xbf16, #tpu.memory_space<vmem>>, vector<1x1x8x8x128xbf16>
    %12 = vector.shape_cast %11 : vector<1x1x8x8x128xbf16> to vector<8x8x128xbf16>
    %13 = vector.shape_cast %12 : vector<8x8x128xbf16> to vector<64x128xbf16>
    %c0_18 = arith.constant 0 : index
    %c0_19 = arith.constant 0 : index
    %14 = vector.load %arg5[%c0_18, %c0_19] : memref<64x128xf32, #tpu.memory_space<vmem>>, vector<64x128xf32>
    %c1_20 = arith.constant 1 : index
    %c0_21 = arith.constant 0 : index
    %c0_22 = arith.constant 0 : index
    %15 = vector.load %arg2[%c1_20, %c0_21, %c0_22] : memref<9x128x128xbf16, #tpu.memory_space<vmem>>, vector<1x128x128xbf16>
    %16 = vector.shape_cast %15 : vector<1x128x128xbf16> to vector<128x128xbf16>
    %cst_23 = arith.constant dense<0.000000e+00> : vector<64x128xf32>
    %17 = tpu.matmul %13, %16, %cst_23 {dimension_numbers = #tpu.dot_dimension_numbers<[1], [0], [0], [1], [0, 0, 1, 1], [], []>} : vector<64x128xbf16>, vector<128x128xbf16>, vector<64x128xf32> -> vector<64x128xf32>
    %18 = arith.addf %14, %17 : vector<64x128xf32>
    %c0_24 = arith.constant 0 : index
    %c0_25 = arith.constant 0 : index
    %19 = vector.load %arg5[%c0_24, %c0_25] : memref<64x128xf32, #tpu.memory_space<vmem>>, vector<64x128xf32>
    tpu.vector_store %arg5[%c0_24, %c0_25], %18 {strides = array<i32>} : memref<64x128xf32, #tpu.memory_space<vmem>>, vector<64x128xf32>,
    %c0_26 = arith.constant 0 : index
    %c0_27 = arith.constant 0 : index
    %c0_28 = arith.constant 0 : index
    %c1_29 = arith.constant 1 : index
    %c0_30 = arith.constant 0 : index
    %20 = vector.load %arg1[%c0_26, %c0_27, %c0_28, %c1_29, %c0_30] : memref<1x4x9x9x128xbf16, #tpu.memory_space<vmem>>, vector<1x1x8x8x128xbf16>
    %21 = vector.shape_cast %20 : vector<1x1x8x8x128xbf16> to vector<8x8x128xbf16>
    %22 = vector.shape_cast %21 : vector<8x8x128xbf16> to vector<64x128xbf16>
    %c0_31 = arith.constant 0 : index
    %c0_32 = arith.constant 0 : index
    %23 = vector.load %arg5[%c0_31, %c0_32] : memref<64x128xf32, #tpu.memory_space<vmem>>, vector<64x128xf32>
    %c2 = arith.constant 2 : index
    %c0_33 = arith.constant 0 : index
    %c0_34 = arith.constant 0 : index
    %24 = vector.load %arg2[%c2, %c0_33, %c0_34] : memref<9x128x128xbf16, #tpu.memory_space<vmem>>, vector<1x128x128xbf16>
    %25 = vector.shape_cast %24 : vector<1x128x128xbf16> to vector<128x128xbf16>
    %cst_35 = arith.constant dense<0.000000e+00> : vector<64x128xf32>
    %26 = tpu.matmul %22, %25, %cst_35 {dimension_numbers = #tpu.dot_dimension_numbers<[1], [0], [0], [1], [0, 0, 1, 1], [], []>} : vector<64x128xbf16>, vector<128x128xbf16>, vector<64x128xf32> -> vector<64x128xf32>
    %27 = arith.addf %23, %26 : vector<64x128xf32>
    %c0_36 = arith.constant 0 : index
    %c0_37 = arith.constant 0 : index
    %28 = vector.load %arg5[%c0_36, %c0_37] : memref<64x128xf32, #tpu.memory_space<vmem>>, vector<64x128xf32>
    tpu.vector_store %arg5[%c0_36, %c0_37], %27 {strides = array<i32>} : memref<64x128xf32, #tpu.memory_space<vmem>>, vector<64x128xf32>,
    %c0_38 = arith.constant 0 : index
    %c2_39 = arith.constant 2 : index
    %c0_40 = arith.constant 0 : index
    %c0_41 = arith.constant 0 : index
    %c0_42 = arith.constant 0 : index
    %29 = vector.load %arg1[%c0_38, %c2_39, %c0_40, %c0_41, %c0_42] : memref<1x4x9x9x128xbf16, #tpu.memory_space<vmem>>, vector<1x1x8x8x128xbf16>
    %30 = vector.shape_cast %29 : vector<1x1x8x8x128xbf16> to vector<8x8x128xbf16>
    %31 = vector.shape_cast %30 : vector<8x8x128xbf16> to vector<64x128xbf16>
    %c0_43 = arith.constant 0 : index
    %c0_44 = arith.constant 0 : index
    %32 = vector.load %arg5[%c0_43, %c0_44] : memref<64x128xf32, #tpu.memory_space<vmem>>, vector<64x128xf32>
    %c3 = arith.constant 3 : index
    %c0_45 = arith.constant 0 : index
    %c0_46 = arith.constant 0 : index
    %33 = vector.load %arg2[%c3, %c0_45, %c0_46] : memref<9x128x128xbf16, #tpu.memory_space<vmem>>, vector<1x128x128xbf16>
    %34 = vector.shape_cast %33 : vector<1x128x128xbf16> to vector<128x128xbf16>
    %cst_47 = arith.constant dense<0.000000e+00> : vector<64x128xf32>
    %35 = tpu.matmul %31, %34, %cst_47 {dimension_numbers = #tpu.dot_dimension_numbers<[1], [0], [0], [1], [0, 0, 1, 1], [], []>} : vector<64x128xbf16>, vector<128x128xbf16>, vector<64x128xf32> -> vector<64x128xf32>
    %36 = arith.addf %32, %35 : vector<64x128xf32>
    %c0_48 = arith.constant 0 : index
    %c0_49 = arith.constant 0 : index
    %37 = vector.load %arg5[%c0_48, %c0_49] : memref<64x128xf32, #tpu.memory_space<vmem>>, vector<64x128xf32>
    tpu.vector_store %arg5[%c0_48, %c0_49], %36 {strides = array<i32>} : memref<64x128xf32, #tpu.memory_space<vmem>>, vector<64x128xf32>,
    %c0_50 = arith.constant 0 : index
    %c3_51 = arith.constant 3 : index
    %c0_52 = arith.constant 0 : index
    %c0_53 = arith.constant 0 : index
    %c0_54 = arith.constant 0 : index
    %38 = vector.load %arg1[%c0_50, %c3_51, %c0_52, %c0_53, %c0_54] : memref<1x4x9x9x128xbf16, #tpu.memory_space<vmem>>, vector<1x1x8x8x128xbf16>
    %39 = vector.shape_cast %38 : vector<1x1x8x8x128xbf16> to vector<8x8x128xbf16>
    %40 = vector.shape_cast %39 : vector<8x8x128xbf16> to vector<64x128xbf16>
    %c0_55 = arith.constant 0 : index
    %c0_56 = arith.constant 0 : index
    %41 = vector.load %arg5[%c0_55, %c0_56] : memref<64x128xf32, #tpu.memory_space<vmem>>, vector<64x128xf32>
    %c4 = arith.constant 4 : index
    %c0_57 = arith.constant 0 : index
    %c0_58 = arith.constant 0 : index
    %42 = vector.load %arg2[%c4, %c0_57, %c0_58] : memref<9x128x128xbf16, #tpu.memory_space<vmem>>, vector<1x128x128xbf16>
    %43 = vector.shape_cast %42 : vector<1x128x128xbf16> to vector<128x128xbf16>
    %cst_59 = arith.constant dense<0.000000e+00> : vector<64x128xf32>
    %44 = tpu.matmul %40, %43, %cst_59 {dimension_numbers = #tpu.dot_dimension_numbers<[1], [0], [0], [1], [0, 0, 1, 1], [], []>} : vector<64x128xbf16>, vector<128x128xbf16>, vector<64x128xf32> -> vector<64x128xf32>
    %45 = arith.addf %41, %44 : vector<64x128xf32>
    %c0_60 = arith.constant 0 : index
    %c0_61 = arith.constant 0 : index
    %46 = vector.load %arg5[%c0_60, %c0_61] : memref<64x128xf32, #tpu.memory_space<vmem>>, vector<64x128xf32>
    tpu.vector_store %arg5[%c0_60, %c0_61], %45 {strides = array<i32>} : memref<64x128xf32, #tpu.memory_space<vmem>>, vector<64x128xf32>,
    %c0_62 = arith.constant 0 : index
    %c2_63 = arith.constant 2 : index
    %c0_64 = arith.constant 0 : index
    %c1_65 = arith.constant 1 : index
    %c0_66 = arith.constant 0 : index
    %47 = vector.load %arg1[%c0_62, %c2_63, %c0_64, %c1_65, %c0_66] : memref<1x4x9x9x128xbf16, #tpu.memory_space<vmem>>, vector<1x1x8x8x128xbf16>
    %48 = vector.shape_cast %47 : vector<1x1x8x8x128xbf16> to vector<8x8x128xbf16>
    %49 = vector.shape_cast %48 : vector<8x8x128xbf16> to vector<64x128xbf16>
    %c0_67 = arith.constant 0 : index
    %c0_68 = arith.constant 0 : index
    %50 = vector.load %arg5[%c0_67, %c0_68] : memref<64x128xf32, #tpu.memory_space<vmem>>, vector<64x128xf32>
    %c5 = arith.constant 5 : index
    %c0_69 = arith.constant 0 : index
    %c0_70 = arith.constant 0 : index
    %51 = vector.load %arg2[%c5, %c0_69, %c0_70] : memref<9x128x128xbf16, #tpu.memory_space<vmem>>, vector<1x128x128xbf16>
    %52 = vector.shape_cast %51 : vector<1x128x128xbf16> to vector<128x128xbf16>
    %cst_71 = arith.constant dense<0.000000e+00> : vector<64x128xf32>
    %53 = tpu.matmul %49, %52, %cst_71 {dimension_numbers = #tpu.dot_dimension_numbers<[1], [0], [0], [1], [0, 0, 1, 1], [], []>} : vector<64x128xbf16>, vector<128x128xbf16>, vector<64x128xf32> -> vector<64x128xf32>
    %54 = arith.addf %50, %53 : vector<64x128xf32>
    %c0_72 = arith.constant 0 : index
    %c0_73 = arith.constant 0 : index
    %55 = vector.load %arg5[%c0_72, %c0_73] : memref<64x128xf32, #tpu.memory_space<vmem>>, vector<64x128xf32>
    tpu.vector_store %arg5[%c0_72, %c0_73], %54 {strides = array<i32>} : memref<64x128xf32, #tpu.memory_space<vmem>>, vector<64x128xf32>,
    %c0_74 = arith.constant 0 : index
    %c0_75 = arith.constant 0 : index
    %c1_76 = arith.constant 1 : index
    %c0_77 = arith.constant 0 : index
    %c0_78 = arith.constant 0 : index
    %56 = vector.load %arg1[%c0_74, %c0_75, %c1_76, %c0_77, %c0_78] : memref<1x4x9x9x128xbf16, #tpu.memory_space<vmem>>, vector<1x1x8x8x128xbf16>
    %57 = vector.shape_cast %56 : vector<1x1x8x8x128xbf16> to vector<8x8x128xbf16>
    %58 = vector.shape_cast %57 : vector<8x8x128xbf16> to vector<64x128xbf16>
    %c0_79 = arith.constant 0 : index
    %c0_80 = arith.constant 0 : index
    %59 = vector.load %arg5[%c0_79, %c0_80] : memref<64x128xf32, #tpu.memory_space<vmem>>, vector<64x128xf32>
    %c6 = arith.constant 6 : index
    %c0_81 = arith.constant 0 : index
    %c0_82 = arith.constant 0 : index
    %60 = vector.load %arg2[%c6, %c0_81, %c0_82] : memref<9x128x128xbf16, #tpu.memory_space<vmem>>, vector<1x128x128xbf16>
    %61 = vector.shape_cast %60 : vector<1x128x128xbf16> to vector<128x128xbf16>
    %cst_83 = arith.constant dense<0.000000e+00> : vector<64x128xf32>
    %62 = tpu.matmul %58, %61, %cst_83 {dimension_numbers = #tpu.dot_dimension_numbers<[1], [0], [0], [1], [0, 0, 1, 1], [], []>} : vector<64x128xbf16>, vector<128x128xbf16>, vector<64x128xf32> -> vector<64x128xf32>
    %63 = arith.addf %59, %62 : vector<64x128xf32>
    %c0_84 = arith.constant 0 : index
    %c0_85 = arith.constant 0 : index
    %64 = vector.load %arg5[%c0_84, %c0_85] : memref<64x128xf32, #tpu.memory_space<vmem>>, vector<64x128xf32>
    tpu.vector_store %arg5[%c0_84, %c0_85], %63 {strides = array<i32>} : memref<64x128xf32, #tpu.memory_space<vmem>>, vector<64x128xf32>,
    %c0_86 = arith.constant 0 : index
    %c1_87 = arith.constant 1 : index
    %c1_88 = arith.constant 1 : index
    %c0_89 = arith.constant 0 : index
    %c0_90 = arith.constant 0 : index
    %65 = vector.load %arg1[%c0_86, %c1_87, %c1_88, %c0_89, %c0_90] : memref<1x4x9x9x128xbf16, #tpu.memory_space<vmem>>, vector<1x1x8x8x128xbf16>
    %66 = vector.shape_cast %65 : vector<1x1x8x8x128xbf16> to vector<8x8x128xbf16>
    %67 = vector.shape_cast %66 : vector<8x8x128xbf16> to vector<64x128xbf16>
    %c0_91 = arith.constant 0 : index
    %c0_92 = arith.constant 0 : index
    %68 = vector.load %arg5[%c0_91, %c0_92] : memref<64x128xf32, #tpu.memory_space<vmem>>, vector<64x128xf32>
    %c7 = arith.constant 7 : index
    %c0_93 = arith.constant 0 : index
    %c0_94 = arith.constant 0 : index
    %69 = vector.load %arg2[%c7, %c0_93, %c0_94] : memref<9x128x128xbf16, #tpu.memory_space<vmem>>, vector<1x128x128xbf16>
    %70 = vector.shape_cast %69 : vector<1x128x128xbf16> to vector<128x128xbf16>
    %cst_95 = arith.constant dense<0.000000e+00> : vector<64x128xf32>
    %71 = tpu.matmul %67, %70, %cst_95 {dimension_numbers = #tpu.dot_dimension_numbers<[1], [0], [0], [1], [0, 0, 1, 1], [], []>} : vector<64x128xbf16>, vector<128x128xbf16>, vector<64x128xf32> -> vector<64x128xf32>
    %72 = arith.addf %68, %71 : vector<64x128xf32>
    %c0_96 = arith.constant 0 : index
    %c0_97 = arith.constant 0 : index
    %73 = vector.load %arg5[%c0_96, %c0_97] : memref<64x128xf32, #tpu.memory_space<vmem>>, vector<64x128xf32>
    tpu.vector_store %arg5[%c0_96, %c0_97], %72 {strides = array<i32>} : memref<64x128xf32, #tpu.memory_space<vmem>>, vector<64x128xf32>,
    %c0_98 = arith.constant 0 : index
    %c0_99 = arith.constant 0 : index
    %c1_100 = arith.constant 1 : index
    %c1_101 = arith.constant 1 : index
    %c0_102 = arith.constant 0 : index
    %74 = vector.load %arg1[%c0_98, %c0_99, %c1_100, %c1_101, %c0_102] : memref<1x4x9x9x128xbf16, #tpu.memory_space<vmem>>, vector<1x1x8x8x128xbf16>
    %75 = vector.shape_cast %74 : vector<1x1x8x8x128xbf16> to vector<8x8x128xbf16>
    %76 = vector.shape_cast %75 : vector<8x8x128xbf16> to vector<64x128xbf16>
    %c0_103 = arith.constant 0 : index
    %c0_104 = arith.constant 0 : index
    %77 = vector.load %arg5[%c0_103, %c0_104] : memref<64x128xf32, #tpu.memory_space<vmem>>, vector<64x128xf32>
    %c8 = arith.constant 8 : index
    %c0_105 = arith.constant 0 : index
    %c0_106 = arith.constant 0 : index
    %78 = vector.load %arg2[%c8, %c0_105, %c0_106] : memref<9x128x128xbf16, #tpu.memory_space<vmem>>, vector<1x128x128xbf16>
    %79 = vector.shape_cast %78 : vector<1x128x128xbf16> to vector<128x128xbf16>
    %cst_107 = arith.constant dense<0.000000e+00> : vector<64x128xf32>
    %80 = tpu.matmul %76, %79, %cst_107 {dimension_numbers = #tpu.dot_dimension_numbers<[1], [0], [0], [1], [0, 0, 1, 1], [], []>} : vector<64x128xbf16>, vector<128x128xbf16>, vector<64x128xf32> -> vector<64x128xf32>
    %81 = arith.addf %77, %80 : vector<64x128xf32>
    %c0_108 = arith.constant 0 : index
    %c0_109 = arith.constant 0 : index
    %82 = vector.load %arg5[%c0_108, %c0_109] : memref<64x128xf32, #tpu.memory_space<vmem>>, vector<64x128xf32>
    tpu.vector_store %arg5[%c0_108, %c0_109], %81 {strides = array<i32>} : memref<64x128xf32, #tpu.memory_space<vmem>>, vector<64x128xf32>,
    %c0_110 = arith.constant 0 : index
    %c0_111 = arith.constant 0 : index
    %83 = vector.load %arg5[%c0_110, %c0_111] : memref<64x128xf32, #tpu.memory_space<vmem>>, vector<64x128xf32>
    %84 = arith.truncf %83 : vector<64x128xf32> to vector<64x128xbf16>
    %c0_112 = arith.constant 0 : index
    %c0_113 = arith.constant 0 : index
    %c0_114 = arith.constant 0 : index
    %85 = vector.load %arg3[%c0_112, %c0_113, %c0_114] : memref<1x64x128xbf16, #tpu.memory_space<vmem>>, vector<1x64x128xbf16>
    %86 = vector.shape_cast %85 : vector<1x64x128xbf16> to vector<64x128xbf16>
    %87 = vector.shape_cast %84 : vector<64x128xbf16> to vector<1x64x128xbf16>
    tpu.vector_store %arg3[%c0_112, %c0_113, %c0_114], %87 {strides = array<i32>} : memref<1x64x128xbf16, #tpu.memory_space<vmem>>, vector<1x64x128xbf16>,
    %cst_115 = arith.constant dense<0.000000e+00> : vector<128xf32>
    %88 = vector.multi_reduction <add>, %83, %cst_115 [0] : vector<64x128xf32> to vector<128xf32>
    %89 = vector.shape_cast %88 : vector<128xf32> to vector<1x128xf32>
    %c0_116 = arith.constant 0 : index
    %c0_117 = arith.constant 0 : index
    %c0_118 = arith.constant 0 : index
    %90 = vector.load %arg4[%c0_116, %c0_117, %c0_118] : memref<1x8x128xf32, #tpu.memory_space<vmem>>, vector<1x1x128xf32>
    %91 = vector.shape_cast %90 : vector<1x1x128xf32> to vector<1x128xf32>
    %92 = vector.shape_cast %89 : vector<1x128xf32> to vector<1x1x128xf32>
    tpu.vector_store %arg4[%c0_116, %c0_117, %c0_118], %92 {strides = array<i32>} : memref<1x8x128xf32, #tpu.memory_space<vmem>>, vector<1x1x128xf32>,
    %93 = arith.mulf %83, %83 : vector<64x128xf32>
    %cst_119 = arith.constant dense<0.000000e+00> : vector<128xf32>
    %94 = vector.multi_reduction <add>, %93, %cst_119 [0] : vector<64x128xf32> to vector<128xf32>
    %95 = vector.shape_cast %94 : vector<128xf32> to vector<1x128xf32>
    %c0_120 = arith.constant 0 : index
    %c1_121 = arith.constant 1 : index
    %c0_122 = arith.constant 0 : index
    %96 = vector.load %arg4[%c0_120, %c1_121, %c0_122] : memref<1x8x128xf32, #tpu.memory_space<vmem>>, vector<1x1x128xf32>
    %97 = vector.shape_cast %96 : vector<1x1x128xf32> to vector<1x128xf32>
    %98 = vector.shape_cast %95 : vector<1x128xf32> to vector<1x1x128xf32>
    tpu.vector_store %arg4[%c0_120, %c1_121, %c0_122], %98 {strides = array<i32>} : memref<1x8x128xf32, #tpu.memory_space<vmem>>, vector<1x1x128xf32>,
    return
  }
  func.func @transform_0(%arg0: i32) -> (i32, i32, i32, i32, i32) {
    %c0_i32 = arith.constant 0 : i32
    %c0_i32_0 = arith.constant 0 : i32
    %c0_i32_1 = arith.constant 0 : i32
    %c0_i32_2 = arith.constant 0 : i32
    %c0_i32_3 = arith.constant 0 : i32
    return %arg0, %c0_i32, %c0_i32_0, %c0_i32_1, %c0_i32_2 : i32, i32, i32, i32, i32
  }
  func.func @transform_1(%arg0: i32) -> (i32, i32, i32) {
    %c0_i32 = arith.constant 0 : i32
    %c0_i32_0 = arith.constant 0 : i32
    %c0_i32_1 = arith.constant 0 : i32
    %c0_i32_2 = arith.constant 0 : i32
    return %c0_i32, %c0_i32_0, %c0_i32_1 : i32, i32, i32
  }
  func.func @transform_2(%arg0: i32) -> (i32, i32, i32) {
    %c0_i32 = arith.constant 0 : i32
    %c0_i32_0 = arith.constant 0 : i32
    %c0_i32_1 = arith.constant 0 : i32
    return %arg0, %c0_i32, %c0_i32_0 : i32, i32, i32
  }
  func.func @transform_3(%arg0: i32) -> (i32, i32, i32) {
    %c0_i32 = arith.constant 0 : i32
    %c0_i32_0 = arith.constant 0 : i32
    %c0_i32_1 = arith.constant 0 : i32
    return %arg0, %c0_i32, %c0_i32_0 : i32, i32, i32
  }
}

</mosaic_0001>

<bundles_post_ra>
// kernel: resblk_forward.4
= control target key start
LH: loop header
LB: loop body
LE: loop exit
PB: predicated region body
PF: predicated region fallthrough
CT: control target
= control target key end

     0   :  { %s1787_s1 = inlined_call_operand.vmem [shape: bf16[128,128], index: 1, kind: input, shape index: {}]   ;;  %s1788_s0 = inlined_call_operand.vmem [shape: bf16[512,128], index: 0, kind: input, shape index: {}]   ;;  %s1789_s2 = inlined_call_operand.vmem [shape: bf16[512,128], index: 2, kind: output, shape index: {0}]   ;;  %s1790_s3 = inlined_call_operand.vmem [shape: f32[1,8,128], index: 3, kind: output, shape index: {1}]  }
   0x1   :  { %v1041_v0 = vld [vmem:[%s1787_s1 + $0x38] sm:$0xff]  ;;  %v1040_v1 = vld [vmem:[%s1787_s1 + $0x30] sm:$0xff]  ;;  %v1039_v2 = vld [vmem:[%s1787_s1 + $0x28] sm:$0xff] }
   0x2   :  { %333 = vmatpush.bf16.msra.mxu0 %v1041_v0  ;;  %1233 = vmatpush.bf16.msra.mxu1 %v1041_v0  ;;  %v1038_v3 = vld [vmem:[%s1787_s1 + $0x20] sm:$0xff]  ;;  %v1037_v4 = vld [vmem:[%s1787_s1 + $0x18] sm:$0xff]  ;;  %v1036_v5 = vld [vmem:[%s1787_s1 + $0x10] sm:$0xff] }
   0x3   :  { %1234 = vmatpush.bf16.msra.mxu2 %v1041_v0  ;;  %1235 = vmatpush.bf16.msra.mxu3 %v1041_v0  ;;  %v1035_v6 = vld [vmem:[%s1787_s1 + $0x8] sm:$0xff]  ;;  %v1034_v7 = vld [vmem:[%s1787_s1] sm:$0xff]  ;;  %v1004_v13 = vld [vmem:[%s1788_s0 + $0x10] sm:$0xff] }
   0x4   :  { %v1002_v8 = vld [vmem:[%s1788_s0] sm:$0xff]  ;;  %v1003_v10 = vld [vmem:[%s1788_s0 + $0x8] sm:$0xff]  ;;  %v1012_v14 = vld [vmem:[%s1788_s0 + $0x50] sm:$0xff] }
   0x5   :  { %v1010_v9 = vld [vmem:[%s1788_s0 + $0x40] sm:$0xff]  ;;  %v1011_v11 = vld [vmem:[%s1788_s0 + $0x48] sm:$0xff]  ;;  %v1005_v16 = vld [vmem:[%s1788_s0 + $0x18] sm:$0xff] }
   0x6   :  { %334 = vmatpush.bf16.msra.mxu0 %v1040_v1  ;;  %1236 = vmatpush.bf16.msra.mxu1 %v1040_v1  ;;  %v1018_v12 = vld [vmem:[%s1788_s0 + $0x80] sm:$0xff]  ;;  %v1019_v15 = vld [vmem:[%s1788_s0 + $0x88] sm:$0xff]  ;;  %v1013_v17 = vld [vmem:[%s1788_s0 + $0x58] sm:$0xff] }
   0x7   :  { %1237 = vmatpush.bf16.msra.mxu2 %v1040_v1  ;;  %1238 = vmatpush.bf16.msra.mxu3 %v1040_v1  ;;  %v1020_v18 = vld [vmem:[%s1788_s0 + $0x90] sm:$0xff]  ;;  %v1026_v19 = vld [vmem:[%s1788_s0 + $0xc0] sm:$0xff]  ;;  %v1021_v22 = vld [vmem:[%s1788_s0 + $0x98] sm:$0xff] }
   0x8   :  { %v1006_v20 = vld [vmem:[%s1788_s0 + $0x20] sm:$0xff]  ;;  %v1027_v23 = vld [vmem:[%s1788_s0 + $0xc8] sm:$0xff]  ;;  %v1028_v27 = vld [vmem:[%s1788_s0 + $0xd0] sm:$0xff] }
   0x9   :  { %v1014_v21 = vld [vmem:[%s1788_s0 + $0x60] sm:$0xff]  ;;  %v1007_v24 = vld [vmem:[%s1788_s0 + $0x28] sm:$0xff]  ;;  %v1008_v28 = vld [vmem:[%s1788_s0 + $0x30] sm:$0xff] }
   0xa   :  { %335 = vmatpush.bf16.msra.mxu0 %v1039_v2  ;;  %1239 = vmatpush.bf16.msra.mxu1 %v1039_v2  ;;  %v1015_v25 = vld [vmem:[%s1788_s0 + $0x68] sm:$0xff]  ;;  %v1022_v26 = vld [vmem:[%s1788_s0 + $0xa0] sm:$0xff]  ;;  %v1016_v29 = vld [vmem:[%s1788_s0 + $0x70] sm:$0xff] }
   0xb   :  { %1240 = vmatpush.bf16.msra.mxu2 %v1039_v2  ;;  %1241 = vmatpush.bf16.msra.mxu3 %v1039_v2  ;;  %v1023_v30 = vld [vmem:[%s1788_s0 + $0xa8] sm:$0xff]  ;;  %v1029_v31 = vld [vmem:[%s1788_s0 + $0xd8] sm:$0xff]  ;;  %v1024_v34 = vld [vmem:[%s1788_s0 + $0xb0] sm:$0xff] }
   0xc   :  { %v1009_v32 = vld [vmem:[%s1788_s0 + $0x38] sm:$0xff]  ;;  %v1030_v35 = vld [vmem:[%s1788_s0 + $0xe0] sm:$0xff]  ;;  %v1031_v39 = vld [vmem:[%s1788_s0 + $0xe8] sm:$0xff] }
   0xd   :  { %v1017_v33 = vld [vmem:[%s1788_s0 + $0x78] sm:$0xff]  ;;  %v1032_v53 = vld [vmem:[%s1788_s0 + $0xf0] sm:$0xff] }
   0xe   :  { %336 = vmatpush.bf16.msra.mxu0 %v1038_v3  ;;  %1242 = vmatpush.bf16.msra.mxu1 %v1038_v3  ;;  %v1025_v38 = vld [vmem:[%s1788_s0 + $0xb8] sm:$0xff] }
   0xf   :  { %1243 = vmatpush.bf16.msra.mxu2 %v1038_v3  ;;  %1244 = vmatpush.bf16.msra.mxu3 %v1038_v3 }
  0x12   :  { %337 = vmatpush.bf16.msra.mxu0 %v1037_v4  ;;  %1245 = vmatpush.bf16.msra.mxu1 %v1037_v4 }
  0x13   :  { %1246 = vmatpush.bf16.msra.mxu2 %v1037_v4  ;;  %1247 = vmatpush.bf16.msra.mxu3 %v1037_v4 }
  0x16   :  { %338 = vmatpush.bf16.msra.mxu0 %v1036_v5  ;;  %1248 = vmatpush.bf16.msra.mxu1 %v1036_v5 }
  0x17   :  { %1249 = vmatpush.bf16.msra.mxu2 %v1036_v5  ;;  %1250 = vmatpush.bf16.msra.mxu3 %v1036_v5  ;;  %v1033_v5 = vld [vmem:[%s1788_s0 + $0xf8] sm:$0xff] }
  0x1a   :  { %339 = vmatpush.bf16.msra.mxu0 %v1035_v6  ;;  %1251 = vmatpush.bf16.msra.mxu1 %v1035_v6 }
  0x1b   :  { %1252 = vmatpush.bf16.msra.mxu2 %v1035_v6  ;;  %1253 = vmatpush.bf16.msra.mxu3 %v1035_v6 }
  0x1e   :  { %340 = vmatpush.bf16.msra.mxu0 %v1034_v7  ;;  %1254 = vmatpush.bf16.msra.mxu1 %v1034_v7 }
  0x1f   :  { %1255 = vmatpush.bf16.msra.mxu2 %v1034_v7  ;;  %1256 = vmatpush.bf16.msra.mxu3 %v1034_v7 }
  0x21   :  { %341 = vmatmul.bf16.vlgmr.msra.gmra.mxu0 %v1002_v8  ;;  %381 = vmatmul.bf16.vlgmr.msra.gmra.mxu1 %v1010_v9 }
  0x22   :  { %421 = vmatmul.bf16.vlgmr.msra.gmra.mxu2 %v1018_v12  ;;  %461 = vmatmul.bf16.vlgmr.msra.gmra.mxu3 %v1026_v19 }
  0x31   :  { %346 = vmatmul.bf16.gmra.mxu0 %v1003_v10  ;;  %386 = vmatmul.bf16.gmra.mxu1 %v1011_v11 }
  0x32   :  { %426 = vmatmul.bf16.gmra.mxu2 %v1019_v15  ;;  %466 = vmatmul.bf16.gmra.mxu3 %v1027_v23 }
  0x41   :  { %351 = vmatmul.bf16.gmra.mxu0 %v1004_v13  ;;  %391 = vmatmul.bf16.gmra.mxu1 %v1012_v14 }
  0x42   :  { %431 = vmatmul.bf16.gmra.mxu2 %v1020_v18  ;;  %471 = vmatmul.bf16.gmra.mxu3 %v1028_v27 }
  0x51   :  { %356 = vmatmul.bf16.gmra.mxu0 %v1005_v16  ;;  %396 = vmatmul.bf16.gmra.mxu1 %v1013_v17 }
  0x52   :  { %436 = vmatmul.bf16.gmra.mxu2 %v1021_v22  ;;  %476 = vmatmul.bf16.gmra.mxu3 %v1029_v31 }
  0x61   :  { %361 = vmatmul.bf16.gmra.mxu0 %v1006_v20  ;;  %401 = vmatmul.bf16.gmra.mxu1 %v1014_v21 }
  0x62   :  { %441 = vmatmul.bf16.gmra.mxu2 %v1022_v26  ;;  %481 = vmatmul.bf16.gmra.mxu3 %v1030_v35 }
  0x71   :  { %366 = vmatmul.bf16.gmra.mxu0 %v1007_v24  ;;  %406 = vmatmul.bf16.gmra.mxu1 %v1015_v25 }
  0x72   :  { %446 = vmatmul.bf16.gmra.mxu2 %v1023_v30  ;;  %486 = vmatmul.bf16.gmra.mxu3 %v1031_v39 }
  0x81   :  { %371 = vmatmul.bf16.gmra.mxu0 %v1008_v28  ;;  %411 = vmatmul.bf16.gmra.mxu1 %v1016_v29 }
  0x82   :  { %451 = vmatmul.bf16.gmra.mxu2 %v1024_v34  ;;  %491 = vmatmul.bf16.gmra.mxu3 %v1032_v53 }
  0x91   :  { %376 = vmatmul.bf16.gmra.mxu0 %v1009_v32  ;;  %416 = vmatmul.bf16.gmra.mxu1 %v1017_v33 }
  0x92   :  { %456 = vmatmul.bf16.gmra.mxu2 %v1025_v38  ;;  %496 = vmatmul.bf16.gmra.mxu3 %v1033_v5 }
  0x9e   :  { %v342_v36 = vpop.f32.mrf.mxu0  ;;  %v1385_v37 = vpop.f32.mrf.mxu1 }
  0x9f   :  { %v700_v40 = vmul.f32 %v342_v36, %v342_v36 }
  0xa5   :  { %v1412_v60 = vpop.f32.mrf.mxu2  ;;  %v1463_v20 = vpop.f32.mrf.mxu3 }
  0xa6   :  { %v344_v41 = vpop.f32.mrf.mxu0  ;;  %v1393_v42 = vpop.f32.mrf.mxu1 }
  0xa7   :  { %v1045_v43 = vpack.c.bf16 %v344_v41, %v342_v36  ;;  %v630_v44 = vadd.f32 %v344_v41, %v342_v36  ;;  %v701_v45 = vmul.f32 %v344_v41, %v344_v41  ;;  %v1085_v46 = vpack.c.bf16 %v1393_v42, %v1385_v37 }
  0xa9   :  { %1046 = vst [vmem:[%s1789_s2] sm:$0xff] %v1045_v43   ;;  %v764_v47 = vadd.f32 %v701_v45, %v700_v40 }
  0xaa   :  { %1209 = vst [vmem:[%s1789_s2 + $0x40] sm:$0xff] %v1085_v46  }
  0xad   :  { %v1424_v2 = vpop.f32.mrf.mxu2  ;;  %v1475_v24 = vpop.f32.mrf.mxu3 }
  0xae   :  { %v347_v48 = vpop.f32.mrf.mxu0  ;;  %v1403_v49 = vpop.f32.mrf.mxu1  ;;  %v1125_v3 = vpack.c.bf16 %v1424_v2, %v1412_v60  ;;  %v1165_v26 = vpack.c.bf16 %v1475_v24, %v1463_v20 }
  0xaf   :  { %v631_v50 = vadd.f32 %v630_v44, %v347_v48  ;;  %v702_v51 = vmul.f32 %v347_v48, %v347_v48 }
  0xb0   :  { %1217 = vst [vmem:[%s1789_s2 + $0x80] sm:$0xff] %v1125_v3  }
  0xb1   :  { %v765_v52 = vadd.f32 %v764_v47, %v702_v51  ;;  %1225 = vst [vmem:[%s1789_s2 + $0xc0] sm:$0xff] %v1165_v26  }
  0xb5   :  { %v1440_v10 = vpop.f32.mrf.mxu2  ;;  %v1493_v32 = vpop.f32.mrf.mxu3 }
  0xb6   :  { %v349_v54 = vpop.f32.mrf.mxu0  ;;  %v1408_v55 = vpop.f32.mrf.mxu1 }
  0xb7   :  { %v1050_v56 = vpack.c.bf16 %v349_v54, %v347_v48  ;;  %v632_v57 = vadd.f32 %v631_v50, %v349_v54  ;;  %v703_v58 = vmul.f32 %v349_v54, %v349_v54  ;;  %v1090_v59 = vpack.c.bf16 %v1408_v55, %v1403_v49 }
  0xb9   :  { %1202 = vst [vmem:[%s1789_s2 + $0x8] sm:$0xff] %v1050_v56   ;;  %v766_v61 = vadd.f32 %v765_v52, %v703_v58 }
  0xba   :  { %1210 = vst [vmem:[%s1789_s2 + $0x48] sm:$0xff] %v1090_v59  }
  0xbd   :  { %v1450_v13 = vpop.f32.mrf.mxu2  ;;  %v1505_v36 = vpop.f32.mrf.mxu3 }
  0xbe   :  { %v352_v62 = vpop.f32.mrf.mxu0  ;;  %v1420_v63 = vpop.f32.mrf.mxu1  ;;  %v1130_v14 = vpack.c.bf16 %v1450_v13, %v1440_v10  ;;  %v1170_v39 = vpack.c.bf16 %v1505_v36, %v1493_v32 }
  0xbf   :  { %v1422_v0 = vadd.f32 %v632_v57, %v352_v62  ;;  %v704_v1 = vmul.f32 %v352_v62, %v352_v62 }
  0xc0   :  { %1218 = vst [vmem:[%s1789_s2 + $0x88] sm:$0xff] %v1130_v14  }
  0xc1   :  { %v1428_v4 = vadd.f32 %v766_v61, %v704_v1  ;;  %1226 = vst [vmem:[%s1789_s2 + $0xc8] sm:$0xff] %v1170_v39  }
  0xc5   :  { %v1461_v19 = vpop.f32.mrf.mxu2  ;;  %v1523_v46 = vpop.f32.mrf.mxu3 }
  0xc6   :  { %v354_v6 = vpop.f32.mrf.mxu0  ;;  %v1436_v7 = vpop.f32.mrf.mxu1 }
  0xc7   :  { %v1055_v8 = vpack.c.bf16 %v354_v6, %v352_v62  ;;  %v1095_v9 = vpack.c.bf16 %v1436_v7, %v1420_v63  ;;  %v705_v52 = vmul.f32 %v354_v6, %v354_v6  ;;  %v634_v57 = vadd.f32 %v1422_v0, %v354_v6 }
  0xc9   :  { %1203 = vst [vmem:[%s1789_s2 + $0x10] sm:$0xff] %v1055_v8   ;;  %v768_v58 = vadd.f32 %v1428_v4, %v705_v52 }
  0xca   :  { %1211 = vst [vmem:[%s1789_s2 + $0x50] sm:$0xff] %v1095_v9  }
  0xcd   :  { %v1473_v23 = vpop.f32.mrf.mxu2  ;;  %v1535_v51 = vpop.f32.mrf.mxu3 }
  0xce   :  { %v357_v11 = vpop.f32.mrf.mxu0  ;;  %v1448_v12 = vpop.f32.mrf.mxu1  ;;  %v1135_v25 = vpack.c.bf16 %v1473_v23, %v1461_v19  ;;  %v1175_v54 = vpack.c.bf16 %v1535_v51, %v1523_v46 }
  0xcf   :  { %v706_v56 = vmul.f32 %v357_v11, %v357_v11  ;;  %v635_v61 = vadd.f32 %v634_v57, %v357_v11 }
  0xd0   :  { %1219 = vst [vmem:[%s1789_s2 + $0x90] sm:$0xff] %v1135_v25  }
  0xd1   :  { %1227 = vst [vmem:[%s1789_s2 + $0xd0] sm:$0xff] %v1175_v54   ;;  %v769_v62 = vadd.f32 %v768_v58, %v706_v56 }
  0xd5   :  { %v1491_v31 = vpop.f32.mrf.mxu2  ;;  %v1555_v0 = vpop.f32.mrf.mxu3 }
  0xd6   :  { %v359_v15 = vpop.f32.mrf.mxu0  ;;  %v1457_v16 = vpop.f32.mrf.mxu1 }
  0xd7   :  { %v1060_v17 = vpack.c.bf16 %v359_v15, %v357_v11  ;;  %v1100_v18 = vpack.c.bf16 %v1457_v16, %v1448_v12  ;;  %v707_v59 = vmul.f32 %v359_v15, %v359_v15  ;;  %v636_v8 = vadd.f32 %v635_v61, %v359_v15 }
  0xd9   :  { %1204 = vst [vmem:[%s1789_s2 + $0x18] sm:$0xff] %v1060_v17   ;;  %v770_v6 = vadd.f32 %v769_v62, %v707_v59 }
  0xda   :  { %1212 = vst [vmem:[%s1789_s2 + $0x58] sm:$0xff] %v1100_v18  }
  0xdd   :  { %v1503_v35 = vpop.f32.mrf.mxu2 }
  0xde   :  { %v362_v21 = vpop.f32.mrf.mxu0  ;;  %v1471_v22 = vpop.f32.mrf.mxu1  ;;  %v1140_v38 = vpack.c.bf16 %v1503_v35, %v1491_v31 }
  0xdf   :  { %v708_v1 = vmul.f32 %v362_v21, %v362_v21  ;;  %v637_v25 = vadd.f32 %v636_v8, %v362_v21 }
  0xe0   :  { %1220 = vst [vmem:[%s1789_s2 + $0x98] sm:$0xff] %v1140_v38  }
  0xe1   :  { %v771_v4 = vadd.f32 %v770_v6, %v708_v1 }
  0xe5   :  { %v1521_v45 = vpop.f32.mrf.mxu2 }
  0xe6   :  { %v364_v27 = vpop.f32.mrf.mxu0  ;;  %v1487_v28 = vpop.f32.mrf.mxu1 }
  0xe7   :  { %v1065_v29 = vpack.c.bf16 %v364_v27, %v362_v21  ;;  %v1105_v30 = vpack.c.bf16 %v1487_v28, %v1471_v22  ;;  %v709_v18 = vmul.f32 %v364_v27, %v364_v27  ;;  %v638_v15 = vadd.f32 %v637_v25, %v364_v27 }
  0xe9   :  { %1205 = vst [vmem:[%s1789_s2 + $0x20] sm:$0xff] %v1065_v29   ;;  %v772_v26 = vadd.f32 %v771_v4, %v709_v18 }
  0xea   :  { %1213 = vst [vmem:[%s1789_s2 + $0x60] sm:$0xff] %v1105_v30  }
  0xed   :  { %v1533_v50 = vpop.f32.mrf.mxu2 }
  0xee   :  { %v367_v33 = vpop.f32.mrf.mxu0  ;;  %v1501_v34 = vpop.f32.mrf.mxu1  ;;  %v1145_v53 = vpack.c.bf16 %v1533_v50, %v1521_v45 }
  0xef   :  { %v710_v11 = vmul.f32 %v367_v33, %v367_v33  ;;  %v639_v30 = vadd.f32 %v638_v15, %v367_v33 }
  0xf0   :  { %1221 = vst [vmem:[%s1789_s2 + $0xa0] sm:$0xff] %v1145_v53   ;;  %v1567_v53 = vpop.f32.mrf.mxu3 }
  0xf1   :  { %v773_v38 = vadd.f32 %v772_v26, %v710_v11  ;;  %v1180_v27 = vpack.c.bf16 %v1567_v53, %v1555_v0  ;;  %v717_v26 = vmul.f32 %v1393_v42, %v1393_v42 }
  0xf3   :  { %1228 = vst [vmem:[%s1789_s2 + $0xd8] sm:$0xff] %v1180_v27  }
  0xf5   :  { %v1553_v17 = vpop.f32.mrf.mxu2 }
  0xf6   :  { %v369_v40 = vpop.f32.mrf.mxu0  ;;  %v1517_v41 = vpop.f32.mrf.mxu1 }
  0xf7   :  { %v1070_v43 = vpack.c.bf16 %v369_v40, %v367_v33  ;;  %v1110_v44 = vpack.c.bf16 %v1517_v41, %v1501_v34  ;;  %v711_v29 = vmul.f32 %v369_v40, %v369_v40  ;;  %v640_v21 = vadd.f32 %v639_v30, %v369_v40 }
  0xf8   :  { %v1585_v4 = vpop.f32.mrf.mxu3 }
  0xf9   :  { %1206 = vst [vmem:[%s1789_s2 + $0x28] sm:$0xff] %v1070_v43   ;;  %v774_v54 = vadd.f32 %v773_v38, %v711_v29  ;;  %v718_v38 = vmul.f32 %v1403_v49, %v1403_v49 }
  0xfa   :  { %1214 = vst [vmem:[%s1789_s2 + $0x68] sm:$0xff] %v1110_v44  }
  0xfd   :  { %v1565_v52 = vpop.f32.mrf.mxu2 }
  0xfe   :  { %v372_v47 = vpop.f32.mrf.mxu0  ;;  %v1531_v48 = vpop.f32.mrf.mxu1  ;;  %v1150_v57 = vpack.c.bf16 %v1565_v52, %v1553_v17 }
  0xff   :  { %v712_v39 = vmul.f32 %v372_v47, %v372_v47  ;;  %v641_v58 = vadd.f32 %v640_v21, %v372_v47 }
 0x100   :  { %1222 = vst [vmem:[%s1789_s2 + $0xa8] sm:$0xff] %v1150_v57   ;;  %v1607_v57 = vpop.f32.mrf.mxu3 }
 0x101   :  { %v775_v33 = vadd.f32 %v774_v54, %v712_v39  ;;  %v1185_v27 = vpack.c.bf16 %v1607_v57, %v1585_v4 }
 0x103   :  { %1229 = vst [vmem:[%s1789_s2 + $0xe0] sm:$0xff] %v1185_v27  }
 0x105   :  { %v1583_v25 = vpop.f32.mrf.mxu2 }
 0x106   :  { %v374_v3 = vpop.f32.mrf.mxu0  ;;  %v1549_v5 = vpop.f32.mrf.mxu1 }
 0x107   :  { %v1075_v9 = vpack.c.bf16 %v374_v3, %v372_v47  ;;  %v1115_v14 = vpack.c.bf16 %v1549_v5, %v1531_v48  ;;  %v713_v56 = vmul.f32 %v374_v3, %v374_v3  ;;  %v642_v40 = vadd.f32 %v641_v58, %v374_v3 }
 0x108   :  { %v716_v3 = vmul.f32 %v1385_v37, %v1385_v37  ;;  %v729_v27 = vmul.f32 %v1549_v5, %v1549_v5 }
 0x109   :  { %1207 = vst [vmem:[%s1789_s2 + $0x30] sm:$0xff] %v1075_v9   ;;  %v776_v61 = vadd.f32 %v775_v33, %v713_v56 }
 0x10a   :  { %1215 = vst [vmem:[%s1789_s2 + $0x70] sm:$0xff] %v1115_v14  }
 0x10d   :  { %v1605_v56 = vpop.f32.mrf.mxu2 }
 0x10e   :  { %v377_v43 = vpop.f32.mrf.mxu0  ;;  %v1563_v44 = vpop.f32.mrf.mxu1 }
 0x10f   :  { %v714_v59 = vmul.f32 %v377_v43, %v377_v43  ;;  %v643_v62 = vadd.f32 %v642_v40, %v377_v43 }
 0x111   :  { %v777_v1 = vadd.f32 %v776_v61, %v714_v59  ;;  %v722_v61 = vmul.f32 %v1448_v12, %v1448_v12 }
 0x116   :  { %v379_v8 = vpop.f32.mrf.mxu0  ;;  %v1579_v9 = vpop.f32.mrf.mxu1 }
 0x117   :  { %v1080_v14 = vpack.c.bf16 %v379_v8, %v377_v43  ;;  %v644_v6 = vadd.f32 %v643_v62, %v379_v8  ;;  %v715_v47 = vmul.f32 %v379_v8, %v379_v8  ;;  %v1120_v18 = vpack.c.bf16 %v1579_v9, %v1563_v44 }
 0x119   :  { %1208 = vst [vmem:[%s1789_s2 + $0x38] sm:$0xff] %v1080_v14   ;;  %v645_v11 = vadd.f32 %v644_v6, %v1385_v37  ;;  %v778_v15 = vadd.f32 %v777_v1, %v715_v47  ;;  %v719_v37 = vmul.f32 %v1408_v55, %v1408_v55  ;;  %v723_v1 = vmul.f32 %v1457_v16, %v1457_v16  ;;  %v1631_v6 = vpop.f32.mrf.mxu2 }
 0x11a   :  { %1216 = vst [vmem:[%s1789_s2 + $0x78] sm:$0xff] %v1120_v18   ;;  %v724_v47 = vmul.f32 %v1471_v22, %v1471_v22 }
 0x11b   :  { %v646_v29 = vadd.f32 %v645_v11, %v1393_v42  ;;  %v779_v30 = vadd.f32 %v778_v15, %v716_v3  ;;  %v1155_v42 = vpack.c.bf16 %v1605_v56, %v1583_v25  ;;  %v725_v11 = vmul.f32 %v1487_v28, %v1487_v28 }
 0x11d   :  { %v647_v39 = vadd.f32 %v646_v29, %v1403_v49  ;;  %v780_v43 = vadd.f32 %v779_v30, %v717_v26  ;;  %v720_v49 = vmul.f32 %v1420_v63, %v1420_v63  ;;  %1223 = vst [vmem:[%s1789_s2 + $0xb0] sm:$0xff] %v1155_v42   ;;  %v727_v30 = vmul.f32 %v1517_v41, %v1517_v41 }
 0x11f   :  { %v648_v21 = vadd.f32 %v647_v39, %v1408_v55  ;;  %v781_v54 = vadd.f32 %v780_v43, %v718_v38  ;;  %v721_v55 = vmul.f32 %v1436_v7, %v1436_v7 }
 0x121   :  { %v649_v58 = vadd.f32 %v648_v21, %v1420_v63  ;;  %v782_v33 = vadd.f32 %v781_v54, %v719_v37 }
 0x123   :  { %v650_v59 = vadd.f32 %v649_v58, %v1436_v7  ;;  %v783_v40 = vadd.f32 %v782_v33, %v720_v49  ;;  %v1633_v7 = vpop.f32.mrf.mxu3 }
 0x125   :  { %v784_v62 = vadd.f32 %v783_v40, %v721_v55  ;;  %v651_v63 = vadd.f32 %v650_v59, %v1448_v12  ;;  %v731_v59 = vmul.f32 %v1579_v9, %v1579_v9 }
 0x127   :  { %v652_v8 = vadd.f32 %v651_v63, %v1457_v16  ;;  %v785_v14 = vadd.f32 %v784_v62, %v722_v61  ;;  %v726_v16 = vmul.f32 %v1501_v34, %v1501_v34  ;;  %v733_v63 = vmul.f32 %v1424_v2, %v1424_v2 }
 0x129   :  { %v653_v18 = vadd.f32 %v652_v8, %v1471_v22  ;;  %v786_v3 = vadd.f32 %v785_v14, %v723_v1  ;;  %v1647_v22 = vpop.f32.mrf.mxu2  ;;  %v734_v8 = vmul.f32 %v1440_v10, %v1440_v10 }
 0x12b   :  { %v654_v12 = vadd.f32 %v653_v18, %v1487_v28  ;;  %v787_v15 = vadd.f32 %v786_v3, %v724_v47  ;;  %v1649_v43 = vpop.f32.mrf.mxu3  ;;  %v1160_v28 = vpack.c.bf16 %v1647_v22, %v1631_v6  ;;  %v735_v47 = vmul.f32 %v1450_v13, %v1450_v13 }
 0x12c   :  { %v1190_v37 = vpack.c.bf16 %v1649_v43, %v1633_v7 }
 0x12d   :  { %v655_v26 = vadd.f32 %v654_v12, %v1501_v34  ;;  %v788_v29 = vadd.f32 %v787_v15, %v725_v11  ;;  %v728_v34 = vmul.f32 %v1531_v48, %v1531_v48  ;;  %1224 = vst [vmem:[%s1789_s2 + $0xb8] sm:$0xff] %v1160_v28  }
 0x12e   :  { %1230 = vst [vmem:[%s1789_s2 + $0xe8] sm:$0xff] %v1190_v37   ;;  %v740_v37 = vmul.f32 %v1521_v45, %v1521_v45 }
 0x12f   :  { %v656_v38 = vadd.f32 %v655_v26, %v1517_v41  ;;  %v789_v39 = vadd.f32 %v788_v29, %v726_v16  ;;  %v738_v26 = vmul.f32 %v1491_v31, %v1491_v31 }
 0x131   :  { %v657_v21 = vadd.f32 %v656_v38, %v1531_v48  ;;  %v790_v54 = vadd.f32 %v789_v39, %v727_v30  ;;  %v730_v48 = vmul.f32 %v1563_v44, %v1563_v44 }
 0x133   :  { %v791_v41 = vadd.f32 %v790_v54, %v728_v34  ;;  %v658_v42 = vadd.f32 %v657_v21, %v1549_v5  ;;  %v1673_v40 = vpop.f32.mrf.mxu3  ;;  %v732_v5 = vmul.f32 %v1412_v60, %v1412_v60  ;;  %v741_v34 = vmul.f32 %v1533_v50, %v1533_v50 }
 0x135   :  { %v792_v49 = vadd.f32 %v791_v41, %v729_v27  ;;  %v659_v58 = vadd.f32 %v658_v42, %v1563_v44  ;;  %v742_v41 = vmul.f32 %v1553_v17, %v1553_v17 }
 0x137   :  { %v793_v33 = vadd.f32 %v792_v49, %v730_v48  ;;  %v660_v55 = vadd.f32 %v659_v58, %v1579_v9  ;;  %v743_v49 = vmul.f32 %v1565_v52, %v1565_v52 }
 0x139   :  { %v661_v61 = vadd.f32 %v660_v55, %v1412_v60  ;;  %v794_v62 = vadd.f32 %v793_v33, %v731_v59 }
 0x13b   :  { %v662_v1 = vadd.f32 %v661_v61, %v1424_v2  ;;  %v795_v44 = vadd.f32 %v794_v62, %v732_v5  ;;  %v1687_v60 = vpop.f32.mrf.mxu3  ;;  %v736_v2 = vmul.f32 %v1461_v19, %v1461_v19  ;;  %v746_v62 = vmul.f32 %v1631_v6, %v1631_v6 }
 0x13c   :  { %v1195_v11 = vpack.c.bf16 %v1687_v60, %v1673_v40 }
 0x13d   :  { %v663_v14 = vadd.f32 %v662_v1, %v1440_v10  ;;  %v796_v9 = vadd.f32 %v795_v44, %v733_v63  ;;  %v737_v10 = vmul.f32 %v1473_v23, %v1473_v23  ;;  %v748_v44 = vmul.f32 %v1463_v20, %v1463_v20 }
 0x13e   :  { %1231 = vst [vmem:[%s1789_s2 + $0xf0] sm:$0xff] %v1195_v11  }
 0x13f   :  { %v664_v18 = vadd.f32 %v663_v14, %v1450_v13  ;;  %v797_v3 = vadd.f32 %v796_v9, %v734_v8 }
 0x141   :  { %v665_v12 = vadd.f32 %v664_v18, %v1461_v19  ;;  %v798_v15 = vadd.f32 %v797_v3, %v735_v47  ;;  %v739_v19 = vmul.f32 %v1503_v35, %v1503_v35 }
 0x143   :  { %v666_v13 = vadd.f32 %v665_v12, %v1473_v23  ;;  %v799_v16 = vadd.f32 %v798_v15, %v736_v2  ;;  %v1706_v28 = vpop.f32.mrf.mxu3 }
 0x145   :  { %v800_v29 = vadd.f32 %v799_v16, %v737_v10  ;;  %v667_v30 = vadd.f32 %v666_v13, %v1491_v31 }
 0x147   :  { %v668_v38 = vadd.f32 %v667_v30, %v1503_v35  ;;  %v801_v39 = vadd.f32 %v800_v29, %v738_v26 }
 0x149   :  { %v669_v23 = vadd.f32 %v668_v38, %v1521_v45  ;;  %v802_v21 = vadd.f32 %v801_v39, %v739_v19 }
 0x14b   :  { %v670_v54 = vadd.f32 %v669_v23, %v1533_v50  ;;  %v803_v31 = vadd.f32 %v802_v21, %v740_v37  ;;  %v499_v45 = vpop.f32.mrf.mxu3  ;;  %v744_v50 = vmul.f32 %v1583_v25, %v1583_v25 }
 0x14c   :  { %v1200_v48 = vpack.c.bf16 %v499_v45, %v1706_v28 }
 0x14d   :  { %v671_v35 = vadd.f32 %v670_v54, %v1553_v17  ;;  %v804_v42 = vadd.f32 %v803_v31, %v741_v34  ;;  %v759_v34 = vmul.f32 %v1649_v43, %v1649_v43 }
 0x14e   :  { %1232 = vst [vmem:[%s1789_s2 + $0xf8] sm:$0xff] %v1200_v48   ;;  %v763_v48 = vmul.f32 %v499_v45, %v499_v45 }
 0x14f   :  { %v672_v27 = vadd.f32 %v671_v35, %v1565_v52  ;;  %v805_v58 = vadd.f32 %v804_v42, %v742_v41  ;;  %v745_v52 = vmul.f32 %v1605_v56, %v1605_v56  ;;  %v760_v41 = vmul.f32 %v1673_v40, %v1673_v40 }
 0x150   :  { %v761_v42 = vmul.f32 %v1687_v60, %v1687_v60 }
 0x151   :  { %v806_v33 = vadd.f32 %v805_v58, %v743_v49  ;;  %v673_v55 = vadd.f32 %v672_v27, %v1583_v25  ;;  %v747_v25 = vmul.f32 %v1647_v22, %v1647_v22  ;;  %v762_v49 = vmul.f32 %v1706_v28, %v1706_v28 }
 0x153   :  { %v807_v17 = vadd.f32 %v806_v33, %v744_v50  ;;  %v674_v59 = vadd.f32 %v673_v55, %v1605_v56  ;;  %v749_v56 = vmul.f32 %v1475_v24, %v1475_v24 }
 0x155   :  { %v808_v5 = vadd.f32 %v807_v17, %v745_v52  ;;  %v675_v61 = vadd.f32 %v674_v59, %v1631_v6  ;;  %v750_v6 = vmul.f32 %v1493_v32, %v1493_v32 }
 0x157   :  { %v809_v63 = vadd.f32 %v808_v5, %v746_v62  ;;  %v676_v1 = vadd.f32 %v675_v61, %v1647_v22  ;;  %v751_v22 = vmul.f32 %v1505_v36, %v1505_v36 }
 0x159   :  { %v677_v8 = vadd.f32 %v676_v1, %v1463_v20  ;;  %v810_v14 = vadd.f32 %v809_v63, %v747_v25  ;;  %v752_v20 = vmul.f32 %v1523_v46, %v1523_v46 }
 0x15b   :  { %v678_v9 = vadd.f32 %v677_v8, %v1475_v24  ;;  %v811_v47 = vadd.f32 %v810_v14, %v748_v44  ;;  %v753_v24 = vmul.f32 %v1535_v51, %v1535_v51 }
 0x15d   :  { %v679_v18 = vadd.f32 %v678_v9, %v1493_v32  ;;  %v812_v3 = vadd.f32 %v811_v47, %v749_v56  ;;  %v754_v32 = vmul.f32 %v1555_v0, %v1555_v0 }
 0x15f   :  { %v680_v11 = vadd.f32 %v679_v18, %v1505_v36  ;;  %v813_v2 = vadd.f32 %v812_v3, %v750_v6  ;;  %v755_v36 = vmul.f32 %v1567_v53, %v1567_v53 }
 0x161   :  { %v681_v12 = vadd.f32 %v680_v11, %v1523_v46  ;;  %v814_v15 = vadd.f32 %v813_v2, %v751_v22  ;;  %v756_v46 = vmul.f32 %v1585_v4, %v1585_v4 }
 0x163   :  { %v682_v10 = vadd.f32 %v681_v12, %v1535_v51  ;;  %v815_v13 = vadd.f32 %v814_v15, %v752_v20  ;;  %v757_v51 = vmul.f32 %v1607_v57, %v1607_v57 }
 0x165   :  { %v816_v16 = vadd.f32 %v815_v13, %v753_v24  ;;  %v683_v26 = vadd.f32 %v682_v10, %v1555_v0  ;;  %v758_v0 = vmul.f32 %v1633_v7, %v1633_v7 }
 0x167   :  { %v684_v29 = vadd.f32 %v683_v26, %v1567_v53  ;;  %v817_v30 = vadd.f32 %v816_v16, %v754_v32 }
 0x169   :  { %v685_v19 = vadd.f32 %v684_v29, %v1585_v4  ;;  %v818_v38 = vadd.f32 %v817_v30, %v755_v36 }
 0x16b   :  { %v686_v39 = vadd.f32 %v685_v19, %v1607_v57  ;;  %v819_v37 = vadd.f32 %v818_v38, %v756_v46 }
 0x16d   :  { %v687_v23 = vadd.f32 %v686_v39, %v1633_v7  ;;  %v820_v21 = vadd.f32 %v819_v37, %v757_v51 }
 0x16f   :  { %v688_v53 = vadd.f32 %v687_v23, %v1649_v43  ;;  %v821_v54 = vadd.f32 %v820_v21, %v758_v0 }
 0x171   :  { %v822_v4 = vadd.f32 %v821_v54, %v759_v34  ;;  %v689_v31 = vadd.f32 %v688_v53, %v1673_v40 }
 0x173   :  { %v823_v57 = vadd.f32 %v822_v4, %v760_v41  ;;  %v690_v35 = vadd.f32 %v689_v31, %v1687_v60 }
 0x175   :  { %v824_v7 = vadd.f32 %v823_v57, %v761_v42  ;;  %v691_v27 = vadd.f32 %v690_v35, %v1706_v28 }
 0x177   :  { %v825_v43 = vadd.f32 %v824_v7, %v762_v49  ;;  %v692_v58 = vadd.f32 %v691_v27, %v499_v45 }
 0x179   :  { %v693_v33 = vrot.slane %v692_v58, 4  ;;  %v826_v55 = vadd.f32 %v825_v43, %v763_v48 }
 0x17b   :  { %v694_v50 = vadd.f32 %v693_v33, %v692_v58  ;;  %v827_v17 = vrot.slane %v826_v55, 4 }
 0x17d   :  { %v695_v40 = vrot.slane %v694_v50, 2  ;;  %v828_v59 = vadd.f32 %v827_v17, %v826_v55 }
 0x17f   :  { %v696_v52 = vadd.f32 %v695_v40, %v694_v50  ;;  %v829_v5 = vrot.slane %v828_v59, 2 }
 0x181   :  { %v697_v61 = vrot.slane %v696_v52, 1  ;;  %v830_v62 = vadd.f32 %v829_v5, %v828_v59 }
 0x183   :  { %v698_v60 = vadd.f32 %v697_v61, %v696_v52  ;;  %v831_v63 = vrot.slane %v830_v62, 1 }
 0x185   :  { %699 = vst [vmem:[%s1790_s3] sm:$0x1] %v698_v60  ;;  %v832_v28 = vadd.f32 %v831_v63, %v830_v62 }
 0x187   :  { %833 = vst [vmem:[%s1790_s3 + $0x1] sm:$0x1] %v832_v28 }

// kernel: resblk_forward.7
= control target key start
LH: loop header
LB: loop body
LE: loop exit
PB: predicated region body
PF: predicated region fallthrough
CT: control target
= control target key end

     0   :  { %s518_s0 = inlined_call_operand.vmem [shape: bf16[128,128], index: 0, kind: input, shape index: {}]   ;;  %s519_s1 = inlined_call_operand.vmem [shape: bf16[128,128], index: 1, kind: input, shape index: {}]   ;;  %s520_s2 = inlined_call_operand.vmem [shape: f32[1,128], index: 2, kind: input, shape index: {}]   ;;  %s521_s3 = inlined_call_operand.vmem [shape: f32[1,128], index: 3, kind: input, shape index: {}]   ;;  %s522_s4 = inlined_call_operand.vmem [shape: f32[1,128], index: 4, kind: input, shape index: {}]   ;;  %s523_s5 = inlined_call_operand.vmem [shape: f32[1,128], index: 5, kind: input, shape index: {}]   ;;  %s524_s6 = inlined_call_operand.hbm [shape: f32[128,128], index: 6, kind: output, shape index: {}]  }
   0x1   :  { %v235_v0 = vld [vmem:[%s518_s0] sm:$0xff]   ;;  %v298_v12 = vld [vmem:[%s518_s0 + $0x8] sm:$0xff]   ;;  %v299_v18 = vld [vmem:[%s518_s0 + $0x10] sm:$0xff]  }
   0x2   :  { %v389_v1 = vld [vmem:[%s520_s2] ss:$0 sm:$0xff]  ;;  %v236_v2 = vunpack.c.l.bf16 %v235_v0  ;;  %v237_v5 = vunpack.c.h.bf16 %v235_v0  ;;  %v305_v13 = vld [vmem:[%s519_s1 + $0x8] sm:$0xff]   ;;  %v240_v16 = vunpack.c.l.bf16 %v298_v12  ;;  %v306_v19 = vld [vmem:[%s519_s1 + $0x10] sm:$0xff]   ;;  %v241_v22 = vunpack.c.h.bf16 %v298_v12 }
   0x3   :  { %v394_v3 = vld [vmem:[%s521_s3] ss:$0 sm:$0xff]  ;;  %v272_v17 = vunpack.c.l.bf16 %v305_v13  ;;  %v273_v23 = vunpack.c.h.bf16 %v305_v13  ;;  %v244_v30 = vunpack.c.l.bf16 %v299_v18  ;;  %v276_v31 = vunpack.c.l.bf16 %v306_v19 }
   0x4   :  { %v267_v4 = vld [vmem:[%s519_s1] sm:$0xff]   ;;  %v60_v9 = vmul.f32 %v389_v1, %v236_v2  ;;  %v61_v11 = vmul.f32 %v389_v1, %v237_v5  ;;  %v62_v26 = vmul.f32 %v389_v1, %v240_v16  ;;  %v63_v28 = vmul.f32 %v389_v1, %v241_v22 }
   0x5   :  { %v268_v6 = vunpack.c.l.bf16 %v267_v4  ;;  %v402_v7 = vld [vmem:[%s522_s4] ss:$0 sm:$0xff]  ;;  %v269_v8 = vunpack.c.h.bf16 %v267_v4 }
   0x6   :  { %v408_v10 = vld [vmem:[%s523_s5] ss:$0 sm:$0xff]  ;;  %v80_v20 = vadd.f32 %v394_v3, %v60_v9  ;;  %v81_v21 = vadd.f32 %v394_v3, %v61_v11  ;;  %v134_v27 = vmul.f32 %v402_v7, %v272_v17  ;;  %v135_v29 = vmul.f32 %v402_v7, %v273_v23 }
   0x7   :  { %v132_v14 = vmul.f32 %v402_v7, %v268_v6  ;;  %v133_v15 = vmul.f32 %v402_v7, %v269_v8  ;;  %v82_v34 = vadd.f32 %v394_v3, %v62_v26 }
   0x8   :  { %v154_v35 = vadd.f32 %v408_v10, %v134_v27 }
   0x9   :  { %v152_v24 = vadd.f32 %v408_v10, %v132_v14  ;;  %v153_v25 = vadd.f32 %v408_v10, %v133_v15 }
   0xb   :  { %v168_v32 = vadd.f32 %v152_v24, %v80_v20  ;;  %v169_v33 = vadd.f32 %v153_v25, %v81_v21 }
   0xc   :  { %11 = vsyncpa [#allocation3], 0  ;;  %v83_v36 = vadd.f32 %v394_v3, %v63_v28  ;;  %v155_v37 = vadd.f32 %v408_v10, %v135_v29  ;;  %v64_v38 = vmul.f32 %v389_v1, %v244_v30  ;;  %v136_v39 = vmul.f32 %v402_v7, %v276_v31  ;;  %v300_v40 = vld [vmem:[%s518_s0 + $0x18] sm:$0xff]   ;;  %v301_v54 = vld [vmem:[%s518_s0 + $0x20] sm:$0xff]   ;;  %s222_s9 = sshll.u32 %s524_s6, 4  ;;  %s346_s10 = smov 128   ;;  %s223_s9 = int_to_ptr.hbm [resolvable:$true] %s222_s9 }
   0xd   :  { %v307_v41 = vld [vmem:[%s519_s1 + $0x18] sm:$0xff]   ;;  %v184_v42 = vmax.f32 %v168_v32, 0.0  ;;  %v185_v43 = vmax.f32 %v169_v33, 0.0  ;;  %v170_v44 = vadd.f32 %v154_v35, %v82_v34  ;;  %v245_v45 = vunpack.c.h.bf16 %v299_v18  ;;  %v308_v59 = vld [vmem:[%s519_s1 + $0x20] sm:$0xff]   ;;  %v302_v12 = vld [vmem:[%s518_s0 + $0x28] sm:$0xff]   ;;  %s347_s4 = smov 8  }
   0xe   :  { %v171_v46 = vadd.f32 %v155_v37, %v83_v36  ;;  %v84_v47 = vadd.f32 %v394_v3, %v64_v38  ;;  %v156_v48 = vadd.f32 %v408_v10, %v136_v39  ;;  %v277_v49 = vunpack.c.h.bf16 %v306_v19  ;;  %v309_v21 = vld [vmem:[%s519_s1 + $0x28] sm:$0xff]   ;;  %v303_v30 = vld [vmem:[%s518_s0 + $0x30] sm:$0xff]  }
   0xf   :  { %200 = vst [vmem:[#allocation2] sm:$0xff] %v184_v42  ;;  %v186_v50 = vmax.f32 %v170_v44, 0.0  ;;  %v65_v51 = vmul.f32 %v389_v1, %v245_v45  ;;  %v248_v52 = vunpack.c.l.bf16 %v300_v40  ;;  %v280_v53 = vunpack.c.l.bf16 %v307_v41  ;;  %v310_v35 = vld [vmem:[%s519_s1 + $0x30] sm:$0xff]  }
  0x10   :  { %201 = vst [vmem:[#allocation2 + $0x8] sm:$0xff] %v185_v43  ;;  %v187_v55 = vmax.f32 %v171_v46, 0.0  ;;  %v172_v56 = vadd.f32 %v156_v48, %v84_v47  ;;  %v137_v57 = vmul.f32 %v402_v7, %v277_v49  ;;  %v249_v58 = vunpack.c.h.bf16 %v300_v40  ;;  %v304_v48 = vld [vmem:[%s518_s0 + $0x38] sm:$0xff]   ;;  %s345_s0 = smov [#allocation2]  }
  0x11   :  { %202 = vst [vmem:[#allocation2 + $0x10] sm:$0xff] %v186_v50  ;;  %v85_v60 = vadd.f32 %v394_v3, %v65_v51  ;;  %v66_v61 = vmul.f32 %v389_v1, %v248_v52  ;;  %v138_v62 = vmul.f32 %v402_v7, %v280_v53  ;;  %v281_v63 = vunpack.c.h.bf16 %v307_v41  ;;  %v311_v53 = vld [vmem:[%s519_s1 + $0x38] sm:$0xff]   ;;  %s220_s1 = sshll.u32 %s345_s0, 4  ;;  %s221_s1 = int_to_ptr.vmem [resolvable:$true] %s220_s1 }
  0x12   :  { %203 = vst [vmem:[#allocation2 + $0x18] sm:$0xff] %v187_v55  ;;  %v188_v0 = vmax.f32 %v172_v56, 0.0  ;;  %v157_v2 = vadd.f32 %v408_v10, %v137_v57  ;;  %v67_v4 = vmul.f32 %v389_v1, %v249_v58  ;;  %v252_v5 = vunpack.c.l.bf16 %v301_v54 }
  0x13   :  { %v86_v6 = vadd.f32 %v394_v3, %v66_v61  ;;  %v158_v8 = vadd.f32 %v408_v10, %v138_v62  ;;  %v139_v9 = vmul.f32 %v402_v7, %v281_v63  ;;  %v284_v11 = vunpack.c.l.bf16 %v308_v59 }
  0x14   :  { %204 = vst [vmem:[#allocation2 + $0x20] sm:$0xff] %v188_v0  ;;  %v173_v13 = vadd.f32 %v157_v2, %v85_v60  ;;  %v87_v14 = vadd.f32 %v394_v3, %v67_v4  ;;  %v68_v15 = vmul.f32 %v389_v1, %v252_v5  ;;  %v253_v16 = vunpack.c.h.bf16 %v301_v54 }
  0x15   :  { %v174_v17 = vadd.f32 %v158_v8, %v86_v6  ;;  %v159_v18 = vadd.f32 %v408_v10, %v139_v9  ;;  %v140_v19 = vmul.f32 %v402_v7, %v284_v11  ;;  %v285_v20 = vunpack.c.h.bf16 %v308_v59 }
  0x16   :  { %v189_v22 = vmax.f32 %v173_v13, 0.0  ;;  %v88_v23 = vadd.f32 %v394_v3, %v68_v15  ;;  %v69_v24 = vmul.f32 %v389_v1, %v253_v16  ;;  %v256_v25 = vunpack.c.l.bf16 %v302_v12 }
  0x17   :  { %v190_v26 = vmax.f32 %v174_v17, 0.0  ;;  %v175_v27 = vadd.f32 %v159_v18, %v87_v14  ;;  %v160_v28 = vadd.f32 %v408_v10, %v140_v19  ;;  %v141_v29 = vmul.f32 %v402_v7, %v285_v20 }
  0x18   :  { %205 = vst [vmem:[#allocation2 + $0x28] sm:$0xff] %v189_v22  ;;  %v89_v31 = vadd.f32 %v394_v3, %v69_v24  ;;  %v70_v32 = vmul.f32 %v389_v1, %v256_v25  ;;  %v288_v33 = vunpack.c.l.bf16 %v309_v21  ;;  %v257_v34 = vunpack.c.h.bf16 %v302_v12 }
  0x19   :  { %206 = vst [vmem:[#allocation2 + $0x30] sm:$0xff] %v190_v26  ;;  %v191_v36 = vmax.f32 %v175_v27, 0.0  ;;  %v176_v37 = vadd.f32 %v160_v28, %v88_v23  ;;  %v161_v38 = vadd.f32 %v408_v10, %v141_v29  ;;  %v289_v39 = vunpack.c.h.bf16 %v309_v21 }
  0x1a   :  { %v90_v40 = vadd.f32 %v394_v3, %v70_v32  ;;  %v142_v41 = vmul.f32 %v402_v7, %v288_v33  ;;  %v71_v42 = vmul.f32 %v389_v1, %v257_v34  ;;  %v260_v43 = vunpack.c.l.bf16 %v303_v30 }
  0x1b   :  { %207 = vst [vmem:[#allocation2 + $0x38] sm:$0xff] %v191_v36  ;;  %v192_v44 = vmax.f32 %v176_v37, 0.0  ;;  %v177_v45 = vadd.f32 %v161_v38, %v89_v31  ;;  %v143_v46 = vmul.f32 %v402_v7, %v289_v39  ;;  %v292_v47 = vunpack.c.l.bf16 %v310_v35 }
  0x1c   :  { %v162_v49 = vadd.f32 %v408_v10, %v142_v41  ;;  %v91_v50 = vadd.f32 %v394_v3, %v71_v42  ;;  %v72_v51 = vmul.f32 %v389_v1, %v260_v43  ;;  %v261_v52 = vunpack.c.h.bf16 %v303_v30 }
  0x1d   :  { %208 = vst [vmem:[#allocation2 + $0x40] sm:$0xff] %v192_v44  ;;  %v193_v54 = vmax.f32 %v177_v45, 0.0  ;;  %v163_v55 = vadd.f32 %v408_v10, %v143_v46  ;;  %v144_v56 = vmul.f32 %v402_v7, %v292_v47  ;;  %v293_v57 = vunpack.c.h.bf16 %v310_v35 }
  0x1e   :  { %v178_v58 = vadd.f32 %v162_v49, %v90_v40  ;;  %v92_v59 = vadd.f32 %v394_v3, %v72_v51  ;;  %v73_v60 = vmul.f32 %v389_v1, %v261_v52  ;;  %v264_v61 = vunpack.c.l.bf16 %v304_v48 }
  0x1f   :  { %209 = vst [vmem:[#allocation2 + $0x48] sm:$0xff] %v193_v54  ;;  %v179_v62 = vadd.f32 %v163_v55, %v91_v50  ;;  %v164_v63 = vadd.f32 %v408_v10, %v144_v56  ;;  %v145_v0 = vmul.f32 %v402_v7, %v293_v57  ;;  %v296_v2 = vunpack.c.l.bf16 %v311_v53 }
  0x20   :  { %v194_v4 = vmax.f32 %v178_v58, 0.0  ;;  %v93_v5 = vadd.f32 %v394_v3, %v73_v60  ;;  %v74_v6 = vmul.f32 %v389_v1, %v264_v61  ;;  %v265_v8 = vunpack.c.h.bf16 %v304_v48 }
  0x21   :  { %v195_v9 = vmax.f32 %v179_v62, 0.0  ;;  %v180_v11 = vadd.f32 %v164_v63, %v92_v59  ;;  %v165_v12 = vadd.f32 %v408_v10, %v145_v0  ;;  %v146_v13 = vmul.f32 %v402_v7, %v296_v2 }
  0x22   :  { %210 = vst [vmem:[#allocation2 + $0x50] sm:$0xff] %v194_v4  ;;  %v94_v14 = vadd.f32 %v394_v3, %v74_v6  ;;  %v75_v15 = vmul.f32 %v389_v1, %v265_v8  ;;  %v297_v16 = vunpack.c.h.bf16 %v311_v53 }
  0x23   :  { %211 = vst [vmem:[#allocation2 + $0x58] sm:$0xff] %v195_v9  ;;  %v196_v17 = vmax.f32 %v180_v11, 0.0  ;;  %v181_v18 = vadd.f32 %v165_v12, %v93_v5  ;;  %v166_v19 = vadd.f32 %v408_v10, %v146_v13 }
  0x24   :  { %v95_v20 = vadd.f32 %v394_v3, %v75_v15  ;;  %v147_v21 = vmul.f32 %v402_v7, %v297_v16 }
  0x25   :  { %212 = vst [vmem:[#allocation2 + $0x60] sm:$0xff] %v196_v17  ;;  %v197_v22 = vmax.f32 %v181_v18, 0.0  ;;  %v182_v23 = vadd.f32 %v166_v19, %v94_v14 }
  0x26   :  { %v167_v24 = vadd.f32 %v408_v10, %v147_v21 }
  0x27   :  { %213 = vst [vmem:[#allocation2 + $0x68] sm:$0xff] %v197_v22  ;;  %v198_v25 = vmax.f32 %v182_v23, 0.0 }
  0x28   :  { %v183_v1 = vadd.f32 %v167_v24, %v95_v20 }
  0x29   :  { %214 = vst [vmem:[#allocation2 + $0x70] sm:$0xff] %v198_v25 }
  0x2a   :  { %v199_v26 = vmax.f32 %v183_v1, 0.0 }
  0x2c   :  { %215 = vst [vmem:[#allocation2 + $0x78] sm:$0xff] %v199_v26 }
  0x2d   :  { %228 = dma.vmem_to_hbm [thread:$0]  %s221_s1, 2048, %s223_s9, [#allocation3], %s346_s10, %s346_s10, %s347_s4  }
  0x2e   :  { %343 = dma.done.wait [#allocation3], 2048  }
  0x2f   :  { %344 = vsyncadd [#allocation3], 4294965248 }
  0x30   :  { %233 = vsyncpa [#allocation3], 1 }

// kernel: resblk_forward.6
= control target key start
LH: loop header
LB: loop body
LE: loop exit
PB: predicated region body
PF: predicated region fallthrough
CT: control target
= control target key end

     0   :  { %s1319_s4 = inlined_call_operand.vmem [shape: bf16[128,128], index: 4, kind: input, shape index: {}]   ;;  %s1320_s5 = inlined_call_operand.vmem [shape: bf16[128,128], index: 5, kind: input, shape index: {}]   ;;  %s1321_s2 = inlined_call_operand.vmem [shape: f32[1,128], index: 2, kind: input, shape index: {}]   ;;  %s1322_s3 = inlined_call_operand.vmem [shape: f32[1,128], index: 3, kind: input, shape index: {}]   ;;  %s1323_s0 = inlined_call_operand.vmem [shape: bf16[128,128], index: 0, kind: input, shape index: {}]   ;;  %s1324_s1 = inlined_call_operand.vmem [shape: bf16[128,128], index: 1, kind: input, shape index: {}]   ;;  %s1325_s6 = inlined_call_operand.vmem [shape: bf16[128,128], index: 6, kind: output, shape index: {0}]   ;;  %s1326_s7 = inlined_call_operand.vmem [shape: bf16[128,128], index: 7, kind: output, shape index: {1}]   ;;  %s1327_s8 = inlined_call_operand.vmem [shape: f32[1,8,128], index: 8, kind: output, shape index: {2}]   ;;  %s1328_s9 = inlined_call_operand.vmem [shape: f32[1,8,128], index: 9, kind: output, shape index: {3}]  }
   0x1   :  { %v831_v0 = vld [vmem:[%s1319_s4 + $0x38] sm:$0xff]  ;;  %v830_v2 = vld [vmem:[%s1319_s4 + $0x30] sm:$0xff]  ;;  %v829_v4 = vld [vmem:[%s1319_s4 + $0x28] sm:$0xff] }
   0x2   :  { %v847_v1 = vld [vmem:[%s1320_s5 + $0x38] sm:$0xff]  ;;  %187 = vmatpush.bf16.msra.mxu0 %v831_v0  ;;  %v846_v3 = vld [vmem:[%s1320_s5 + $0x30] sm:$0xff]  ;;  %981 = vmatpush.bf16.msra.mxu2 %v831_v0  ;;  %v845_v5 = vld [vmem:[%s1320_s5 + $0x28] sm:$0xff] }
   0x3   :  { %364 = vmatpush.bf16.msra.mxu1 %v847_v1  ;;  %989 = vmatpush.bf16.msra.mxu3 %v847_v1  ;;  %v828_v6 = vld [vmem:[%s1319_s4 + $0x20] sm:$0xff]  ;;  %v827_v13 = vld [vmem:[%s1319_s4 + $0x18] sm:$0xff]  ;;  %v826_v20 = vld [vmem:[%s1319_s4 + $0x10] sm:$0xff] }
   0x4   :  { %v844_v7 = vld [vmem:[%s1320_s5 + $0x20] sm:$0xff]  ;;  %v843_v14 = vld [vmem:[%s1320_s5 + $0x18] sm:$0xff]  ;;  %v842_v21 = vld [vmem:[%s1320_s5 + $0x10] sm:$0xff] }
   0x5   :  { %v849_v8 = vld [vmem:[%s1323_s0] sm:$0xff]   ;;  %v825_v26 = vld [vmem:[%s1319_s4 + $0x8] sm:$0xff]  ;;  %v961_v58 = vld [vmem:[%s1323_s0 + $0x10] sm:$0xff]  }
   0x6   :  { %188 = vmatpush.bf16.msra.mxu0 %v830_v2  ;;  %982 = vmatpush.bf16.msra.mxu2 %v830_v2  ;;  %v963_v9 = vld [vmem:[%s1323_s0 + $0x20] sm:$0xff]   ;;  %v850_v10 = vunpack.c.l.bf16 %v849_v8  ;;  %v851_v11 = vunpack.c.h.bf16 %v849_v8  ;;  %v841_v27 = vld [vmem:[%s1320_s5 + $0x8] sm:$0xff]  ;;  %v965_v59 = vld [vmem:[%s1323_s0 + $0x30] sm:$0xff]   ;;  %v858_v62 = vunpack.c.l.bf16 %v961_v58  ;;  %v859_v63 = vunpack.c.h.bf16 %v961_v58 }
   0x7   :  { %365 = vmatpush.bf16.msra.mxu1 %v846_v3  ;;  %990 = vmatpush.bf16.msra.mxu3 %v846_v3  ;;  %v1082_v12 = vld [vmem:[%s1321_s2] ss:$0 sm:$0xff]  ;;  %v866_v15 = vunpack.c.l.bf16 %v963_v9  ;;  %v867_v16 = vunpack.c.h.bf16 %v963_v9  ;;  %v960_v36 = vld [vmem:[%s1323_s0 + $0x8] sm:$0xff]   ;;  %v874_v2 = vunpack.c.l.bf16 %v965_v59  ;;  %v875_v3 = vunpack.c.h.bf16 %v965_v59 }
   0x8   :  { %v63_v17 = vmul.f32 %v1082_v12, %v850_v10  ;;  %v64_v18 = vmul.f32 %v1082_v12, %v851_v11  ;;  %v1095_v19 = vld [vmem:[%s1322_s3] ss:$0 sm:$0xff]  ;;  %v964_v37 = vld [vmem:[%s1323_s0 + $0x28] sm:$0xff]   ;;  %v854_v40 = vunpack.c.l.bf16 %v960_v36  ;;  %v855_v41 = vunpack.c.h.bf16 %v960_v36 }
   0x9   :  { %v71_v22 = vmul.f32 %v1082_v12, %v866_v15  ;;  %v72_v23 = vmul.f32 %v1082_v12, %v867_v16  ;;  %v824_v32 = vld [vmem:[%s1319_s4] sm:$0xff]  ;;  %v870_v44 = vunpack.c.l.bf16 %v964_v37  ;;  %v871_v45 = vunpack.c.h.bf16 %v964_v37  ;;  %v833_v61 = vld [vmem:[%s1324_s1 + $0x8] sm:$0xff] }
   0xa   :  { %189 = vmatpush.bf16.msra.mxu0 %v829_v4  ;;  %983 = vmatpush.bf16.msra.mxu2 %v829_v4  ;;  %v83_v24 = vadd.f32 %v1095_v19, %v63_v17  ;;  %v84_v25 = vadd.f32 %v1095_v19, %v64_v18  ;;  %v840_v33 = vld [vmem:[%s1320_s5] sm:$0xff]  ;;  %v65_v46 = vmul.f32 %v1082_v12, %v854_v40  ;;  %v837_v1 = vld [vmem:[%s1324_s1 + $0x28] sm:$0xff]  ;;  %v962_v17 = vld [vmem:[%s1323_s0 + $0x18] sm:$0xff]  }
   0xb   :  { %366 = vmatpush.bf16.msra.mxu1 %v845_v5  ;;  %991 = vmatpush.bf16.msra.mxu3 %v845_v5  ;;  %v91_v28 = vadd.f32 %v1095_v19, %v71_v22  ;;  %v92_v29 = vadd.f32 %v1095_v19, %v72_v23  ;;  %v832_v39 = vld [vmem:[%s1324_s1] sm:$0xff]  ;;  %v66_v47 = vmul.f32 %v1082_v12, %v855_v41  ;;  %v966_v18 = vld [vmem:[%s1323_s0 + $0x38] sm:$0xff]   ;;  %v862_v22 = vunpack.c.l.bf16 %v962_v17 }
   0xc   :  { %v99_v30 = vmax.f32 %v83_v24, 0.0  ;;  %v100_v31 = vmax.f32 %v84_v25, 0.0  ;;  %v836_v43 = vld [vmem:[%s1324_s1 + $0x20] sm:$0xff]  ;;  %v73_v48 = vmul.f32 %v1082_v12, %v870_v44  ;;  %v74_v49 = vmul.f32 %v1082_v12, %v871_v45  ;;  %v838_v25 = vld [vmem:[%s1324_s1 + $0x30] sm:$0xff]  ;;  %v835_v41 = vld [vmem:[%s1324_s1 + $0x18] sm:$0xff] }
   0xd   :  { %v107_v34 = vmax.f32 %v91_v28, 0.0  ;;  %v108_v35 = vmax.f32 %v92_v29, 0.0  ;;  %v85_v50 = vadd.f32 %v1095_v19, %v65_v46  ;;  %v86_v51 = vadd.f32 %v1095_v19, %v66_v47 }
   0xe   :  { %190 = vmatpush.bf16.msra.mxu0 %v828_v6  ;;  %984 = vmatpush.bf16.msra.mxu2 %v828_v6  ;;  %v115_v38 = vpack.c.bf16 %v100_v31, %v99_v30  ;;  %v93_v52 = vadd.f32 %v1095_v19, %v73_v48  ;;  %v94_v53 = vadd.f32 %v1095_v19, %v74_v49  ;;  %v863_v23 = vunpack.c.h.bf16 %v962_v17 }
   0xf   :  { %367 = vmatpush.bf16.msra.mxu1 %v844_v7  ;;  %992 = vmatpush.bf16.msra.mxu3 %v844_v7  ;;  %v119_v42 = vpack.c.bf16 %v108_v35, %v107_v34  ;;  %v101_v54 = vmax.f32 %v85_v50, 0.0  ;;  %v102_v55 = vmax.f32 %v86_v51, 0.0  ;;  %v67_v4 = vmul.f32 %v1082_v12, %v858_v62 }
  0x10   :  { %v109_v56 = vmax.f32 %v93_v52, 0.0  ;;  %v110_v57 = vmax.f32 %v94_v53, 0.0  ;;  %v68_v5 = vmul.f32 %v1082_v12, %v859_v63  ;;  %v75_v6 = vmul.f32 %v1082_v12, %v874_v2 }
  0x11   :  { %v116_v60 = vpack.c.bf16 %v102_v55, %v101_v54  ;;  %v76_v7 = vmul.f32 %v1082_v12, %v875_v3  ;;  %v87_v8 = vadd.f32 %v1095_v19, %v67_v4  ;;  %v69_v28 = vmul.f32 %v1082_v12, %v862_v22 }
  0x12   :  { %191 = vmatpush.bf16.msra.mxu0 %v827_v13  ;;  %985 = vmatpush.bf16.msra.mxu2 %v827_v13  ;;  %v120_v0 = vpack.c.bf16 %v110_v57, %v109_v56  ;;  %v88_v9 = vadd.f32 %v1095_v19, %v68_v5  ;;  %v95_v10 = vadd.f32 %v1095_v19, %v75_v6 }
  0x13   :  { %368 = vmatpush.bf16.msra.mxu1 %v843_v14  ;;  %993 = vmatpush.bf16.msra.mxu3 %v843_v14  ;;  %v96_v11 = vadd.f32 %v1095_v19, %v76_v7  ;;  %v103_v13 = vmax.f32 %v87_v8, 0.0  ;;  %v70_v29 = vmul.f32 %v1082_v12, %v863_v23 }
  0x14   :  { %v104_v14 = vmax.f32 %v88_v9, 0.0  ;;  %v111_v15 = vmax.f32 %v95_v10, 0.0 }
  0x15   :  { %v112_v16 = vmax.f32 %v96_v11, 0.0 }
  0x16   :  { %192 = vmatpush.bf16.msra.mxu0 %v826_v20  ;;  %986 = vmatpush.bf16.msra.mxu2 %v826_v20  ;;  %v117_v20 = vpack.c.bf16 %v104_v14, %v103_v13 }
  0x17   :  { %369 = vmatpush.bf16.msra.mxu1 %v842_v21  ;;  %994 = vmatpush.bf16.msra.mxu3 %v842_v21  ;;  %v834_v21 = vld [vmem:[%s1324_s1 + $0x10] sm:$0xff]  ;;  %v121_v24 = vpack.c.bf16 %v112_v16, %v111_v15 }
  0x1a   :  { %193 = vmatpush.bf16.msra.mxu0 %v825_v26  ;;  %987 = vmatpush.bf16.msra.mxu2 %v825_v26  ;;  %v878_v26 = vunpack.c.l.bf16 %v966_v18 }
  0x1b   :  { %370 = vmatpush.bf16.msra.mxu1 %v841_v27  ;;  %995 = vmatpush.bf16.msra.mxu3 %v841_v27  ;;  %v879_v27 = vunpack.c.h.bf16 %v966_v18 }
  0x1c   :  { %v77_v30 = vmul.f32 %v1082_v12, %v878_v26 }
  0x1d   :  { %v78_v31 = vmul.f32 %v1082_v12, %v879_v27  ;;  %v839_v12 = vld [vmem:[%s1324_s1 + $0x38] sm:$0xff] }
  0x1e   :  { %194 = vmatpush.bf16.msra.mxu0 %v824_v32  ;;  %988 = vmatpush.bf16.msra.mxu2 %v824_v32  ;;  %v89_v32 = vadd.f32 %v1095_v19, %v69_v28  ;;  %v97_v34 = vadd.f32 %v1095_v19, %v77_v30 }
  0x1f   :  { %371 = vmatpush.bf16.msra.mxu1 %v840_v33  ;;  %996 = vmatpush.bf16.msra.mxu3 %v840_v33  ;;  %v90_v33 = vadd.f32 %v1095_v19, %v70_v29  ;;  %v98_v35 = vadd.f32 %v1095_v19, %v78_v31 }
  0x20   :  { %v105_v36 = vmax.f32 %v89_v32, 0.0 }
  0x21   :  { %195 = vmatmul.bf16.vlgmr.msra.gmra.mxu0 %v115_v38  ;;  %215 = vmatmul.bf16.vlgmr.msra.gmra.mxu2 %v119_v42  ;;  %v106_v37 = vmax.f32 %v90_v33, 0.0  ;;  %v113_v38 = vmax.f32 %v97_v34, 0.0 }
  0x22   :  { %372 = vmatmul.bf16.vlgmr.msra.gmra.mxu1 %v832_v39  ;;  %392 = vmatmul.bf16.vlgmr.msra.gmra.mxu3 %v836_v43  ;;  %v114_v39 = vmax.f32 %v98_v35, 0.0 }
  0x23   :  { %v118_v40 = vpack.c.bf16 %v106_v37, %v105_v36 }
  0x24   :  { %v122_v42 = vpack.c.bf16 %v114_v39, %v113_v38 }
  0x31   :  { %200 = vmatmul.bf16.gmra.mxu0 %v116_v60  ;;  %220 = vmatmul.bf16.gmra.mxu2 %v120_v0 }
  0x32   :  { %377 = vmatmul.bf16.gmra.mxu1 %v833_v61  ;;  %397 = vmatmul.bf16.gmra.mxu3 %v837_v1 }
  0x41   :  { %205 = vmatmul.bf16.gmra.mxu0 %v117_v20  ;;  %225 = vmatmul.bf16.gmra.mxu2 %v121_v24 }
  0x42   :  { %382 = vmatmul.bf16.gmra.mxu1 %v834_v21  ;;  %402 = vmatmul.bf16.gmra.mxu3 %v838_v25 }
  0x51   :  { %210 = vmatmul.bf16.gmra.mxu0 %v118_v40  ;;  %230 = vmatmul.bf16.gmra.mxu2 %v122_v42 }
  0x52   :  { %387 = vmatmul.bf16.gmra.mxu1 %v835_v41  ;;  %407 = vmatmul.bf16.gmra.mxu3 %v839_v12 }
  0x9e   :  { %v196_v43 = vpop.f32.mrf.mxu0 }
  0x9f   :  { %v373_v19 = vpop.f32.mrf.mxu1  ;;  %v614_v13 = vmul.f32 %v196_v43, %v196_v43 }
  0xa0   :  { %v674_v15 = vmul.f32 %v373_v19, %v373_v19 }
  0xa4   :  { %v1187_v44 = vpop.f32.mrf.mxu2 }
  0xa5   :  { %v1189_v45 = vpop.f32.mrf.mxu3 }
  0xa6   :  { %v198_v46 = vpop.f32.mrf.mxu0 }
  0xa7   :  { %v375_v47 = vpop.f32.mrf.mxu1  ;;  %v883_v48 = vpack.c.bf16 %v198_v46, %v196_v43  ;;  %v615_v10 = vmul.f32 %v198_v46, %v198_v46  ;;  %v592_v16 = vadd.f32 %v198_v46, %v196_v43 }
  0xa8   :  { %v923_v49 = vpack.c.bf16 %v375_v47, %v373_v19  ;;  %v675_v11 = vmul.f32 %v375_v47, %v375_v47  ;;  %v652_v17 = vadd.f32 %v375_v47, %v373_v19 }
  0xa9   :  { %884 = vst [vmem:[%s1325_s6] sm:$0xff] %v883_v48   ;;  %v630_v20 = vadd.f32 %v615_v10, %v614_v13 }
  0xaa   :  { %924 = vst [vmem:[%s1326_s7] sm:$0xff] %v923_v49   ;;  %v690_v22 = vadd.f32 %v675_v11, %v674_v15 }
  0xac   :  { %v1197_v50 = vpop.f32.mrf.mxu2 }
  0xad   :  { %v1199_v51 = vpop.f32.mrf.mxu3  ;;  %v903_v53 = vpack.c.bf16 %v1197_v50, %v1187_v44 }
  0xae   :  { %v201_v52 = vpop.f32.mrf.mxu0  ;;  %v943_v55 = vpack.c.bf16 %v1199_v51, %v1189_v45 }
  0xaf   :  { %v378_v54 = vpop.f32.mrf.mxu1  ;;  %970 = vst [vmem:[%s1325_s6 + $0x20] sm:$0xff] %v903_v53   ;;  %v616_v14 = vmul.f32 %v201_v52, %v201_v52  ;;  %v593_v23 = vadd.f32 %v592_v16, %v201_v52 }
  0xb0   :  { %977 = vst [vmem:[%s1326_s7 + $0x20] sm:$0xff] %v943_v55   ;;  %v676_v18 = vmul.f32 %v378_v54, %v378_v54  ;;  %v653_v24 = vadd.f32 %v652_v17, %v378_v54  ;;  %v623_v17 = vmul.f32 %v1197_v50, %v1197_v50 }
  0xb1   :  { %v631_v28 = vadd.f32 %v630_v20, %v616_v14  ;;  %v682_v14 = vmul.f32 %v1189_v45, %v1189_v45 }
  0xb2   :  { %v691_v34 = vadd.f32 %v690_v22, %v676_v18 }
  0xb4   :  { %v1211_v56 = vpop.f32.mrf.mxu2 }
  0xb5   :  { %v1213_v57 = vpop.f32.mrf.mxu3 }
  0xb6   :  { %v203_v58 = vpop.f32.mrf.mxu0 }
  0xb7   :  { %v380_v59 = vpop.f32.mrf.mxu1  ;;  %v888_v60 = vpack.c.bf16 %v203_v58, %v201_v52  ;;  %v617_v21 = vmul.f32 %v203_v58, %v203_v58  ;;  %v594_v35 = vadd.f32 %v593_v23, %v203_v58  ;;  %v624_v23 = vmul.f32 %v1211_v56, %v1211_v56 }
  0xb8   :  { %v928_v61 = vpack.c.bf16 %v380_v59, %v378_v54  ;;  %v677_v25 = vmul.f32 %v380_v59, %v380_v59  ;;  %v654_v37 = vadd.f32 %v653_v24, %v380_v59 }
  0xb9   :  { %967 = vst [vmem:[%s1325_s6 + $0x8] sm:$0xff] %v888_v60   ;;  %v632_v36 = vadd.f32 %v631_v28, %v617_v21 }
  0xba   :  { %974 = vst [vmem:[%s1326_s7 + $0x8] sm:$0xff] %v928_v61   ;;  %v692_v40 = vadd.f32 %v691_v34, %v677_v25 }
  0xbc   :  { %v1221_v62 = vpop.f32.mrf.mxu2 }
  0xbd   :  { %v1223_v63 = vpop.f32.mrf.mxu3  ;;  %v908_v1 = vpack.c.bf16 %v1221_v62, %v1211_v56 }
  0xbe   :  { %v206_v0 = vpop.f32.mrf.mxu0  ;;  %v948_v3 = vpack.c.bf16 %v1223_v63, %v1213_v57 }
  0xbf   :  { %v383_v2 = vpop.f32.mrf.mxu1  ;;  %971 = vst [vmem:[%s1325_s6 + $0x28] sm:$0xff] %v908_v1   ;;  %v618_v29 = vmul.f32 %v206_v0, %v206_v0  ;;  %v595_v41 = vadd.f32 %v594_v35, %v206_v0 }
  0xc0   :  { %978 = vst [vmem:[%s1326_s7 + $0x28] sm:$0xff] %v948_v3   ;;  %v678_v38 = vmul.f32 %v383_v2, %v383_v2  ;;  %v655_v12 = vadd.f32 %v654_v37, %v383_v2 }
  0xc1   :  { %v633_v42 = vadd.f32 %v632_v36, %v618_v29  ;;  %v684_v29 = vmul.f32 %v1213_v57, %v1213_v57 }
  0xc2   :  { %v693_v47 = vadd.f32 %v692_v40, %v678_v38 }
  0xc4   :  { %v1235_v4 = vpop.f32.mrf.mxu2 }
  0xc5   :  { %v1237_v5 = vpop.f32.mrf.mxu3 }
  0xc6   :  { %v208_v6 = vpop.f32.mrf.mxu0 }
  0xc7   :  { %v385_v7 = vpop.f32.mrf.mxu1  ;;  %v893_v8 = vpack.c.bf16 %v208_v6, %v206_v0  ;;  %v619_v39 = vmul.f32 %v208_v6, %v208_v6  ;;  %v596_v46 = vadd.f32 %v595_v41, %v208_v6  ;;  %v622_v6 = vmul.f32 %v1187_v44, %v1187_v44 }
  0xc8   :  { %v933_v9 = vpack.c.bf16 %v385_v7, %v383_v2  ;;  %v679_v43 = vmul.f32 %v385_v7, %v385_v7  ;;  %v656_v49 = vadd.f32 %v655_v12, %v385_v7 }
  0xc9   :  { %968 = vst [vmem:[%s1325_s6 + $0x10] sm:$0xff] %v893_v8   ;;  %v634_v48 = vadd.f32 %v633_v42, %v619_v39 }
  0xca   :  { %975 = vst [vmem:[%s1326_s7 + $0x10] sm:$0xff] %v933_v9   ;;  %v694_v58 = vadd.f32 %v693_v47, %v679_v43 }
  0xcc   :  { %v1245_v26 = vpop.f32.mrf.mxu2 }
  0xcd   :  { %v1247_v27 = vpop.f32.mrf.mxu3  ;;  %v913_v31 = vpack.c.bf16 %v1245_v26, %v1235_v4  ;;  %v627_v40 = vmul.f32 %v1245_v26, %v1245_v26 }
  0xce   :  { %v211_v30 = vpop.f32.mrf.mxu0  ;;  %v953_v33 = vpack.c.bf16 %v1247_v27, %v1237_v5 }
  0xcf   :  { %v388_v32 = vpop.f32.mrf.mxu1  ;;  %972 = vst [vmem:[%s1325_s6 + $0x30] sm:$0xff] %v913_v31   ;;  %v620_v19 = vmul.f32 %v211_v30, %v211_v30  ;;  %v597_v53 = vadd.f32 %v596_v46, %v211_v30 }
  0xd0   :  { %979 = vst [vmem:[%s1326_s7 + $0x30] sm:$0xff] %v953_v33   ;;  %v680_v52 = vmul.f32 %v388_v32, %v388_v32  ;;  %v657_v60 = vadd.f32 %v656_v49, %v388_v32 }
  0xd1   :  { %v635_v59 = vadd.f32 %v634_v48, %v620_v19 }
  0xd2   :  { %v695_v2 = vadd.f32 %v694_v58, %v680_v52 }
  0xd4   :  { %v231_v54 = vpop.f32.mrf.mxu2 }
  0xd5   :  { %v408_v55 = vpop.f32.mrf.mxu3  ;;  %v628_v46 = vmul.f32 %v231_v54, %v231_v54 }
  0xd6   :  { %v213_v61 = vpop.f32.mrf.mxu0  ;;  %v688_v49 = vmul.f32 %v408_v55, %v408_v55 }
  0xd7   :  { %v390_v0 = vpop.f32.mrf.mxu1  ;;  %v898_v1 = vpack.c.bf16 %v213_v61, %v211_v30  ;;  %v598_v3 = vadd.f32 %v597_v53, %v213_v61  ;;  %v621_v8 = vmul.f32 %v213_v61, %v213_v61 }
  0xd8   :  { %v938_v9 = vpack.c.bf16 %v390_v0, %v388_v32  ;;  %v658_v10 = vadd.f32 %v657_v60, %v390_v0  ;;  %v681_v11 = vmul.f32 %v390_v0, %v390_v0  ;;  %v625_v32 = vmul.f32 %v1221_v62, %v1221_v62 }
  0xd9   :  { %969 = vst [vmem:[%s1325_s6 + $0x18] sm:$0xff] %v898_v1   ;;  %v599_v7 = vadd.f32 %v598_v3, %v1187_v44  ;;  %v636_v13 = vadd.f32 %v635_v59, %v621_v8  ;;  %v683_v44 = vmul.f32 %v1199_v51, %v1199_v51 }
  0xda   :  { %976 = vst [vmem:[%s1326_s7 + $0x18] sm:$0xff] %v938_v9   ;;  %v659_v15 = vadd.f32 %v658_v10, %v1189_v45  ;;  %v696_v16 = vadd.f32 %v695_v2, %v681_v11 }
  0xdb   :  { %v600_v18 = vadd.f32 %v599_v7, %v1197_v50  ;;  %v637_v20 = vadd.f32 %v636_v13, %v622_v6 }
  0xdc   :  { %v660_v21 = vadd.f32 %v659_v15, %v1199_v51  ;;  %v697_v22 = vadd.f32 %v696_v16, %v682_v14  ;;  %v233_v45 = vpop.f32.mrf.mxu2 }
  0xdd   :  { %v601_v24 = vadd.f32 %v600_v18, %v1211_v56  ;;  %v638_v25 = vadd.f32 %v637_v20, %v623_v17  ;;  %v410_v28 = vpop.f32.mrf.mxu3  ;;  %v918_v31 = vpack.c.bf16 %v233_v45, %v231_v54  ;;  %v685_v56 = vmul.f32 %v1223_v63, %v1223_v63 }
  0xde   :  { %v661_v50 = vadd.f32 %v660_v21, %v1213_v57  ;;  %v698_v30 = vadd.f32 %v697_v22, %v683_v44  ;;  %v958_v34 = vpack.c.bf16 %v410_v28, %v408_v55  ;;  %v626_v57 = vmul.f32 %v1235_v4, %v1235_v4 }
  0xdf   :  { %v639_v51 = vadd.f32 %v638_v25, %v624_v23  ;;  %v602_v33 = vadd.f32 %v601_v24, %v1221_v62  ;;  %973 = vst [vmem:[%s1325_s6 + $0x38] sm:$0xff] %v918_v31   ;;  %v686_v62 = vmul.f32 %v1237_v5, %v1237_v5  ;;  %v629_v58 = vmul.f32 %v233_v45, %v233_v45 }
  0xe0   :  { %v699_v35 = vadd.f32 %v698_v30, %v684_v29  ;;  %v662_v36 = vadd.f32 %v661_v50, %v1223_v63  ;;  %980 = vst [vmem:[%s1326_s7 + $0x38] sm:$0xff] %v958_v34   ;;  %v689_v61 = vmul.f32 %v410_v28, %v410_v28 }
  0xe1   :  { %v603_v37 = vadd.f32 %v602_v33, %v1235_v4  ;;  %v640_v38 = vadd.f32 %v639_v51, %v625_v32  ;;  %v687_v4 = vmul.f32 %v1247_v27, %v1247_v27 }
  0xe2   :  { %v663_v39 = vadd.f32 %v662_v36, %v1237_v5  ;;  %v700_v63 = vadd.f32 %v699_v35, %v685_v56 }
  0xe3   :  { %v604_v41 = vadd.f32 %v603_v37, %v1245_v26  ;;  %v641_v42 = vadd.f32 %v640_v38, %v626_v57 }
  0xe4   :  { %v664_v12 = vadd.f32 %v663_v39, %v1247_v27  ;;  %v701_v43 = vadd.f32 %v700_v63, %v686_v62 }
  0xe5   :  { %v605_v19 = vadd.f32 %v604_v41, %v231_v54  ;;  %v642_v47 = vadd.f32 %v641_v42, %v627_v40 }
  0xe6   :  { %v665_v48 = vadd.f32 %v664_v12, %v408_v55  ;;  %v702_v52 = vadd.f32 %v701_v43, %v687_v4 }
  0xe7   :  { %v643_v5 = vadd.f32 %v642_v47, %v628_v46  ;;  %v606_v53 = vadd.f32 %v605_v19, %v233_v45 }
  0xe8   :  { %v703_v59 = vadd.f32 %v702_v52, %v688_v49  ;;  %v666_v60 = vadd.f32 %v665_v48, %v410_v28 }
  0xe9   :  { %v607_v26 = vrot.slane %v606_v53, 4  ;;  %v644_v0 = vadd.f32 %v643_v5, %v629_v58 }
  0xea   :  { %v667_v1 = vrot.slane %v666_v60, 4  ;;  %v704_v3 = vadd.f32 %v703_v59, %v689_v61 }
  0xeb   :  { %v608_v8 = vadd.f32 %v607_v26, %v606_v53  ;;  %v645_v9 = vrot.slane %v644_v0, 4 }
  0xec   :  { %v668_v27 = vadd.f32 %v667_v1, %v666_v60  ;;  %v705_v2 = vrot.slane %v704_v3, 4 }
  0xed   :  { %v609_v10 = vrot.slane %v608_v8, 2  ;;  %v646_v54 = vadd.f32 %v645_v9, %v644_v0 }
  0xee   :  { %v669_v11 = vrot.slane %v668_v27, 2  ;;  %v706_v6 = vadd.f32 %v705_v2, %v704_v3 }
  0xef   :  { %v610_v55 = vadd.f32 %v609_v10, %v608_v8  ;;  %v647_v7 = vrot.slane %v646_v54, 2 }
  0xf0   :  { %v670_v13 = vadd.f32 %v669_v11, %v668_v27  ;;  %v707_v14 = vrot.slane %v706_v6, 2 }
  0xf1   :  { %v611_v15 = vrot.slane %v610_v55, 1  ;;  %v648_v16 = vadd.f32 %v647_v7, %v646_v54 }
  0xf2   :  { %v671_v17 = vrot.slane %v670_v13, 1  ;;  %v708_v18 = vadd.f32 %v707_v14, %v706_v6 }
  0xf3   :  { %v612_v20 = vadd.f32 %v611_v15, %v610_v55  ;;  %v649_v44 = vrot.slane %v648_v16, 1 }
  0xf4   :  { %v672_v21 = vadd.f32 %v671_v17, %v670_v13  ;;  %v709_v22 = vrot.slane %v708_v18, 1 }
  0xf5   :  { %613 = vst [vmem:[%s1327_s8] sm:$0x1] %v612_v20  ;;  %v650_v23 = vadd.f32 %v649_v44, %v648_v16 }
  0xf6   :  { %673 = vst [vmem:[%s1328_s9] sm:$0x1] %v672_v21  ;;  %v710_v24 = vadd.f32 %v709_v22, %v708_v18 }
  0xf7   :  { %651 = vst [vmem:[%s1327_s8 + $0x1] sm:$0x1] %v650_v23 }
  0xf8   :  { %711 = vst [vmem:[%s1328_s9 + $0x1] sm:$0x1] %v710_v24 }

// kernel: resblk_forward.5
= control target key start
LH: loop header
LB: loop body
LE: loop exit
PB: predicated region body
PF: predicated region fallthrough
CT: control target
= control target key end

     0   :  { %s2797_s12 = smov 0   ;;  %s3230_s0 = inlined_call_operand.vmem [shape: bf16[2,4,9,9,128], index: 0, kind: input, shape index: {}]   ;;  %s3231_s1 = inlined_call_operand.vmem [shape: bf16[9,128,128], index: 1, kind: input, shape index: {}]   ;;  %s3232_s2 = inlined_call_operand.vmem [shape: bf16[2,64,128], index: 2, kind: output, shape index: {0}]   ;;  %s3233_s3 = inlined_call_operand.vmem [shape: f32[2,8,128], index: 3, kind: output, shape index: {1}]  }
   0x1 LB: > { %s2029_s13 = sadd.s32 4294967295, %s2775_s12   ;;  %p2033_p0 = scmp.ge.s32.totalorder %s2775_s12, 1  ;;  %s2775_s12 = sphi %s2797_s12, %s14_s12  }
   0x2   : > { %p140_p1 = scmp.lt.s32.totalorder %s2775_s12, 3 }
   0x4   : > { %p141_p2 = pnand %p2033_p0, %p140_p1 }
   0x5   : > { %p168_p3 = scmp.lt.s32.totalorder (!%p141_p2), %s2029_s13, 1 }
   0x6   : > { %144 = sbr.rel (%p141_p2) target bundleno = 346 (0x15a), region = 28 }
   0xb   : > { %v2636_v0 = vld [vmem:[%s3231_s1 + $0x38] sm:$0xff]  ;;  %v2635_v2 = vld [vmem:[%s3231_s1 + $0x30] sm:$0xff]  ;;  %s3237_s13 = smov (!%p168_p3, %s2029_s13), 1  ;;  %v2634_v6 = vld [vmem:[%s3231_s1 + $0x28] sm:$0xff]  ;;  %vm506_vm0 = vsmask.f32 3328 }
   0xc   : > { %v2656_v1 = vld [vmem:[%s3231_s1 + $0xb8] sm:$0xff]  ;;  %2744 = vmatpush.bf16.msra.mxu1 %v2636_v0  ;;  %294 = vmatpush.bf16.msra.mxu0 %v2636_v0  ;;  %v2655_v3 = vld [vmem:[%s3231_s1 + $0xb0] sm:$0xff]  ;;  %s2760_s24 = smul.u32 288, %s3237_s13  ;;  %v2654_v7 = vld [vmem:[%s3231_s1 + $0xa8] sm:$0xff]  ;;  %vm507_vm1 = vsmask.f32 7440 }
   0xd   : > { %710 = vmatpush.bf16.msra.mxu2 %v2656_v1  ;;  %v2668_v4 = vld [vmem:[%s3231_s1 + $0xf8] sm:$0xff]  ;;  %v2667_v5 = vld [vmem:[%s3231_s1 + $0xf0] sm:$0xff]  ;;  %v2666_v8 = vld [vmem:[%s3231_s1 + $0xe8] sm:$0xff]  ;;  %s2037_s20 = sshll.u32 %s3237_s13, 3 }
   0xe   : > { %861 = vmatpush.bf16.msra.mxu3 %v2668_v4  ;;  %s2832_s4 = scalar_lea.vmem %s3230_s0, %s2760_s24  ;;  %v2633_v10 = vld [vmem:[%s3231_s1 + $0x20] sm:$0xff]  ;;  %v2632_v23 = vld [vmem:[%s3231_s1 + $0x18] sm:$0xff]  ;;  %v2631_v31 = vld [vmem:[%s3231_s1 + $0x10] sm:$0xff]  ;;  %s181_s23 = scalar_lea.vmem %s3233_s3, %s2037_s20 }
   0xf   : > { %v490_v9 = vld [vmem:[%s2832_s4] sm:$0xf]  ;;  %v492_v11 = vld [vmem:[%s2832_s4 + $0x8] sm:$0xf]  ;;  %v491_v16 = vld [vmem:[%s2832_s4 + $0x4] sm:$0x1] }
  0x10   : > { %2745 = vmatpush.bf16.msra.mxu1 %v2635_v2  ;;  %295 = vmatpush.bf16.msra.mxu0 %v2635_v2  ;;  %v2653_v12 = vld [vmem:[%s3231_s1 + $0xa0] sm:$0xff]  ;;  %v510_v13 = vshrl.u32 %v490_v9, 16  ;;  %v513_v14 = vshll.u32 %v490_v9, 16  ;;  %v524_v15 = vshrl.u32 %v492_v11, 16  ;;  %v493_v17 = vld [vmem:[%s2832_s4 + $0xc] sm:$0x1]  ;;  %vm2870_vm2 = vmor %vm506_vm0, %vm507_vm1 }
  0x11   : > { %711 = vmatpush.bf16.msra.mxu2 %v2655_v3  ;;  %v527_v18 = vshll.u32 %v492_v11, 16  ;;  %v2665_v19 = vld [vmem:[%s3231_s1 + $0xe0] sm:$0xff]  ;;  %v2652_v25 = vld [vmem:[%s3231_s1 + $0x98] sm:$0xff]  ;;  %v519_v27 = vshll.u32 %v491_v16, 16  ;;  %v533_v28 = vshll.u32 %v493_v17, 16  ;;  %v2651_v34 = vld [vmem:[%s3231_s1 + $0x90] sm:$0xff] }
  0x12   : > { %862 = vmatpush.bf16.msra.mxu3 %v2667_v5  ;;  %v512_v20 = vrot.slane %v510_v13, 4  ;;  %v515_v21 = vrot.slane %v513_v14, 5  ;;  %v526_v22 = vrot.slane %v524_v15, 4  ;;  %v2664_v30 = vld [vmem:[%s3231_s1 + $0xd8] sm:$0xff]  ;;  %v494_v32 = vld [vmem:[%s2832_s4 + $0x10] sm:$0xf] }
  0x13   : > { %v529_v24 = vrot.slane %v527_v18, 5  ;;  %v496_v33 = vld [vmem:[%s2832_s4 + $0x18] sm:$0xf]  ;;  %v521_v36 = vrot.slane %v519_v27, 5  ;;  %v535_v38 = vrot.slane %v533_v28, 5  ;;  %v2663_v40 = vld [vmem:[%s3231_s1 + $0xd0] sm:$0xff] }
  0x14   : > { %2746 = vmatpush.bf16.msra.mxu1 %v2634_v6  ;;  %296 = vmatpush.bf16.msra.mxu0 %v2634_v6  ;;  %v516_v26 = vor.u32 %v515_v21, %v512_v20  ;;  %v538_v41 = vshrl.u32 %v494_v32, 16  ;;  %v541_v42 = vshll.u32 %v494_v32, 16  ;;  %v552_v43 = vshrl.u32 %v496_v33, 16  ;;  %v2630_v45 = vld [vmem:[%s3231_s1 + $0x8] sm:$0xff]  ;;  %v2629_v49 = vld [vmem:[%s3231_s1] sm:$0xff]  ;;  %v2648_v63 = vld [vmem:[%s3231_s1 + $0x78] sm:$0xff] }
  0x15   : > { %712 = vmatpush.bf16.msra.mxu2 %v2654_v7  ;;  %v530_v29 = vor.u32 %v529_v24, %v526_v22  ;;  %v555_v44 = vshll.u32 %v496_v33, 16  ;;  %v2650_v46 = vld [vmem:[%s3231_s1 + $0x88] sm:$0xff]  ;;  %v2048_v50 = vld [vmem:[%s2832_s4 + $0x20] sm:$0xf]  ;;  %v495_v53 = vld [vmem:[%s2832_s4 + $0x14] sm:$0x1] }
  0x16   : > { %863 = vmatpush.bf16.msra.mxu3 %v2666_v8  ;;  %v517_v35 = vrot.slane %v516_v26, 4  ;;  %v2627_v51 = vld [vmem:[%s2832_s4 + $0x24] sm:$0xf0]  ;;  %v540_v54 = vrot.slane %v538_v41, 4  ;;  %v543_v55 = vrot.slane %v541_v42, 5  ;;  %v554_v56 = vrot.slane %v552_v43, 4 }
  0x17   : > { %v531_v37 = vrot.slane %v530_v29, 4  ;;  %v2662_v52 = vld [vmem:[%s3231_s1 + $0xc8] sm:$0xff]  ;;  %v557_v57 = vrot.slane %v555_v44, 5  ;;  %v2040_v58 = vld [vmem:[%s2832_s4] sm:$0xf]  ;;  %v2049_v1 = vor.u32 %v2627_v51, %v2048_v50  ;;  %v2680_v2 = vld [vmem:[%s3231_s1 + $0x138] sm:$0xff] }
  0x18   : > { %2747 = vmatpush.bf16.msra.mxu1 %v2633_v10  ;;  %297 = vmatpush.bf16.msra.mxu0 %v2633_v10  ;;  %v522_v47 = vsel %vm2870_vm2, %v517_v35, %v521_v36  ;;  %v2625_v59 = vld [vmem:[%s2832_s4 + $0x4] sm:$0xf0]  ;;  %v497_v62 = vld [vmem:[%s2832_s4 + $0x1c] sm:$0x1]  ;;  %v2649_v0 = vld [vmem:[%s3231_s1 + $0x80] sm:$0xff]  ;;  %v547_v4 = vshll.u32 %v495_v53, 16  ;;  %v544_v6 = vor.u32 %v543_v55, %v540_v54 }
  0x19   : > { %713 = vmatpush.bf16.msra.mxu2 %v2653_v12  ;;  %v536_v48 = vsel %vm2870_vm2, %v531_v37, %v535_v38  ;;  %v646_v60 = vunpack.c.l.b16 %v522_v47  ;;  %v2700_v3 = vld [vmem:[%s3231_s1 + $0x1b8] sm:$0xff]  ;;  %v2041_v5 = vor.u32 %v2625_v59, %v2040_v58  ;;  %v558_v7 = vor.u32 %v557_v57, %v554_v56  ;;  %v2661_v10 = vld [vmem:[%s3231_s1 + $0xc0] sm:$0xff]  ;;  %v2232_v11 = vld [vmem:[%s2832_s4 + $0x90] sm:$0xf] }
  0x1a   : > { %864 = vmatpush.bf16.msra.mxu3 %v2665_v19  ;;  %v647_v61 = vunpack.c.l.b16 %v536_v48  ;;  %v561_v8 = vshll.u32 %v497_v62, 16  ;;  %v2657_v12 = vld [vmem:[%s2832_s4 + $0x94] sm:$0xf0]  ;;  %v2647_v13 = vld [vmem:[%s3231_s1 + $0x70] sm:$0xff]  ;;  %v549_v16 = vrot.slane %v547_v4, 5  ;;  %v545_v19 = vrot.slane %v544_v6, 4 }
  0x1b   : > { %v2712_v14 = vld [vmem:[%s3231_s1 + $0x1f8] sm:$0xff]  ;;  %v2679_v15 = vld [vmem:[%s3231_s1 + $0x130] sm:$0xff]  ;;  %v2233_v18 = vor.u32 %v2657_v12, %v2232_v11  ;;  %v559_v20 = vrot.slane %v558_v7, 4  ;;  %v2646_v22 = vld [vmem:[%s3231_s1 + $0x68] sm:$0xff] }
  0x1c   : > { %2748 = vmatpush.bf16.msra.mxu1 %v2632_v23  ;;  %298 = vmatpush.bf16.msra.mxu0 %v2632_v23  ;;  %v654_v9 = vpack.c.b16 %v647_v61, %v646_v60  ;;  %v2699_v17 = vld [vmem:[%s3231_s1 + $0x1b0] sm:$0xff]  ;;  %v563_v21 = vrot.slane %v561_v8, 5  ;;  %v498_v24 = vld [vmem:[%s2832_s4 + $0x20] sm:$0xf]  ;;  %v2678_v26 = vld [vmem:[%s3231_s1 + $0x128] sm:$0xff]  ;;  %v550_v28 = vsel %vm2870_vm2, %v545_v19, %v549_v16 }
  0x1d   : > { %714 = vmatpush.bf16.msra.mxu2 %v2652_v25  ;;  %v2711_v23 = vld [vmem:[%s3231_s1 + $0x1f0] sm:$0xff]  ;;  %v500_v25 = vld [vmem:[%s2832_s4 + $0x28] sm:$0xf]  ;;  %v2677_v36 = vld [vmem:[%s3231_s1 + $0x120] sm:$0xff]  ;;  %v648_v42 = vunpack.c.l.b16 %v550_v28 }
  0x1e   : > { %865 = vmatpush.bf16.msra.mxu3 %v2664_v30  ;;  %v2698_v27 = vld [vmem:[%s3231_s1 + $0x1a8] sm:$0xff]  ;;  %v564_v29 = vsel %vm2870_vm2, %v559_v20, %v563_v21  ;;  %v566_v30 = vshrl.u32 %v498_v24, 16  ;;  %v580_v32 = vshrl.u32 %v500_v25, 16  ;;  %v583_v33 = vshll.u32 %v500_v25, 16  ;;  %v2697_v37 = vld [vmem:[%s3231_s1 + $0x1a0] sm:$0xff]  ;;  %v2643_v62 = vld [vmem:[%s3231_s1 + $0x50] sm:$0xff] }
  0x1f   : > { %v2710_v35 = vld [vmem:[%s3231_s1 + $0x1e8] sm:$0xff]  ;;  %v2052_v38 = vld [vmem:[%s2832_s4 + $0x30] sm:$0xf]  ;;  %v649_v43 = vunpack.c.l.b16 %v564_v29  ;;  %v2626_v44 = vld [vmem:[%s2832_s4 + $0x14] sm:$0xf0] }
  0x20   : > { %2749 = vmatpush.bf16.msra.mxu1 %v2631_v31  ;;  %299 = vmatpush.bf16.msra.mxu0 %v2631_v31  ;;  %v569_v31 = vshll.u32 %v498_v24, 16  ;;  %v2044_v41 = vld [vmem:[%s2832_s4 + $0x10] sm:$0xf]  ;;  %v582_v47 = vrot.slane %v580_v32, 4  ;;  %v585_v48 = vrot.slane %v583_v33, 5  ;;  %v2642_v6 = vld [vmem:[%s3231_s1 + $0x48] sm:$0xff] }
  0x21   : > { %715 = vmatpush.bf16.msra.mxu2 %v2651_v34  ;;  %v2645_v34 = vld [vmem:[%s3231_s1 + $0x60] sm:$0xff]  ;;  %v501_v51 = vld [vmem:[%s2832_s4 + $0x2c] sm:$0x1]  ;;  %v2045_v54 = vor.u32 %v2626_v44, %v2044_v41  ;;  %v655_v55 = vpack.c.b16 %v649_v43, %v648_v42  ;;  %v2658_v57 = vld [vmem:[%s2832_s4 + $0xa4] sm:$0xf0] }
  0x22   : > { %866 = vmatpush.bf16.msra.mxu3 %v2663_v40  ;;  %v2628_v40 = vld [vmem:[%s2832_s4 + $0x34] sm:$0xf0]  ;;  %v499_v50 = vld [vmem:[%s2832_s4 + $0x24] sm:$0x1]  ;;  %v2236_v56 = vld [vmem:[%s2832_s4 + $0xa0] sm:$0xf]  ;;  %v586_v60 = vor.u32 %v585_v48, %v582_v47 }
  0x23   : > { %v2053_v53 = vor.u32 %v2628_v40, %v2052_v38  ;;  %v575_v59 = vshll.u32 %v499_v50, 16  ;;  %v589_v61 = vshll.u32 %v501_v51, 16  ;;  %v2674_v7 = vld [vmem:[%s3231_s1 + $0x108] sm:$0xff]  ;;  %v2709_v8 = vld [vmem:[%s3231_s1 + $0x1e0] sm:$0xff]  ;;  %v2695_v11 = vld [vmem:[%s3231_s1 + $0x190] sm:$0xff] }
  0x24   : > { %2750 = vmatpush.bf16.msra.mxu1 %v2630_v45  ;;  %300 = vmatpush.bf16.msra.mxu0 %v2630_v45  ;;  %v568_v45 = vrot.slane %v566_v30, 4  ;;  %v587_v4 = vrot.slane %v586_v60, 4  ;;  %v2688_v20 = vld [vmem:[%s3231_s1 + $0x178] sm:$0xff]  ;;  %v2673_v21 = vld [vmem:[%s3231_s1 + $0x100] sm:$0xff]  ;;  %v2637_v24 = vld [vmem:[%s2832_s4 + $0x4c] sm:$0xf0] }
  0x25   : > { %716 = vmatpush.bf16.msra.mxu2 %v2650_v46  ;;  %v571_v46 = vrot.slane %v569_v31, 5  ;;  %v2304_v25 = vld [vmem:[%s2832_s4 + $0xd8] sm:$0xf]  ;;  %v2687_v33 = vld [vmem:[%s3231_s1 + $0x170] sm:$0xff]  ;;  %v2686_v47 = vld [vmem:[%s3231_s1 + $0x168] sm:$0xff] }
  0x26   : > { %867 = vmatpush.bf16.msra.mxu3 %v2662_v52  ;;  %v2676_v52 = vld [vmem:[%s3231_s1 + $0x118] sm:$0xff]  ;;  %v2240_v40 = vld [vmem:[%s2832_s4 + $0xb0] sm:$0xf]  ;;  %v2694_v48 = vld [vmem:[%s3231_s1 + $0x188] sm:$0xff] }
  0x27   : > { %v572_v58 = vor.u32 %v571_v46, %v568_v45  ;;  %v2659_v41 = vld [vmem:[%s2832_s4 + $0xb4] sm:$0xf0]  ;;  %v2719_v42 = vld [vmem:[%s3231_s1 + $0x230] sm:$0xff]  ;;  %v2718_v50 = vld [vmem:[%s3231_s1 + $0x228] sm:$0xff] }
  0x28   : > { %2751 = vmatpush.bf16.msra.mxu1 %v2629_v49  ;;  %301 = vmatpush.bf16.msra.mxu0 %v2629_v49  ;;  %v2644_v49 = vld [vmem:[%s3231_s1 + $0x58] sm:$0xff] }
  0x29   : > { %717 = vmatpush.bf16.msra.mxu2 %v2649_v0  ;;  %v2237_v0 = vor.u32 %v2658_v57, %v2236_v56  ;;  %v2707_v56 = vld [vmem:[%s3231_s1 + $0x1d0] sm:$0xff]  ;;  %v2685_v57 = vld [vmem:[%s3231_s1 + $0x160] sm:$0xff] }
  0x2a   : > { %868 = vmatpush.bf16.msra.mxu3 %v2661_v10  ;;  %v504_v10 = vld [vmem:[%s2832_s4 + $0x38] sm:$0xf] }
  0x2b   : > { %312 = vmatmul.bf16.vlgmr.msra.gmra.mxu1 %v2049_v1  ;;  %302 = vmatmul.bf16.vlgmr.msra.gmra.mxu0 %v2041_v5  ;;  %v2696_v1 = vld [vmem:[%s3231_s1 + $0x198] sm:$0xff]  ;;  %v591_v5 = vrot.slane %v589_v61, 5  ;;  %v611_v19 = vshll.u32 %v504_v10, 16 }
  0x2c   : > { %445 = vmatpush.bf16.msrb.mxu1 %v2648_v63  ;;  %1012 = vmatpush.bf16.msrb.mxu0 %v2680_v2  ;;  %v2675_v63 = vld [vmem:[%s3231_s1 + $0x110] sm:$0xff]  ;;  %v573_v2 = vrot.slane %v572_v58, 4  ;;  %v2717_v58 = vld [vmem:[%s3231_s1 + $0x220] sm:$0xff] }
  0x2d   : > { %1425 = vmatpush.bf16.msrb.mxu2 %v2700_v3  ;;  %869 = vmatmul.bf16.vlgmr.msra.gmra.mxu3 %v2233_v18  ;;  %v577_v3 = vrot.slane %v575_v59, 5  ;;  %v608_v18 = vshrl.u32 %v504_v10, 16  ;;  %v613_v32 = vrot.slane %v611_v19, 5  ;;  %v2706_v59 = vld [vmem:[%s3231_s1 + $0x1c8] sm:$0xff]  ;;  %v2639_v19 = vld [vmem:[%s2832_s4 + $0x6c] sm:$0xf0] }
  0x2e   : > { %718 = vmatmul.bf16.vlgmr.msra.gmra.mxu2 %v654_v9  ;;  %1576 = vmatpush.bf16.msrb.mxu3 %v2712_v14  ;;  %v502_v9 = vld [vmem:[%s2832_s4 + $0x30] sm:$0xf]  ;;  %v2708_v14 = vld [vmem:[%s3231_s1 + $0x1d8] sm:$0xff]  ;;  %v2660_v10 = vld [vmem:[%s2832_s4 + $0xc4] sm:$0xf0] }
  0x2f   : > { %v578_v12 = vsel %vm2870_vm2, %v573_v2, %v577_v3  ;;  %v594_v16 = vshrl.u32 %v502_v9, 16  ;;  %v610_v31 = vrot.slane %v608_v18, 4  ;;  %v2670_v2 = vld [vmem:[%s2832_s4 + $0xec] sm:$0xf0]  ;;  %v2120_v18 = vld [vmem:[%s2832_s4 + $0x68] sm:$0xf] }
  0x30   : > { %446 = vmatpush.bf16.msrb.mxu1 %v2647_v13  ;;  %1013 = vmatpush.bf16.msrb.mxu0 %v2679_v15  ;;  %v592_v13 = vsel %vm2870_vm2, %v587_v4, %v591_v5  ;;  %v2641_v15 = vld [vmem:[%s3231_s1 + $0x40] sm:$0xff]  ;;  %v2683_v5 = vld [vmem:[%s3231_s1 + $0x150] sm:$0xff] }
  0x31   : > { %1426 = vmatpush.bf16.msrb.mxu2 %v2699_v17  ;;  %v597_v17 = vshll.u32 %v502_v9, 16  ;;  %v651_v28 = vunpack.c.l.b16 %v592_v13  ;;  %v596_v29 = vrot.slane %v594_v16, 4  ;;  %v614_v45 = vor.u32 %v613_v32, %v610_v31  ;;  %v2244_v9 = vld [vmem:[%s2832_s4 + $0xc0] sm:$0xf]  ;;  %v2716_v13 = vld [vmem:[%s3231_s1 + $0x218] sm:$0xff]  ;;  %v2715_v16 = vld [vmem:[%s3231_s1 + $0x210] sm:$0xff] }
  0x32   : > { %1577 = vmatpush.bf16.msrb.mxu3 %v2711_v23  ;;  %v2720_v23 = vld [vmem:[%s3231_s1 + $0x238] sm:$0xff]  ;;  %v2350_v31 = vld [vmem:[%s2832_s4 + $0x90] sm:$0xf] }
  0x33   : > { %v599_v30 = vrot.slane %v597_v17, 5  ;;  %v2714_v17 = vld [vmem:[%s3231_s1 + $0x208] sm:$0xff]  ;;  %v2352_v32 = vld [vmem:[%s2832_s4 + $0x98] sm:$0xf] }
  0x34   : > { %447 = vmatpush.bf16.msrb.mxu1 %v2646_v22  ;;  %1014 = vmatpush.bf16.msrb.mxu0 %v2678_v26  ;;  %v2112_v22 = vld [vmem:[%s2832_s4 + $0x48] sm:$0xf]  ;;  %v2669_v26 = vld [vmem:[%s2832_s4 + $0xdc] sm:$0xf0] }
  0x35   : > { %1427 = vmatpush.bf16.msrb.mxu2 %v2698_v27  ;;  %v650_v27 = vunpack.c.l.b16 %v578_v12  ;;  %v600_v43 = vor.u32 %v599_v30, %v596_v29  ;;  %v2682_v12 = vld [vmem:[%s3231_s1 + $0x148] sm:$0xff]  ;;  %v2713_v30 = vld [vmem:[%s3231_s1 + $0x200] sm:$0xff] }
  0x36   : > { %1578 = vmatpush.bf16.msrb.mxu3 %v2710_v35  ;;  %v505_v35 = vld [vmem:[%s2832_s4 + $0x3c] sm:$0x1] }
  0x37   : > { %v656_v38 = vpack.c.b16 %v651_v28, %v650_v27  ;;  %v617_v46 = vshll.u32 %v505_v35, 16  ;;  %v601_v51 = vrot.slane %v600_v43, 4  ;;  %v2512_v27 = vld [vmem:[%s2832_s4 + $0x50] sm:$0xf]  ;;  %v2701_v28 = vld [vmem:[%s2832_s4 + $0x54] sm:$0xf0] }
  0x38   : > { %448 = vmatpush.bf16.msrb.mxu1 %v2645_v34  ;;  %1015 = vmatpush.bf16.msrb.mxu0 %v2677_v36  ;;  %v503_v34 = vld [vmem:[%s2832_s4 + $0x34] sm:$0x1]  ;;  %v2113_v36 = vor.u32 %v2637_v24, %v2112_v22  ;;  %v2440_v22 = vld [vmem:[%s2832_s4 + $0x8] sm:$0xf]  ;;  %v2121_v24 = vor.u32 %v2639_v19, %v2120_v18  ;;  %v2513_v29 = vor.u32 %v2701_v28, %v2512_v27  ;;  %v1074_v35 = vshrl.u32 %v2350_v31, 16 }
  0x39   : > { %1428 = vmatpush.bf16.msrb.mxu2 %v2697_v37  ;;  %v2305_v37 = vor.u32 %v2669_v26, %v2304_v25  ;;  %v603_v44 = vshll.u32 %v503_v34, 16  ;;  %v2560_v34 = vld [vmem:[%s2832_s4 + $0x10] sm:$0xf]  ;;  %v2562_v18 = vld [vmem:[%s2832_s4 + $0x18] sm:$0xf] }
  0x3a   : > { %1579 = vmatpush.bf16.msrb.mxu3 %v2709_v8  ;;  %v1655_v43 = vshll.u32 %v2560_v34, 16  ;;  %v2564_v19 = vld [vmem:[%s2832_s4 + $0x20] sm:$0xf]  ;;  %v1666_v28 = vshrl.u32 %v2562_v18, 16 }
  0x3b   : > { %317 = vmatmul.bf16.gmra.mxu1 %v2053_v53  ;;  %307 = vmatmul.bf16.gmra.mxu0 %v2045_v54  ;;  %v615_v53 = vrot.slane %v614_v45, 4  ;;  %v619_v54 = vrot.slane %v617_v46, 5  ;;  %v2640_v45 = vld [vmem:[%s2832_s4 + $0x7c] sm:$0xf0]  ;;  %v2316_v46 = vld [vmem:[%s2832_s4 + $0x108] sm:$0xf] }
  0x3c   : > { %449 = vmatpush.bf16.msrb.mxu1 %v2644_v49  ;;  %1016 = vmatpush.bf16.msrb.mxu0 %v2676_v52  ;;  %v2241_v49 = vor.u32 %v2659_v41, %v2240_v40  ;;  %v605_v52 = vrot.slane %v603_v44, 5  ;;  %v2124_v44 = vld [vmem:[%s2832_s4 + $0x78] sm:$0xf] }
  0x3d   : > { %1429 = vmatpush.bf16.msrb.mxu2 %v2696_v1  ;;  %874 = vmatmul.bf16.gmra.mxu3 %v2237_v0  ;;  %v620_v61 = vsel %vm2870_vm2, %v615_v53, %v619_v54  ;;  %v2638_v0 = vld [vmem:[%s2832_s4 + $0x5c] sm:$0xf0]  ;;  %v2308_v1 = vld [vmem:[%s2832_s4 + $0xe8] sm:$0xf] }
  0x3e   : > { %723 = vmatmul.bf16.gmra.mxu2 %v655_v55  ;;  %1580 = vmatpush.bf16.msrb.mxu3 %v2708_v14  ;;  %v2693_v55 = vld [vmem:[%s3231_s1 + $0x180] sm:$0xff]  ;;  %v606_v60 = vsel %vm2870_vm2, %v601_v51, %v605_v52  ;;  %v653_v4 = vunpack.c.l.b16 %v620_v61  ;;  %v1076_v51 = vrot.slane %v1074_v35, 4  ;;  %v2561_v61 = vld [vmem:[%s2832_s4 + $0x14] sm:$0x1] }
  0x3f   : > { %v652_v3 = vunpack.c.l.b16 %v606_v60  ;;  %v2705_v14 = vld [vmem:[%s3231_s1 + $0x1c0] sm:$0xff]  ;;  %v2559_v60 = vld [vmem:[%s2832_s4 + $0xc] sm:$0x1] }
  0x40   : > { %450 = vmatpush.bf16.msrb.mxu1 %v2643_v62  ;;  %1017 = vmatpush.bf16.msrb.mxu0 %v2675_v63  ;;  %v2684_v62 = vld [vmem:[%s3231_s1 + $0x158] sm:$0xff] }
  0x41   : > { %1430 = vmatpush.bf16.msrb.mxu2 %v2695_v11  ;;  %v2116_v63 = vld [vmem:[%s2832_s4 + $0x58] sm:$0xf]  ;;  %v657_v8 = vpack.c.b16 %v653_v4, %v652_v3  ;;  %v2245_v11 = vor.u32 %v2660_v10, %v2244_v9  ;;  %v1661_v10 = vshll.u32 %v2561_v61, 16 }
  0x42   : > { %1581 = vmatpush.bf16.msrb.mxu3 %v2707_v56 }
  0x44   : > { %451 = vmatpush.bf16.msrb.mxu1 %v2642_v6  ;;  %1018 = vmatpush.bf16.msrb.mxu0 %v2674_v7  ;;  %v2117_v6 = vor.u32 %v2638_v0, %v2116_v63  ;;  %v2309_v7 = vor.u32 %v2670_v2, %v2308_v1 }
  0x45   : > { %1431 = vmatpush.bf16.msrb.mxu2 %v2694_v48  ;;  %v2444_v48 = vld [vmem:[%s2832_s4 + $0x18] sm:$0xf] }
  0x46   : > { %1582 = vmatpush.bf16.msrb.mxu3 %v2706_v59  ;;  %v1657_v59 = vrot.slane %v1655_v43, 5  ;;  %v1668_v43 = vrot.slane %v1666_v28, 4 }
  0x48   : > { %452 = vmatpush.bf16.msrb.mxu1 %v2641_v15  ;;  %1019 = vmatpush.bf16.msrb.mxu0 %v2673_v21  ;;  %v2681_v15 = vld [vmem:[%s3231_s1 + $0x140] sm:$0xff] }
  0x49   : > { %1432 = vmatpush.bf16.msrb.mxu2 %v2693_v55  ;;  %v2671_v21 = vld [vmem:[%s2832_s4 + $0xfc] sm:$0xf0] }
  0x4a   : > { %1583 = vmatpush.bf16.msrb.mxu3 %v2705_v14  ;;  %v2690_v55 = vld [vmem:[%s2832_s4 + $0x1c] sm:$0xf0]  ;;  %v2356_v14 = vld [vmem:[%s2832_s4 + $0xa8] sm:$0xf] }
  0x4b   : > { %453 = vmatmul.bf16.vlgmr.msrb.gmra.mxu1 %v2113_v36  ;;  %1020 = vmatmul.bf16.vlgmr.msrb.gmra.mxu0 %v2305_v37  ;;  %v1077_v36 = vshll.u32 %v2350_v31, 16  ;;  %v1088_v37 = vshrl.u32 %v2352_v32, 16  ;;  %v2445_v2 = vor.u32 %v2690_v55, %v2444_v48  ;;  %v1119_v27 = vshll.u32 %v2356_v14, 16 }
  0x4c   : > { %1274 = vmatpush.bf16.msra.mxu1 %v2688_v20  ;;  %1838 = vmatpush.bf16.msra.mxu0 %v2720_v23  ;;  %v2312_v20 = vld [vmem:[%s2832_s4 + $0xf8] sm:$0xf]  ;;  %v1683_v31 = vshll.u32 %v2564_v19, 16 }
  0x4d   : > { %879 = vmatmul.bf16.gmra.mxu3 %v2241_v49  ;;  %2752 = vmatpush.bf16.msra.mxu2 %v2720_v23  ;;  %v2689_v23 = vld [vmem:[%s2832_s4 + $0xc] sm:$0xf0]  ;;  %v2313_v25 = vor.u32 %v2671_v21, %v2312_v20  ;;  %v2351_v49 = vld [vmem:[%s2832_s4 + $0x94] sm:$0x1]  ;;  %v1079_v52 = vrot.slane %v1077_v36, 5  ;;  %v1090_v53 = vrot.slane %v1088_v37, 4 }
  0x4e   : > { %728 = vmatmul.bf16.gmra.mxu2 %v656_v38  ;;  %v2441_v26 = vor.u32 %v2689_v23, %v2440_v22  ;;  %v1091_v38 = vshll.u32 %v2352_v32, 16  ;;  %v1083_v63 = vshll.u32 %v2351_v49, 16  ;;  %v1663_v23 = vrot.slane %v1661_v10, 5  ;;  %v2355_v36 = vld [vmem:[%s2832_s4 + $0xa4] sm:$0x1] }
  0x4f   : > { %v1080_v3 = vor.u32 %v1079_v52, %v1076_v51  ;;  %v2563_v51 = vld [vmem:[%s2832_s4 + $0x1c] sm:$0x1]  ;;  %v2565_v52 = vld [vmem:[%s2832_s4 + $0x24] sm:$0x1] }
  0x50   : > { %1275 = vmatpush.bf16.msra.mxu1 %v2687_v33  ;;  %1839 = vmatpush.bf16.msra.mxu0 %v2719_v42  ;;  %v2558_v33 = vld [vmem:[%s2832_s4 + $0x8] sm:$0xf]  ;;  %v1093_v54 = vrot.slane %v1091_v38, 5 }
  0x51   : > { %2753 = vmatpush.bf16.msra.mxu2 %v2719_v42  ;;  %v1638_v40 = vshrl.u32 %v2558_v33, 16  ;;  %v1641_v41 = vshll.u32 %v2558_v33, 16  ;;  %v1652_v42 = vshrl.u32 %v2560_v34, 16 }
  0x52   : > { %v1094_v4 = vor.u32 %v1093_v54, %v1090_v53  ;;  %v2448_v53 = vld [vmem:[%s2832_s4 + $0x28] sm:$0xf]  ;;  %v2691_v54 = vld [vmem:[%s2832_s4 + $0x2c] sm:$0xf0] }
  0x53   : > { %v1640_v56 = vrot.slane %v1638_v40, 4 }
  0x54   : > { %1276 = vmatpush.bf16.msra.mxu1 %v2686_v47  ;;  %1840 = vmatpush.bf16.msra.mxu0 %v2718_v50  ;;  %v2672_v47 = vld [vmem:[%s2832_s4 + $0x10c] sm:$0xf0] }
  0x55   : > { %2754 = vmatpush.bf16.msra.mxu2 %v2718_v50  ;;  %v2353_v50 = vld [vmem:[%s2832_s4 + $0x9c] sm:$0x1]  ;;  %v2317_v1 = vor.u32 %v2672_v47, %v2316_v46  ;;  %v1685_v46 = vrot.slane %v1683_v31, 5 }
  0x56   : > { %v1097_v0 = vshll.u32 %v2353_v50, 16 }
  0x58   : > { %1277 = vmatpush.bf16.msra.mxu1 %v2685_v57  ;;  %1841 = vmatpush.bf16.msra.mxu0 %v2717_v58  ;;  %v1643_v57 = vrot.slane %v1641_v41, 5  ;;  %v1121_v41 = vrot.slane %v1119_v27, 5 }
  0x59   : > { %2755 = vmatpush.bf16.msra.mxu2 %v2717_v58  ;;  %v1654_v58 = vrot.slane %v1652_v42, 4  ;;  %v2357_v42 = vld [vmem:[%s2832_s4 + $0xac] sm:$0x1] }
  0x5b   : > { %458 = vmatmul.bf16.gmra.mxu1 %v2117_v6  ;;  %1025 = vmatmul.bf16.gmra.mxu0 %v2309_v7  ;;  %v2702_v6 = vld [vmem:[%s2832_s4 + $0x64] sm:$0xf0]  ;;  %v1644_v7 = vor.u32 %v1643_v57, %v1640_v56  ;;  %v1658_v9 = vor.u32 %v1657_v59, %v1654_v58  ;;  %v1111_v56 = vshll.u32 %v2355_v36, 16  ;;  %v1125_v58 = vshll.u32 %v2357_v42, 16  ;;  %v2359_v42 = vld [vmem:[%s2832_s4 + $0xb4] sm:$0x1] }
  0x5c   : > { %1278 = vmatpush.bf16.msra.mxu1 %v2684_v62  ;;  %1842 = vmatpush.bf16.msra.mxu0 %v2716_v13  ;;  %v2125_v62 = vor.u32 %v2640_v45, %v2124_v44 }
  0x5d   : > { %884 = vmatmul.bf16.gmra.mxu3 %v2245_v11  ;;  %2756 = vmatpush.bf16.msra.mxu2 %v2716_v13  ;;  %v1085_v11 = vrot.slane %v1083_v63, 5  ;;  %v2354_v13 = vld [vmem:[%s2832_s4 + $0xa0] sm:$0xf]  ;;  %v1645_v20 = vrot.slane %v1644_v7, 4  ;;  %v1659_v22 = vrot.slane %v1658_v9, 4  ;;  %v1127_v7 = vrot.slane %v1125_v58, 5 }
  0x5e   : > { %733 = vmatmul.bf16.gmra.mxu2 %v657_v8  ;;  %v1647_v8 = vshll.u32 %v2559_v60, 16  ;;  %v1675_v60 = vshll.u32 %v2563_v51, 16  ;;  %v2452_v51 = vld [vmem:[%s2832_s4 + $0x38] sm:$0xf]  ;;  %v2571_v58 = vld [vmem:[%s2832_s4 + $0x3c] sm:$0x1] }
  0x5f   : > { %v1664_v35 = vsel %vm2870_vm2, %v1659_v22, %v1663_v23 }
  0x60   : > { %1279 = vmatpush.bf16.msra.mxu1 %v2683_v5  ;;  %1843 = vmatpush.bf16.msra.mxu0 %v2715_v16  ;;  %v2516_v5 = vld [vmem:[%s2832_s4 + $0x60] sm:$0xf]  ;;  %v1649_v21 = vrot.slane %v1647_v8, 5  ;;  %v1775_v50 = vunpack.c.l.b16 %v1664_v35  ;;  %v1677_v9 = vrot.slane %v1675_v60, 5 }
  0x61   : > { %2757 = vmatpush.bf16.msra.mxu2 %v2715_v16  ;;  %v1095_v16 = vrot.slane %v1094_v4, 4 }
  0x62   : > { %v1650_v34 = vsel %vm2870_vm2, %v1645_v20, %v1649_v21  ;;  %v2570_v21 = vld [vmem:[%s2832_s4 + $0x38] sm:$0xf] }
  0x63   : > { %v1774_v49 = vunpack.c.l.b16 %v1650_v34  ;;  %v1725_v34 = vshll.u32 %v2570_v21, 16 }
  0x64   : > { %1280 = vmatpush.bf16.msra.mxu1 %v2682_v12  ;;  %1844 = vmatpush.bf16.msra.mxu0 %v2714_v17  ;;  %v1099_v12 = vrot.slane %v1097_v0, 5 }
  0x65   : > { %2758 = vmatpush.bf16.msra.mxu2 %v2714_v17  ;;  %v2517_v17 = vor.u32 %v2702_v6, %v2516_v5  ;;  %v1782_v0 = vpack.c.b16 %v1775_v50, %v1774_v49  ;;  %v1113_v5 = vrot.slane %v1111_v56, 5  ;;  %v2692_v56 = vld [vmem:[%s2832_s4 + $0x3c] sm:$0xf0] }
  0x66   : > { %v1100_v33 = vsel %vm2870_vm2, %v1095_v16, %v1099_v12  ;;  %v2358_v12 = vld [vmem:[%s2832_s4 + $0xb0] sm:$0xf] }
  0x67   : > { %v1211_v48 = vunpack.c.l.b16 %v1100_v33  ;;  %v2568_v16 = vld [vmem:[%s2832_s4 + $0x30] sm:$0xf]  ;;  %v1133_v20 = vshll.u32 %v2358_v12, 16  ;;  %v1722_v33 = vshrl.u32 %v2570_v21, 16 }
  0x68   : > { %1281 = vmatpush.bf16.msra.mxu1 %v2681_v15  ;;  %1845 = vmatpush.bf16.msra.mxu0 %v2713_v30  ;;  %v1081_v15 = vrot.slane %v1080_v3, 4  ;;  %v2703_v3 = vld [vmem:[%s2832_s4 + $0x74] sm:$0xf0] }
  0x69   : > { %2759 = vmatpush.bf16.msra.mxu2 %v2713_v30  ;;  %v1680_v30 = vshrl.u32 %v2564_v19, 16  ;;  %v1130_v19 = vshrl.u32 %v2358_v12, 16  ;;  %v1135_v36 = vrot.slane %v1133_v20, 5 }
  0x6a   : > { %v1086_v32 = vsel %vm2870_vm2, %v1081_v15, %v1085_v11  ;;  %v2566_v15 = vld [vmem:[%s2832_s4 + $0x28] sm:$0xf] }
  0x6b   : > { %463 = vmatmul.bf16.gmra.mxu1 %v2121_v24  ;;  %1030 = vmatmul.bf16.gmra.mxu0 %v2313_v25  ;;  %v1102_v24 = vshrl.u32 %v2354_v13, 16  ;;  %v1105_v25 = vshll.u32 %v2354_v13, 16  ;;  %v1682_v45 = vrot.slane %v1680_v30, 4  ;;  %v1210_v47 = vunpack.c.l.b16 %v1086_v32 }
  0x6c   : > { %v1694_v27 = vshrl.u32 %v2566_v15, 16  ;;  %v1697_v28 = vshll.u32 %v2566_v15, 16  ;;  %v1711_v30 = vshll.u32 %v2568_v16, 16  ;;  %v1132_v35 = vrot.slane %v1130_v19, 4 }
  0x6d   : > { %1584 = vmatmul.bf16.vlgmr.msrb.gmra.mxu3 %v2513_v29  ;;  %v1669_v29 = vshll.u32 %v2562_v18, 16  ;;  %v1104_v37 = vrot.slane %v1102_v24, 4  ;;  %v1107_v38 = vrot.slane %v1105_v25, 5  ;;  %v1686_v61 = vor.u32 %v1685_v46, %v1682_v45  ;;  %v2567_v46 = vld [vmem:[%s2832_s4 + $0x2c] sm:$0x1] }
  0x6e   : > { %1433 = vmatmul.bf16.vlgmr.msrb.gmra.mxu2 %v2441_v26  ;;  %v1116_v26 = vshrl.u32 %v2356_v14, 16  ;;  %v1218_v63 = vpack.c.b16 %v1211_v48, %v1210_v47  ;;  %v2360_v14 = vld [vmem:[%s2832_s4 + $0xb8] sm:$0xf]  ;;  %v1696_v47 = vrot.slane %v1694_v27, 4  ;;  %v1699_v48 = vrot.slane %v1697_v28, 5 }
  0x6f   : > { %v1671_v44 = vrot.slane %v1669_v29, 5  ;;  %v1108_v55 = vor.u32 %v1107_v38, %v1104_v37  ;;  %v1687_v10 = vrot.slane %v1686_v61, 4  ;;  %v1144_v24 = vshrl.u32 %v2360_v14, 16  ;;  %v2364_v27 = vld [vmem:[%s2832_s4 + $0xc8] sm:$0xf] }
  0x70   : > { %v1118_v40 = vrot.slane %v1116_v26, 4  ;;  %v1147_v25 = vshll.u32 %v2360_v14, 16  ;;  %v2572_v26 = vld [vmem:[%s2832_s4 + $0x40] sm:$0xf]  ;;  %v1708_v29 = vshrl.u32 %v2568_v16, 16  ;;  %v1713_v50 = vrot.slane %v1711_v30, 5 }
  0x71   : > { %v1672_v59 = vor.u32 %v1671_v44, %v1668_v43  ;;  %v1109_v4 = vrot.slane %v1108_v55, 4  ;;  %v1736_v37 = vshrl.u32 %v2572_v26, 16  ;;  %v1739_v38 = vshll.u32 %v2572_v26, 16  ;;  %v2361_v43 = vld [vmem:[%s2832_s4 + $0xbc] sm:$0x1] }
  0x72   : > { %v1122_v57 = vor.u32 %v1121_v41, %v1118_v40  ;;  %v1146_v44 = vrot.slane %v1144_v24, 4  ;;  %v1149_v45 = vrot.slane %v1147_v25, 5  ;;  %v1710_v49 = vrot.slane %v1708_v29, 4  ;;  %v2362_v24 = vld [vmem:[%s2832_s4 + $0xc0] sm:$0xf] }
  0x73   : > { %v1673_v8 = vrot.slane %v1672_v59, 4  ;;  %v1738_v59 = vrot.slane %v1736_v37, 4  ;;  %v1741_v60 = vrot.slane %v1739_v38, 5  ;;  %v1139_v61 = vshll.u32 %v2359_v42, 16 }
  0x74   : > { %v1123_v6 = vrot.slane %v1122_v57, 4  ;;  %v1136_v57 = vor.u32 %v1135_v36, %v1132_v35  ;;  %v1172_v35 = vshrl.u32 %v2364_v27, 16  ;;  %v1175_v36 = vshll.u32 %v2364_v27, 16 }
  0x75   : > { %v1678_v22 = vsel %vm2870_vm2, %v1673_v8, %v1677_v9  ;;  %v2704_v8 = vld [vmem:[%s2832_s4 + $0x84] sm:$0xf0]  ;;  %v1742_v12 = vor.u32 %v1741_v60, %v1738_v59  ;;  %v1141_v14 = vrot.slane %v1139_v61, 5 }
  0x76   : > { %v1128_v18 = vsel %vm2870_vm2, %v1123_v6, %v1127_v7  ;;  %v1776_v40 = vunpack.c.l.b16 %v1678_v22  ;;  %v2453_v6 = vor.u32 %v2692_v56, %v2452_v51  ;;  %v2524_v7 = vld [vmem:[%s2832_s4 + $0x80] sm:$0xf] }
  0x77   : > { %v1213_v32 = vunpack.c.l.b16 %v1128_v18  ;;  %v2525_v18 = vor.u32 %v2704_v8, %v2524_v7  ;;  %v1743_v25 = vrot.slane %v1742_v12, 4 }
  0x7b   : > { %468 = vmatmul.bf16.gmra.mxu1 %v2125_v62  ;;  %1035 = vmatmul.bf16.gmra.mxu0 %v2317_v1  ;;  %v1689_v62 = vshll.u32 %v2565_v52, 16  ;;  %v2449_v1 = vor.u32 %v2691_v54, %v2448_v53  ;;  %v2569_v52 = vld [vmem:[%s2832_s4 + $0x34] sm:$0x1]  ;;  %v1724_v53 = vrot.slane %v1722_v33, 4  ;;  %v1727_v54 = vrot.slane %v1725_v34, 5 }
  0x7c   : > { %v1161_v34 = vshll.u32 %v2362_v24, 16 }
  0x7d   : > { %1589 = vmatmul.bf16.gmra.mxu3 %v2517_v17  ;;  %v1691_v11 = vrot.slane %v1689_v62, 5  ;;  %v1114_v17 = vsel %vm2870_vm2, %v1109_v4, %v1113_v5  ;;  %v1150_v62 = vor.u32 %v1149_v45, %v1146_v44  ;;  %v1714_v4 = vor.u32 %v1713_v50, %v1710_v49  ;;  %v2365_v50 = vld [vmem:[%s2832_s4 + $0xcc] sm:$0x1] }
  0x7e   : > { %1438 = vmatmul.bf16.gmra.mxu2 %v2445_v2  ;;  %v2520_v2 = vld [vmem:[%s2832_s4 + $0x70] sm:$0xf]  ;;  %v1212_v31 = vunpack.c.l.b16 %v1114_v17  ;;  %v1717_v5 = vshll.u32 %v2569_v52, 16  ;;  %v1728_v9 = vor.u32 %v1727_v54, %v1724_v53  ;;  %v1177_v49 = vrot.slane %v1175_v36, 5 }
  0x7f   : > { %v2521_v13 = vor.u32 %v2703_v3, %v2520_v2  ;;  %v1692_v23 = vsel %vm2870_vm2, %v1687_v10, %v1691_v11  ;;  %v1700_v3 = vor.u32 %v1699_v48, %v1696_v47  ;;  %v1731_v10 = vshll.u32 %v2571_v58, 16 }
  0x80   : > { %v1777_v41 = vunpack.c.l.b16 %v1692_v23  ;;  %v1219_v55 = vpack.c.b16 %v1213_v32, %v1212_v31  ;;  %v1137_v11 = vrot.slane %v1136_v57, 4  ;;  %v1151_v15 = vrot.slane %v1150_v62, 4 }
  0x81   : > { %v1701_v19 = vrot.slane %v1700_v3, 4  ;;  %v1715_v20 = vrot.slane %v1714_v4, 4  ;;  %v1719_v21 = vrot.slane %v1717_v5, 5  ;;  %v1729_v22 = vrot.slane %v1728_v9, 4 }
  0x82   : > { %v1783_v2 = vpack.c.b16 %v1777_v41, %v1776_v40  ;;  %v1733_v23 = vrot.slane %v1731_v10, 5  ;;  %v1142_v28 = vsel %vm2870_vm2, %v1137_v11, %v1141_v14  ;;  %v1158_v32 = vshrl.u32 %v2362_v24, 16 }
  0x83   : > { %v1720_v31 = vsel %vm2870_vm2, %v1715_v20, %v1719_v21  ;;  %v1214_v38 = vunpack.c.l.b16 %v1142_v28  ;;  %v1163_v47 = vrot.slane %v1161_v34, 5  ;;  %v1174_v48 = vrot.slane %v1172_v35, 4 }
  0x84   : > { %v1734_v33 = vsel %vm2870_vm2, %v1729_v22, %v1733_v23  ;;  %v1779_v42 = vunpack.c.l.b16 %v1720_v31  ;;  %v1160_v44 = vrot.slane %v1158_v32, 4  ;;  %v1181_v59 = vshll.u32 %v2365_v50, 16 }
  0x85   : > { %v1178_v58 = vor.u32 %v1177_v49, %v1174_v48 }
  0x86   : > { %v1164_v57 = vor.u32 %v1163_v47, %v1160_v44 }
  0x87   : > { %v1179_v62 = vrot.slane %v1178_v58, 4 }
  0x88   : > { %v1165_v60 = vrot.slane %v1164_v57, 4 }
  0x8b   : > { %1282 = vmatmul.bf16.vlgmr.msra.gmra.mxu1 %v1218_v63  ;;  %1846 = vmatmul.bf16.vlgmr.msra.gmra.mxu0 %v1782_v0  ;;  %v1153_v63 = vshll.u32 %v2361_v43, 16  ;;  %v1703_v0 = vshll.u32 %v2567_v46, 16  ;;  %v1780_v43 = vunpack.c.l.b16 %v1734_v33  ;;  %v2363_v46 = vld [vmem:[%s2832_s4 + $0xc4] sm:$0x1] }
  0x8c   : > { %v1167_v53 = vshll.u32 %v2363_v46, 16 }
  0x8d   : > { %1594 = vmatmul.bf16.gmra.mxu3 %v2521_v13  ;;  %v1155_v16 = vrot.slane %v1153_v63, 5  ;;  %v1705_v17 = vrot.slane %v1703_v0, 5  ;;  %v1183_v63 = vrot.slane %v1181_v59, 5 }
  0x8e   : > { %1443 = vmatmul.bf16.gmra.mxu2 %v2449_v1  ;;  %v2573_v1 = vld [vmem:[%s2832_s4 + $0x44] sm:$0x1]  ;;  %v1169_v61 = vrot.slane %v1167_v53, 5  ;;  %s2624_s4 = sshll.u32 %s3237_s13, 5 }
  0x8f   : > { %v1745_v13 = vshll.u32 %v2573_v1, 16  ;;  %v1156_v29 = vsel %vm2870_vm2, %v1151_v15, %v1155_v16  ;;  %v1706_v30 = vsel %vm2870_vm2, %v1701_v19, %v1705_v17  ;;  %v1184_v4 = vsel %vm2870_vm2, %v1179_v62, %v1183_v63  ;;  %s3206_s19 = scalar_lea.vmem %s3232_s2, %s2624_s4 }
  0x90   : > { %v1215_v40 = vunpack.c.l.b16 %v1156_v29  ;;  %v1778_v41 = vunpack.c.l.b16 %v1706_v30  ;;  %v1170_v3 = vsel %vm2870_vm2, %v1165_v60, %v1169_v61  ;;  %v1217_v7 = vunpack.c.l.b16 %v1184_v4 }
  0x91   : > { %v1747_v26 = vrot.slane %v1745_v13, 5 }
  0x92   : > { %v1220_v51 = vpack.c.b16 %v1215_v40, %v1214_v38  ;;  %v1784_v52 = vpack.c.b16 %v1779_v42, %v1778_v41 }
  0x93   : > { %v1748_v37 = vsel %vm2870_vm2, %v1743_v25, %v1747_v26 }
  0x94   : > { %v1781_v45 = vunpack.c.l.b16 %v1748_v37 }
  0x96   : > { %v1785_v56 = vpack.c.b16 %v1781_v45, %v1780_v43 }
  0x9b   : > { %1287 = vmatmul.bf16.gmra.mxu1 %v1219_v55  ;;  %1851 = vmatmul.bf16.gmra.mxu0 %v1783_v2 }
  0x9d   : > { %1599 = vmatmul.bf16.gmra.mxu3 %v2525_v18 }
  0x9e   : > { %1448 = vmatmul.bf16.gmra.mxu2 %v2453_v6  ;;  %v1216_v6 = vunpack.c.l.b16 %v1170_v3 }
  0xa0   : > { %v1221_v8 = vpack.c.b16 %v1217_v7, %v1216_v6 }
  0xa8   : > { %v313_v54 = vpop.f32.mrf.mxu1  ;;  %v303_v55 = vpop.f32.mrf.mxu0 }
  0xab   : > { %1292 = vmatmul.bf16.gmra.mxu1 %v1220_v51  ;;  %1856 = vmatmul.bf16.gmra.mxu0 %v1784_v52 }
  0xae   : > { %1861 = vmatmul.bf16.vlgmr.msra.gmra.mxu2 %v1785_v56 }
  0xb0   : > { %v315_v1 = vpop.f32.mrf.mxu1  ;;  %v305_v2 = vpop.f32.mrf.mxu0 }
  0xb1   : > { %v719_v0 = vpop.f32.mrf.mxu2  ;;  %v870_v5 = vpop.f32.mrf.mxu3 }
  0xb8   : > { %v318_v10 = vpop.f32.mrf.mxu1  ;;  %v308_v11 = vpop.f32.mrf.mxu0 }
  0xb9   : > { %v721_v9 = vpop.f32.mrf.mxu2  ;;  %v3177_v12 = vpop.f32.mrf.mxu3 }
  0xbb   : > { %1297 = vmatmul.bf16.gmra.mxu1 %v1221_v8 }
  0xc0   : > { %v320_v14 = vpop.f32.mrf.mxu1  ;;  %v310_v15 = vpop.f32.mrf.mxu0 }
  0xc1   : > { %v724_v13 = vpop.f32.mrf.mxu2  ;;  %v875_v16 = vpop.f32.mrf.mxu3 }
  0xc8   : > { %v454_v18 = vpop.f32.mrf.mxu1  ;;  %v1021_v19 = vpop.f32.mrf.mxu0 }
  0xc9   : > { %v726_v17 = vpop.f32.mrf.mxu2  ;;  %v474_v20 = vadd.f32 %v454_v18, %v303_v55  ;;  %v3179_v21 = vpop.f32.mrf.mxu3 }
  0xcb   : > { %v739_v39 = vadd.f32 %v719_v0, %v474_v20 }
  0xcd   : > { %v890_v22 = vadd.f32 %v870_v5, %v739_v39 }
  0xcf   : > { %v1041_v23 = vadd.f32 %v1021_v19, %v890_v22 }
  0xd0   : > { %v456_v25 = vpop.f32.mrf.mxu1  ;;  %v1023_v26 = vpop.f32.mrf.mxu0 }
  0xd1   : > { %v729_v24 = vpop.f32.mrf.mxu2  ;;  %v475_v27 = vadd.f32 %v456_v25, %v305_v2  ;;  %v880_v29 = vpop.f32.mrf.mxu3 }
  0xd3   : > { %v740_v28 = vadd.f32 %v721_v9, %v475_v27 }
  0xd8   : > { %v459_v31 = vpop.f32.mrf.mxu1  ;;  %v1026_v32 = vpop.f32.mrf.mxu0 }
  0xd9   : > { %v731_v30 = vpop.f32.mrf.mxu2  ;;  %v476_v33 = vadd.f32 %v459_v31, %v308_v11  ;;  %v3181_v38 = vpop.f32.mrf.mxu3  ;;  %v891_v11 = vadd.f32 %v3177_v12, %v740_v28 }
  0xdb   : > { %v741_v34 = vadd.f32 %v724_v13, %v476_v33 }
  0xdd   : > { %v892_v35 = vadd.f32 %v875_v16, %v741_v34 }
  0xdf   : > { %v1043_v36 = vadd.f32 %v1026_v32, %v892_v35 }
  0xe0   : > { %v461_v40 = vpop.f32.mrf.mxu1  ;;  %v1028_v41 = vpop.f32.mrf.mxu0 }
  0xe1   : > { %v734_v37 = vpop.f32.mrf.mxu2  ;;  %v477_v42 = vadd.f32 %v461_v40, %v310_v15  ;;  %v3183_v48 = vpop.f32.mrf.mxu3 }
  0xe3   : > { %v742_v43 = vadd.f32 %v726_v17, %v477_v42 }
  0xe8   : > { %v464_v45 = vpop.f32.mrf.mxu1  ;;  %v1031_v46 = vpop.f32.mrf.mxu0 }
  0xe9   : > { %v736_v44 = vpop.f32.mrf.mxu2  ;;  %v478_v47 = vadd.f32 %v464_v45, %v313_v54  ;;  %v3191_v58 = vpop.f32.mrf.mxu3 }
  0xeb   : > { %v743_v49 = vadd.f32 %v729_v24, %v478_v47 }
  0xed   : > { %v894_v50 = vadd.f32 %v880_v29, %v743_v49 }
  0xef   : > { %v3185_v51 = vadd.f32 %v1031_v46, %v894_v50 }
  0xf0   : > { %v466_v53 = vpop.f32.mrf.mxu1  ;;  %v3187_v55 = vpop.f32.mrf.mxu0 }
  0xf1   : > { %v1434_v52 = vpop.f32.mrf.mxu2  ;;  %v479_v56 = vadd.f32 %v466_v53, %v315_v1  ;;  %v1585_v63 = vpop.f32.mrf.mxu3 }
  0xf3   : > { %v3189_v57 = vadd.f32 %v731_v30, %v479_v56  ;;  %v893_v30 = vadd.f32 %v3179_v21, %v742_v43 }
  0xf8   : > { %v469_v60 = vpop.f32.mrf.mxu1  ;;  %v3193_v61 = vpop.f32.mrf.mxu0 }
  0xf9   : > { %v1436_v59 = vpop.f32.mrf.mxu2  ;;  %v480_v54 = vadd.f32 %v469_v60, %v318_v10  ;;  %v1587_v1 = vpop.f32.mrf.mxu3  ;;  %v1042_v10 = vadd.f32 %v1023_v26, %v891_v11 }
  0xfb   : > { %v3195_v62 = vadd.f32 %v734_v37, %v480_v54  ;;  %v1044_v37 = vadd.f32 %v1028_v41, %v893_v30 }
 0x100   : > { %v471_v2 = vpop.f32.mrf.mxu1  ;;  %v3197_v3 = vpop.f32.mrf.mxu0 }
 0x101   : > { %v1439_v0 = vpop.f32.mrf.mxu2  ;;  %v481_v4 = vadd.f32 %v471_v2, %v320_v14  ;;  %v1590_v19 = vpop.f32.mrf.mxu3 }
 0x103   : > { %v3199_v5 = vadd.f32 %v736_v44, %v481_v4 }
 0x108   : > { %v1283_v6 = vpop.f32.mrf.mxu1  ;;  %v1847_v7 = vpop.f32.mrf.mxu0 }
 0x109   : > { %v1303_v8 = vadd.f32 %v1283_v6, %v1041_v23  ;;  %v1441_v9 = vpop.f32.mrf.mxu2  ;;  %v1592_v33 = vpop.f32.mrf.mxu3 }
 0x10b   : > { %v1454_v13 = vadd.f32 %v1434_v52, %v1303_v8 }
 0x10d   : > { %v1605_v15 = vadd.f32 %v1585_v63, %v1454_v13  ;;  %v895_v63 = vadd.f32 %v3181_v38, %v3189_v57 }
 0x10f   : > { %v1867_v39 = vadd.f32 %v1847_v7, %v1605_v15 }
 0x110   : > { %v1285_v16 = vpop.f32.mrf.mxu1  ;;  %v1849_v17 = vpop.f32.mrf.mxu0 }
 0x111   : > { %v1304_v18 = vadd.f32 %v1285_v16, %v1042_v10  ;;  %v1444_v14 = vpop.f32.mrf.mxu2  ;;  %v1921_v25 = vmul.f32 %v1867_v39, %v1867_v39 }
 0x113   : > { %v1455_v20 = vadd.f32 %v1436_v59, %v1304_v18 }
 0x115   : > { %v1606_v22 = vadd.f32 %v1587_v1, %v1455_v20  ;;  %v1046_v1 = vadd.f32 %v3187_v55, %v895_v63 }
 0x117   : > { %v1868_v24 = vadd.f32 %v1849_v17, %v1606_v22 }
 0x118   : > { %v1288_v12 = vpop.f32.mrf.mxu1  ;;  %v1852_v23 = vpop.f32.mrf.mxu0 }
 0x119   : > { %v2724_v26 = vpack.c.bf16 %v1868_v24, %v1867_v39  ;;  %v1907_v27 = vadd.f32 %v1868_v24, %v1867_v39  ;;  %v1922_v28 = vmul.f32 %v1868_v24, %v1868_v24  ;;  %v1305_v29 = vadd.f32 %v1288_v12, %v1043_v36  ;;  %v1446_v35 = vpop.f32.mrf.mxu2  ;;  %v1595_v36 = vpop.f32.mrf.mxu3 }
 0x11a   : > { %v897_v24 = vadd.f32 %v3191_v58, %v3199_v5 }
 0x11b   : > { %2725 = vst [vmem:[%s3206_s19] sm:$0xff] %v2724_v26   ;;  %v1929_v31 = vadd.f32 %v1922_v28, %v1921_v25  ;;  %v1456_v32 = vadd.f32 %v1439_v0, %v1305_v29 }
 0x11d   : > { %v1607_v34 = vadd.f32 %v1590_v19, %v1456_v32 }
 0x11f   : > { %v1869_v40 = vadd.f32 %v1852_v23, %v1607_v34  ;;  %v1048_v23 = vadd.f32 %v3197_v3, %v897_v24 }
 0x120   : > { %v1290_v42 = vpop.f32.mrf.mxu1  ;;  %v1854_v44 = vpop.f32.mrf.mxu0 }
 0x121   : > { %v1908_v45 = vadd.f32 %v1907_v27, %v1869_v40  ;;  %v1923_v46 = vmul.f32 %v1869_v40, %v1869_v40  ;;  %v1306_v47 = vadd.f32 %v1290_v42, %v1044_v37  ;;  %v1449_v21 = vpop.f32.mrf.mxu2  ;;  %v1597_v7 = vpop.f32.mrf.mxu3 }
 0x123   : > { %v1930_v49 = vadd.f32 %v1929_v31, %v1923_v46  ;;  %v1457_v50 = vadd.f32 %v1441_v9, %v1306_v47 }
 0x125   : > { %v1608_v52 = vadd.f32 %v1592_v33, %v1457_v50 }
 0x127   : > { %v1870_v53 = vadd.f32 %v1854_v44, %v1608_v52 }
 0x128   : > { %v1293_v43 = vpop.f32.mrf.mxu1  ;;  %v1857_v41 = vpop.f32.mrf.mxu0 }
 0x129   : > { %v2729_v56 = vpack.c.bf16 %v1870_v53, %v1869_v40  ;;  %v1909_v59 = vadd.f32 %v1908_v45, %v1870_v53  ;;  %v1924_v60 = vmul.f32 %v1870_v53, %v1870_v53  ;;  %v1307_v54 = vadd.f32 %v1293_v43, %v3185_v51  ;;  %v1451_v10 = vpop.f32.mrf.mxu2  ;;  %v1600_v22 = vpop.f32.mrf.mxu3 }
 0x12a   : > { %v896_v51 = vadd.f32 %v3183_v48, %v3195_v62 }
 0x12b   : > { %2741 = vst [vmem:[%s3206_s19 + $0x8] sm:$0xff] %v2729_v56   ;;  %v1931_v0 = vadd.f32 %v1930_v49, %v1924_v60  ;;  %v1458_v2 = vadd.f32 %v1444_v14, %v1307_v54 }
 0x12c   : > { %v1047_v17 = vadd.f32 %v3193_v61, %v896_v51 }
 0x12d   : > { %v1609_v4 = vadd.f32 %v1595_v36, %v1458_v2 }
 0x12f   : > { %v1871_v6 = vadd.f32 %v1857_v41, %v1609_v4 }
 0x130   : > { %v1295_v8 = vpop.f32.mrf.mxu1  ;;  %v1859_v38 = vpop.f32.mrf.mxu0 }
 0x131   : > { %v1910_v9 = vadd.f32 %v1909_v59, %v1871_v6  ;;  %v1925_v11 = vmul.f32 %v1871_v6, %v1871_v6  ;;  %v1308_v13 = vadd.f32 %v1295_v8, %v1046_v1  ;;  %v1862_v48 = vpop.f32.mrf.mxu2  ;;  %v1602_v32 = vpop.f32.mrf.mxu3 }
 0x133   : > { %v1932_v15 = vadd.f32 %v1931_v0, %v1925_v11  ;;  %v1459_v16 = vadd.f32 %v1446_v35, %v1308_v13 }
 0x135   : > { %v1610_v57 = vadd.f32 %v1597_v7, %v1459_v16 }
 0x137   : > { %v1872_v18 = vadd.f32 %v1859_v38, %v1610_v57 }
 0x138   : > { %v1298_v19 = vpop.f32.mrf.mxu1 }
 0x139   : > { %v2734_v55 = vpack.c.bf16 %v1872_v18, %v1871_v6  ;;  %v1911_v20 = vadd.f32 %v1910_v9, %v1872_v18  ;;  %v1926_v39 = vmul.f32 %v1872_v18, %v1872_v18  ;;  %v1309_v14 = vadd.f32 %v1298_v19, %v1047_v17  ;;  %v1864_v34 = vpop.f32.mrf.mxu2 }
 0x13b   : > { %2742 = vst [vmem:[%s3206_s19 + $0x10] sm:$0xff] %v2734_v55   ;;  %v1933_v25 = vadd.f32 %v1932_v15, %v1926_v39  ;;  %v1460_v12 = vadd.f32 %v1449_v21, %v1309_v14 }
 0x13d   : > { %v1611_v62 = vadd.f32 %v1600_v22, %v1460_v12 }
 0x13f   : > { %v1873_v26 = vadd.f32 %v1862_v48, %v1611_v62 }
 0x140   : > { %v1300_v61 = vpop.f32.mrf.mxu1 }
 0x141   : > { %v1912_v27 = vadd.f32 %v1911_v20, %v1873_v26  ;;  %v1927_v28 = vmul.f32 %v1873_v26, %v1873_v26  ;;  %v1310_v29 = vadd.f32 %v1300_v61, %v1048_v23 }
 0x143   : > { %v1934_v30 = vadd.f32 %v1933_v25, %v1927_v28  ;;  %v1461_v31 = vadd.f32 %v1451_v10, %v1310_v29 }
 0x145   : > { %v1612_v33 = vadd.f32 %v1602_v32, %v1461_v31 }
 0x147   : > { %v1874_v58 = vadd.f32 %v1864_v34, %v1612_v33 }
 0x149   : > { %v2739_v5 = vpack.c.bf16 %v1874_v58, %v1873_v26  ;;  %v1913_v35 = vadd.f32 %v1912_v27, %v1874_v58  ;;  %v1928_v37 = vmul.f32 %v1874_v58, %v1874_v58 }
 0x14b   : > { %2743 = vst [vmem:[%s3206_s19 + $0x18] sm:$0xff] %v2739_v5   ;;  %v1914_v40 = vrot.slane %v1913_v35, 4  ;;  %v1935_v42 = vadd.f32 %v1934_v30, %v1928_v37 }
 0x14d   : > { %v1915_v44 = vadd.f32 %v1914_v40, %v1913_v35  ;;  %v1936_v3 = vrot.slane %v1935_v42, 4 }
 0x14f   : > { %v1916_v45 = vrot.slane %v1915_v44, 2  ;;  %v1937_v46 = vadd.f32 %v1936_v3, %v1935_v42 }
 0x151   : > { %v1917_v47 = vadd.f32 %v1916_v45, %v1915_v44  ;;  %v1938_v49 = vrot.slane %v1937_v46, 2 }
 0x153   : > { %v1918_v50 = vrot.slane %v1917_v47, 1  ;;  %v1939_v52 = vadd.f32 %v1938_v49, %v1937_v46 }
 0x155   : > { %v1919_v36 = vadd.f32 %v1918_v50, %v1917_v47  ;;  %v1940_v53 = vrot.slane %v1939_v52, 1 }
 0x157   : > { %1920 = vst [vmem:[%s181_s23] sm:$0x1] %v1919_v36  ;;  %v1941_v21 = vadd.f32 %v1940_v53, %v1939_v52 }
 0x159   : > { %1942 = vst [vmem:[%s181_s23 + $0x1] sm:$0x1] %v1941_v21 }
 0x15a PF: > { %s14_s12 = sadd.s32 1, %s2775_s12  }
 0x15b   : > { %p11_p4 = scmp.ge.s32.totalorder %s14_s12, 4  }
 0x15d   :  { %13 = sbr.rel (!%p11_p4) target bundleno = 1 (0x1), region = 83 }

</bundles_post_ra>
